<compile_context>
chip_gen: v6e
topology: v6e:2x2x1
jax: 0.10.0
libtpu: 0.0.40
codegen_flags: <defaults>
</compile_context>

<pallas_src>
import numpy as np
import jax
import jax.numpy as jnp
from jax import lax
from jax.experimental import pallas as pl
from jax.experimental.pallas import tpu as pltpu


# -----------------------------------------------------------------------------
# Kernel 1: encoder GRU over T steps + fused fc_mu/fc_std + reparameterization.
#   x_ref:   (T, B, In) time-major input (whole thing fits in VMEM at these sizes)
#   w_ih:    (In, 3H)   fused gate weights, columns ordered [r | z | n]
#   w_hh:    (H, 3H)
#   b:       (1, 4H)    [b_ir+b_hr | b_iz+b_hz | b_in | b_hn]
#   w_ms:    (H, 2H)    [W_mu^T | W_std^T]
#   b_ms:    (1, 2H)    [b_mu | b_std]
#   eps:     (B, H)     standard-normal sample for the reparameterization trick
# Output: (B, 3H) slab [mu | log_var | z]  (single lane-dense store).
# -----------------------------------------------------------------------------
def _encoder_kernel(x_ref, w_ih_ref, w_hh_ref, b_ref, w_ms_ref, b_ms_ref, eps_ref,
                    out_ref):
    T, B, In = x_ref.shape
    H = w_hh_ref.shape[0]
    w_hh = w_hh_ref[...]
    b = b_ref[...]                                   # (1, 4H)
    b_rz = b[:, :2 * H]                              # sliced ONCE, outside the loop
    b_in = b[:, 2 * H:3 * H]
    b_hn = b[:, 3 * H:]

    # Hoisted input projection: one big matmul for all timesteps.
    gi_all = jnp.dot(x_ref[...].reshape(T * B, In), w_ih_ref[...],
                     preferred_element_type=jnp.float32).reshape(T, B, 3 * H)

    # Peeled t = 0: h0 == 0  ->  gh == 0.
    gi0 = gi_all[0]
    rz0 = jax.nn.sigmoid(gi0[:, :2 * H] + b_rz)
    r0, z0 = rz0[:, :H], rz0[:, H:]
    n0 = jnp.tanh(gi0[:, 2 * H:] + b_in + r0 * b_hn)
    h = (1.0 - z0) * n0

    for t in range(1, T):                            # static unroll, T is small
        gi = gi_all[t]
        gh = jnp.dot(h, w_hh, preferred_element_type=jnp.float32)
        rz = jax.nn.sigmoid(gi[:, :2 * H] + gh[:, :2 * H] + b_rz)
        r, zg = rz[:, :H], rz[:, H:]
        n = jnp.tanh(gi[:, 2 * H:] + b_in + r * (gh[:, 2 * H:] + b_hn))
        h = n + zg * (h - n)

    # Fused fc_mu / fc_std + reparameterization epilogue.
    ms = jnp.dot(h, w_ms_ref[...], preferred_element_type=jnp.float32) + b_ms_ref[...]
    mu = ms[:, :H]
    log_var = ms[:, H:]
    z = mu + jnp.exp(0.5 * log_var) * eps_ref[...]
    out_ref[...] = jnp.concatenate([mu, log_var, z], axis=-1)   # (B, 3H)


# -----------------------------------------------------------------------------
# Kernel 2: fused decoder — all Pg nets of one group run in a single recurrence
# using block-diagonal weights (column-gather from `connection` baked in at pack
# time). grid=(NG,) over groups, marked "parallel" (2-way megacore split on v7x).
#   x_ref:   (T, B, P)        shared input (same block for every group)
#   w_ih:    (P, 3*Pg*H)      fused input weights, gate-major layout [R | Z | N],
#                             each chunk net-major (net j -> cols j*H:(j+1)*H)
#   w_hh:    (Pg*H, 3*Pg*H)   block-diagonal hidden weights, same layout
#   b:       (1, 4*Pg*H)      [b_r | b_z | b_in | b_hn], net-major inside each chunk
#   w_out:   (Pg*H, Pg)       block-diagonal output projection
#   b_out:   (1, Pg)
#   z_ref:   (B, Pg*H)        latent tiled Pg times (shared initial hidden)
#   y_ref:   (T, B, Pg)       per-group outputs
#   h_all:   (T, B, Pg*H)     VMEM scratch of every step's hidden state
# -----------------------------------------------------------------------------
def _decoder_kernel(x_ref, w_ih_ref, w_hh_ref, b_ref, wout_ref, bout_ref, z_ref,
                    y_ref, h_all):
    T, B, P = x_ref.shape
    PgH = w_hh_ref.shape[0]
    w_hh = w_hh_ref[...]
    b = b_ref[...]
    b_rz = b[:, :2 * PgH]
    b_in = b[:, 2 * PgH:3 * PgH]
    b_hn = b[:, 3 * PgH:]

    # Hoisted input projection for all timesteps and all nets of the group.
    gi_all = jnp.dot(x_ref[...].reshape(T * B, P), w_ih_ref[...],
                     preferred_element_type=jnp.float32).reshape(T, B, 3 * PgH)

    h = z_ref[...]                                   # (B, Pg*H)
    for t in range(T):
        gi = gi_all[t]
        gh = jnp.dot(h, w_hh, preferred_element_type=jnp.float32)
        rz = jax.nn.sigmoid(gi[:, :2 * PgH] + gh[:, :2 * PgH] + b_rz)
        r, zg = rz[:, :PgH], rz[:, PgH:]
        n = jnp.tanh(gi[:, 2 * PgH:] + b_in + r * (gh[:, 2 * PgH:] + b_hn))
        h = n + zg * (h - n)
        h_all[t] = h

    # Projection off the recurrence critical path, single matmul + single store.
    hs = h_all[...].reshape(T * B, PgH)
    y = jnp.dot(hs, wout_ref[...], preferred_element_type=jnp.float32) + bout_ref[...]
    y_ref[...] = y.reshape(T, B, -1)


# -----------------------------------------------------------------------------
# Wrappers.
# -----------------------------------------------------------------------------
def encoder_forward(x_tm, enc, eps):
    """x_tm: (T, B, In) time-major. Returns (mu, log_var, z), each (B, H)."""
    _, B, _ = x_tm.shape
    H = enc["w_hh"].shape[0]
    vmem = pl.BlockSpec(memory_space=pltpu.MemorySpace.VMEM)
    out = pl.pallas_call(
        _encoder_kernel,
        out_shape=jax.ShapeDtypeStruct((B, 3 * H), jnp.float32),
        in_specs=[vmem] * 7,
        out_specs=vmem,
    )(x_tm, enc["w_ih"], enc["w_hh"], enc["b"], enc["w_ms"], enc["b_ms"], eps)
    return out[:, :H], out[:, H:2 * H], out[:, 2 * H:]


def decoder_forward(dec_tm, dec, z):
    """dec_tm: (T_dec, B, P) shared input. Returns (NG, T_dec, B, Pg) group outputs."""
    T, B, P = dec_tm.shape
    NG = dec["w_ih"].shape[0]
    PgH = dec["w_hh"].shape[1]
    Pg = dec["w_out"].shape[2]
    G3, G4 = 3 * PgH, 4 * PgH
    z_tiled = jnp.tile(z, (1, Pg))                    # (B, Pg*H) shared initial hidden

    grid_spec = pltpu.PrefetchScalarGridSpec(
        num_scalar_prefetch=0,
        grid=(NG,),
        in_specs=[
            pl.BlockSpec((T, B, P), lambda g: (0, 0, 0)),            # shared input
            pl.BlockSpec((None, P, G3), lambda g: (g, 0, 0)),        # fused w_ih
            pl.BlockSpec((None, PgH, G3), lambda g: (g, 0, 0)),      # block-diag w_hh
            pl.BlockSpec((None, 1, G4), lambda g: (g, 0, 0)),        # packed biases
            pl.BlockSpec((None, PgH, Pg), lambda g: (g, 0, 0)),      # block-diag w_out
            pl.BlockSpec((None, 1, Pg), lambda g: (g, 0, 0)),        # b_out
            pl.BlockSpec((B, PgH), lambda g: (0, 0)),                # shared z (tiled)
        ],
        out_specs=pl.BlockSpec((None, T, B, Pg), lambda g: (g, 0, 0, 0)),
        scratch_shapes=[pltpu.VMEM((T, B, PgH), jnp.float32)],
    )
    return pl.pallas_call(
        _decoder_kernel,
        out_shape=jax.ShapeDtypeStruct((NG, T, B, Pg), jnp.float32),
        grid_spec=grid_spec,
        # Group axis is independent -> megacore split on v7x, near-free elsewhere.
        compiler_params=pltpu.CompilerParams(dimension_semantics=("parallel",)),
    )(dec_tm, dec["w_ih"], dec["w_hh"], dec["b"], dec["w_out"], dec["b_out"], z_tiled)


# -----------------------------------------------------------------------------
# Parameter packing (done ONCE, outside the forward pass).
# -----------------------------------------------------------------------------
def _pack_gru(w_ih, w_hh, b_ih, b_hh, H):
    """torch-shaped (3H,In)/(3H,H)/(3H,)/(3H,) -> fused (In,3H),(H,3H),(1,4H)."""
    w_ih_t = np.asarray(w_ih).T                      # (In, 3H)   cols [r|z|n]
    w_hh_t = np.asarray(w_hh).T                      # (H, 3H)
    b_ih = np.asarray(b_ih)
    b_hh = np.asarray(b_hh)
    b = np.concatenate([b_ih[0:H] + b_hh[0:H],
                        b_ih[H:2 * H] + b_hh[H:2 * H],
                        b_ih[2 * H:3 * H],
                        b_hh[2 * H:3 * H]]).reshape(1, 4 * H)
    return w_ih_t, w_hh_t, b


def pack_params(params, connection, num_groups=2):
    H = params["hidden"]
    conn = np.asarray(connection)
    num_series, P = conn.shape
    if P % num_groups != 0:
        num_groups = 1
    NG = num_groups
    Pg = P // NG
    PgH = Pg * H

    # ---- encoder ----
    enc_wih, enc_whh, enc_b = _pack_gru(params["enc_wih"], params["enc_whh"],
                                        params["enc_bih"], params["enc_bhh"], H)
    w_ms = np.concatenate([np.asarray(params["wmu"]).T,
                           np.asarray(params["wstd"]).T], axis=1)          # (H, 2H)
    b_ms = np.concatenate([np.asarray(params["bmu"]),
                           np.asarray(params["bstd"])]).reshape(1, 2 * H)

    # ---- decoders: fused block-diagonal weights per group, gather baked in ----
    W_ih = np.zeros((NG, num_series, 3 * PgH), np.float32)
    W_hh = np.zeros((NG, PgH, 3 * PgH), np.float32)
    Bias = np.zeros((NG, 1, 4 * PgH), np.float32)
    W_out = np.zeros((NG, PgH, Pg), np.float32)
    B_out = np.zeros((NG, 1, Pg), np.float32)
    for g in range(NG):
        for j in range(Pg):
            i = g * Pg + j                                    # global net index
            idx = np.where(conn[:, i] != 0)[0]                # selected input series
            net = params["nets"][i]
            wih_t = np.asarray(net["wih"]).T                  # (k_i, 3H)
            whh_t = np.asarray(net["whh"]).T                  # (H, 3H)
            bih = np.asarray(net["bih"])
            bhh = np.asarray(net["bhh"])
            for gate in range(3):                             # 0:r 1:z 2:n
                c0 = gate * PgH + j * H
                W_ih[g, idx, c0:c0 + H] = wih_t[:, gate * H:(gate + 1) * H]
                W_hh[g, j * H:(j + 1) * H, c0:c0 + H] = whh_t[:, gate * H:(gate + 1) * H]
            Bias[g, 0, 0 * PgH + j * H:0 * PgH + (j + 1) * H] = bih[0:H] + bhh[0:H]
            Bias[g, 0, 1 * PgH + j * H:1 * PgH + (j + 1) * H] = bih[H:2 * H] + bhh[H:2 * H]
            Bias[g, 0, 2 * PgH + j * H:2 * PgH + (j + 1) * H] = bih[2 * H:3 * H]
            Bias[g, 0, 3 * PgH + j * H:3 * PgH + (j + 1) * H] = bhh[2 * H:3 * H]
            W_out[g, j * H:(j + 1) * H, j] = np.asarray(net["wlin"]).reshape(H)
            B_out[g, 0, j] = float(np.asarray(net["blin"]).reshape(()))

    return {
        "enc": {"w_ih": jnp.asarray(enc_wih), "w_hh": jnp.asarray(enc_whh),
                "b": jnp.asarray(enc_b), "w_ms": jnp.asarray(w_ms),
                "b_ms": jnp.asarray(b_ms)},
        "dec": {"w_ih": jnp.asarray(W_ih), "w_hh": jnp.asarray(W_hh),
                "b": jnp.asarray(Bias), "w_out": jnp.asarray(W_out),
                "b_out": jnp.asarray(B_out)},
    }


# -----------------------------------------------------------------------------
# CRVAE forward (train mode; phase 0 and phase 1 are identical in the torch code).
# -----------------------------------------------------------------------------
@jax.jit
def crvae_forward_train(X, packed, eps):
    """
    X:   (B, T, P) float32, batch_first (same as the PyTorch module input)
    eps: (B, H) standard-normal sample (stand-in for torch.randn in the reparam trick)
    Returns (pred_all, log_var, mu); pred_all is (B, T-10, P) — column i is networks[i]'s
    prediction (unstack lazily for the list-of-(B,T-10,1) interface of the torch module).
    """
    B, T, P = X.shape
    # The reference module hard-codes a 10-step encoder context (X[:, 1:11]) and
    # decoder window (11:-1) — keep those semantics.
    assert T >= 12, "CRVAE forward assumes the hard-coded 10-step context windows"

    # X = cat(zeros[:, 0:1, :], X)  -> (B, T+1, P)
    Xp = jnp.concatenate([jnp.zeros((B, 1, P), X.dtype), X], axis=1)

    # Encoder over Xp[:, 1:11, :] with zero initial hidden; fc_mu/fc_std/reparam fused.
    enc_in = jnp.transpose(Xp[:, 1:11, :], (1, 0, 2))                    # (10, B, P)
    mu, log_var, z = encoder_forward(enc_in, packed["enc"], eps)

    # Decoders: input = cat(Xp[:, 0:1, :], Xp[:, 11:-1, :]), shared across all nets
    # (per-net column selection is baked into the fused weights).
    dec_full = jnp.concatenate([Xp[:, 0:1, :], Xp[:, 11:-1, :]], axis=1)  # (B, T-10, P)
    dec_tm = jnp.transpose(dec_full, (1, 0, 2))                           # (T-10, B, P)
    y = decoder_forward(dec_tm, packed["dec"], z)                         # (NG, T-10, B, Pg)

    NG, Td, _, Pg = y.shape
    pred_all = jnp.transpose(y, (2, 1, 0, 3)).reshape(B, Td, NG * Pg)     # (B, T-10, P)
    return pred_all, log_var, mu


# -----------------------------------------------------------------------------
# Pure-JAX reference built directly from the RAW (torch-shaped) parameters —
# independently exercises the gate math, the connection gather and the packing.
# -----------------------------------------------------------------------------
def _gru_ref_raw(x_tm, wih, whh, bih, bhh, h0):
    H = whh.shape[1]
    hi = jax.lax.Precision.HIGHEST

    def step(h, x_t):
        gi = jnp.dot(x_t, wih.T, precision=hi) + bih
        gh = jnp.dot(h, whh.T, precision=hi) + bhh
        r = jax.nn.sigmoid(gi[:, :H] + gh[:, :H])
        zg = jax.nn.sigmoid(gi[:, H:2 * H] + gh[:, H:2 * H])
        n = jnp.tanh(gi[:, 2 * H:] + r * gh[:, 2 * H:])
        h_new = (1.0 - zg) * n + zg * h
        return h_new, h_new

    return lax.scan(step, h0, x_tm)


def crvae_forward_ref(X, params, connection, eps):
    B, T, P = X.shape
    H = params["hidden"]
    conn = np.asarray(connection)
    hi = jax.lax.Precision.HIGHEST
    Xp = jnp.concatenate([jnp.zeros((B, 1, P), X.dtype), X], axis=1)
    enc_in = jnp.transpose(Xp[:, 1:11, :], (1, 0, 2))
    hT, _ = _gru_ref_raw(enc_in, jnp.asarray(params["enc_wih"]),
                         jnp.asarray(params["enc_whh"]),
                         jnp.asarray(params["enc_bih"]),
                         jnp.asarray(params["enc_bhh"]),
                         jnp.zeros((B, H), jnp.float32))
    mu = jnp.dot(hT, jnp.asarray(params["wmu"]).T, precision=hi) + params["bmu"]
    log_var = jnp.dot(hT, jnp.asarray(params["wstd"]).T, precision=hi) + params["bstd"]
    z = mu + jnp.exp(0.5 * log_var) * eps
    dec_full = jnp.concatenate([Xp[:, 0:1, :], Xp[:, 11:-1, :]], axis=1)   # (B, T-10, P)
    preds = []
    for i in range(P):
        idx = np.where(conn[:, i] != 0)[0]
        x_i = jnp.transpose(dec_full[:, :, idx], (1, 0, 2))                # (T-10, B, k_i)
        net = params["nets"][i]
        _, hs = _gru_ref_raw(x_i, jnp.asarray(net["wih"]), jnp.asarray(net["whh"]),
                             jnp.asarray(net["bih"]), jnp.asarray(net["bhh"]), z)
        y = jnp.einsum("tbh,oh->tbo", hs, jnp.asarray(net["wlin"])) + net["blin"]
        preds.append(jnp.transpose(y, (1, 0, 2)))                          # (B, T-10, 1)
    return preds, log_var, mu


# -----------------------------------------------------------------------------
# Deterministic parameter init (shapes follow the torch module __init__).
# -----------------------------------------------------------------------------
def init_params(key, P, H, connection):
    def nrm(k, shape):
        return 0.1 * jax.random.normal(k, shape, jnp.float32)

    keys = jax.random.split(key, 8 + 6 * P)
    it = iter(keys)
    params = {
        "hidden": H,
        # gru_left: nn.GRU(P, H)
        "enc_wih": nrm(next(it), (3 * H, P)),
        "enc_whh": nrm(next(it), (3 * H, H)),
        "enc_bih": nrm(next(it), (3 * H,)),
        "enc_bhh": nrm(next(it), (3 * H,)),
        # fc_mu / fc_std: nn.Linear(H, H)
        "wmu": nrm(next(it), (H, H)),
        "bmu": nrm(next(it), (H,)),
        "wstd": nrm(next(it), (H, H)),
        "bstd": nrm(next(it), (H,)),
        "nets": [],
    }
    conn_np = np.asarray(connection)
    for i in range(P):
        k_i = int(np.sum(conn_np[:, i] != 0))   # input size of network i
        params["nets"].append({
            "wih": nrm(next(it), (3 * H, k_i)),
            "whh": nrm(next(it), (3 * H, H)),
            "bih": nrm(next(it), (3 * H,)),
            "bhh": nrm(next(it), (3 * H,)),
            "wlin": nrm(next(it), (1, H)),
            "blin": nrm(next(it), (1,)),
        })
    return params


if __name__ == "__main__":
    B, T, P, H = 2, 20, 4, 16
    key = jax.random.PRNGKey(0)
    k_x, k_eps, k_params = jax.random.split(key, 3)

    # Pruned connection matrix (each column still has >= 1 nonzero) to exercise the
    # baked column-gather.
    connection = np.ones((P, P), dtype=np.float32)
    connection[0, 1] = 0.0
    connection[3, 2] = 0.0

    X = jax.random.normal(k_x, (B, T, P), jnp.float32)
    eps = jax.random.normal(k_eps, (B, H), jnp.float32)
    params = init_params(k_params, P, H, connection)
    packed = pack_params(params, connection, num_groups=2)   # packing done once

    pred_all, log_var, mu = crvae_forward_train(X, packed, eps)
    jax.block_until_ready((pred_all, log_var, mu))

    # Correctness check against a pure-JAX reference built from the raw parameters.
    preds_r, log_var_r, mu_r = crvae_forward_ref(X, params, connection, eps)
    np.testing.assert_allclose(np.asarray(mu), np.asarray(mu_r), rtol=5e-3, atol=5e-3)
    np.testing.assert_allclose(np.asarray(log_var), np.asarray(log_var_r),
                               rtol=5e-3, atol=5e-3)
    preds = [pred_all[:, :, i:i + 1] for i in range(P)]       # torch-like list interface
    for a, b_ in zip(preds, preds_r):
        np.testing.assert_allclose(np.asarray(a), np.asarray(b_), rtol=5e-3, atol=5e-3)

    assert pred_all.shape == (B, T - 10, P)
    assert len(preds) == P and preds[0].shape == (B, T - 10, 1)
    assert mu.shape == (B, H) and log_var.shape == (B, H)
    print("KERNEL_OK")
</pallas_src>

<mosaic_0001>
module attributes {stable_mosaic.version = 11 : i64} {
  func.func @_encoder_kernel(%arg0: memref<10x2x4xf32, #tpu.memory_space<vmem>>, %arg1: memref<4x48xf32, #tpu.memory_space<vmem>>, %arg2: memref<16x48xf32, #tpu.memory_space<vmem>>, %arg3: memref<1x64xf32, #tpu.memory_space<vmem>>, %arg4: memref<16x32xf32, #tpu.memory_space<vmem>>, %arg5: memref<1x32xf32, #tpu.memory_space<vmem>>, %arg6: memref<2x16xf32, #tpu.memory_space<vmem>>, %arg7: memref<2x48xf32, #tpu.memory_space<vmem>>) attributes {dimension_semantics = [], scalar_prefetch = 0 : i64, scratch_operands = 0 : i64, tpu.core_type = #tpu.core_type<tc>} {
    %c0 = arith.constant 0 : index
    %c0_0 = arith.constant 0 : index
    %0 = vector.load %arg2[%c0, %c0_0] : memref<16x48xf32, #tpu.memory_space<vmem>>, vector<16x48xf32>
    %c0_1 = arith.constant 0 : index
    %c0_2 = arith.constant 0 : index
    %1 = vector.load %arg3[%c0_1, %c0_2] : memref<1x64xf32, #tpu.memory_space<vmem>>, vector<1x64xf32>
    %2 = vector.extract_strided_slice %1 {offsets = [0, 0], sizes = [1, 32], strides = [1, 1]} : vector<1x64xf32> to vector<1x32xf32>
    %3 = vector.extract_strided_slice %1 {offsets = [0, 32], sizes = [1, 16], strides = [1, 1]} : vector<1x64xf32> to vector<1x16xf32>
    %4 = vector.extract_strided_slice %1 {offsets = [0, 48], sizes = [1, 16], strides = [1, 1]} : vector<1x64xf32> to vector<1x16xf32>
    %c0_3 = arith.constant 0 : index
    %c0_4 = arith.constant 0 : index
    %c0_5 = arith.constant 0 : index
    %5 = vector.load %arg0[%c0_3, %c0_4, %c0_5] : memref<10x2x4xf32, #tpu.memory_space<vmem>>, vector<10x2x4xf32>
    %6 = vector.shape_cast %5 : vector<10x2x4xf32> to vector<20x4xf32>
    %c0_6 = arith.constant 0 : index
    %c0_7 = arith.constant 0 : index
    %7 = vector.load %arg1[%c0_6, %c0_7] : memref<4x48xf32, #tpu.memory_space<vmem>>, vector<4x48xf32>
    %cst = arith.constant dense<0.000000e+00> : vector<20x48xf32>
    %8 = tpu.matmul %6, %7, %cst {dimension_numbers = #tpu.dot_dimension_numbers<[1], [0], [0], [1], [0, 0, 1, 1], [], []>} : vector<20x4xf32>, vector<4x48xf32>, vector<20x48xf32> -> vector<20x48xf32>
    %9 = vector.shape_cast %8 : vector<20x48xf32> to vector<10x2x48xf32>
    %10 = vector.extract_strided_slice %9 {offsets = [0, 0, 0], sizes = [1, 2, 48], strides = [1, 1, 1]} : vector<10x2x48xf32> to vector<1x2x48xf32>
    %11 = vector.shape_cast %10 : vector<1x2x48xf32> to vector<2x48xf32>
    %12 = vector.extract_strided_slice %11 {offsets = [0, 0], sizes = [2, 32], strides = [1, 1]} : vector<2x48xf32> to vector<2x32xf32>
    %13 = vector.broadcast %2 : vector<1x32xf32> to vector<2x32xf32>
    %14 = arith.addf %12, %13 : vector<2x32xf32>
    %15 = arith.negf %14 : vector<2x32xf32>
    %16 = math.exp %15 : vector<2x32xf32>
    %cst_8 = arith.constant 1.000000e+00 : f32
    %17 = vector.broadcast %cst_8 : f32 to vector<2x32xf32>
    %18 = arith.addf %17, %16 : vector<2x32xf32>
    %19 = arith.divf %17, %18 : vector<2x32xf32>
    %20 = vector.extract_strided_slice %19 {offsets = [0, 0], sizes = [2, 16], strides = [1, 1]} : vector<2x32xf32> to vector<2x16xf32>
    %21 = vector.extract_strided_slice %19 {offsets = [0, 16], sizes = [2, 16], strides = [1, 1]} : vector<2x32xf32> to vector<2x16xf32>
    %22 = vector.extract_strided_slice %11 {offsets = [0, 32], sizes = [2, 16], strides = [1, 1]} : vector<2x48xf32> to vector<2x16xf32>
    %23 = vector.broadcast %3 : vector<1x16xf32> to vector<2x16xf32>
    %24 = arith.addf %22, %23 : vector<2x16xf32>
    %25 = vector.broadcast %4 : vector<1x16xf32> to vector<2x16xf32>
    %26 = arith.mulf %20, %25 : vector<2x16xf32>
    %27 = arith.addf %24, %26 : vector<2x16xf32>
    %28 = math.tanh %27 : vector<2x16xf32>
    %cst_9 = arith.constant 1.000000e+00 : f32
    %29 = vector.broadcast %cst_9 : f32 to vector<2x16xf32>
    %30 = arith.subf %29, %21 : vector<2x16xf32>
    %31 = arith.mulf %30, %28 : vector<2x16xf32>
    %32 = vector.extract_strided_slice %9 {offsets = [1, 0, 0], sizes = [1, 2, 48], strides = [1, 1, 1]} : vector<10x2x48xf32> to vector<1x2x48xf32>
    %33 = vector.shape_cast %32 : vector<1x2x48xf32> to vector<2x48xf32>
    %cst_10 = arith.constant dense<0.000000e+00> : vector<2x48xf32>
    %34 = tpu.matmul %31, %0, %cst_10 {dimension_numbers = #tpu.dot_dimension_numbers<[1], [0], [0], [1], [0, 0, 1, 1], [], []>} : vector<2x16xf32>, vector<16x48xf32>, vector<2x48xf32> -> vector<2x48xf32>
    %35 = vector.extract_strided_slice %33 {offsets = [0, 0], sizes = [2, 32], strides = [1, 1]} : vector<2x48xf32> to vector<2x32xf32>
    %36 = vector.extract_strided_slice %34 {offsets = [0, 0], sizes = [2, 32], strides = [1, 1]} : vector<2x48xf32> to vector<2x32xf32>
    %37 = arith.addf %35, %36 : vector<2x32xf32>
    %38 = vector.broadcast %2 : vector<1x32xf32> to vector<2x32xf32>
    %39 = arith.addf %37, %38 : vector<2x32xf32>
    %40 = arith.negf %39 : vector<2x32xf32>
    %41 = math.exp %40 : vector<2x32xf32>
    %cst_11 = arith.constant 1.000000e+00 : f32
    %42 = vector.broadcast %cst_11 : f32 to vector<2x32xf32>
    %43 = arith.addf %42, %41 : vector<2x32xf32>
    %44 = arith.divf %42, %43 : vector<2x32xf32>
    %45 = vector.extract_strided_slice %44 {offsets = [0, 0], sizes = [2, 16], strides = [1, 1]} : vector<2x32xf32> to vector<2x16xf32>
    %46 = vector.extract_strided_slice %44 {offsets = [0, 16], sizes = [2, 16], strides = [1, 1]} : vector<2x32xf32> to vector<2x16xf32>
    %47 = vector.extract_strided_slice %33 {offsets = [0, 32], sizes = [2, 16], strides = [1, 1]} : vector<2x48xf32> to vector<2x16xf32>
    %48 = vector.broadcast %3 : vector<1x16xf32> to vector<2x16xf32>
    %49 = arith.addf %47, %48 : vector<2x16xf32>
    %50 = vector.extract_strided_slice %34 {offsets = [0, 32], sizes = [2, 16], strides = [1, 1]} : vector<2x48xf32> to vector<2x16xf32>
    %51 = vector.broadcast %4 : vector<1x16xf32> to vector<2x16xf32>
    %52 = arith.addf %50, %51 : vector<2x16xf32>
    %53 = arith.mulf %45, %52 : vector<2x16xf32>
    %54 = arith.addf %49, %53 : vector<2x16xf32>
    %55 = math.tanh %54 : vector<2x16xf32>
    %56 = arith.subf %31, %55 : vector<2x16xf32>
    %57 = arith.mulf %46, %56 : vector<2x16xf32>
    %58 = arith.addf %55, %57 : vector<2x16xf32>
    %59 = vector.extract_strided_slice %9 {offsets = [2, 0, 0], sizes = [1, 2, 48], strides = [1, 1, 1]} : vector<10x2x48xf32> to vector<1x2x48xf32>
    %60 = vector.shape_cast %59 : vector<1x2x48xf32> to vector<2x48xf32>
    %cst_12 = arith.constant dense<0.000000e+00> : vector<2x48xf32>
    %61 = tpu.matmul %58, %0, %cst_12 {dimension_numbers = #tpu.dot_dimension_numbers<[1], [0], [0], [1], [0, 0, 1, 1], [], []>} : vector<2x16xf32>, vector<16x48xf32>, vector<2x48xf32> -> vector<2x48xf32>
    %62 = vector.extract_strided_slice %60 {offsets = [0, 0], sizes = [2, 32], strides = [1, 1]} : vector<2x48xf32> to vector<2x32xf32>
    %63 = vector.extract_strided_slice %61 {offsets = [0, 0], sizes = [2, 32], strides = [1, 1]} : vector<2x48xf32> to vector<2x32xf32>
    %64 = arith.addf %62, %63 : vector<2x32xf32>
    %65 = vector.broadcast %2 : vector<1x32xf32> to vector<2x32xf32>
    %66 = arith.addf %64, %65 : vector<2x32xf32>
    %67 = arith.negf %66 : vector<2x32xf32>
    %68 = math.exp %67 : vector<2x32xf32>
    %cst_13 = arith.constant 1.000000e+00 : f32
    %69 = vector.broadcast %cst_13 : f32 to vector<2x32xf32>
    %70 = arith.addf %69, %68 : vector<2x32xf32>
    %71 = arith.divf %69, %70 : vector<2x32xf32>
    %72 = vector.extract_strided_slice %71 {offsets = [0, 0], sizes = [2, 16], strides = [1, 1]} : vector<2x32xf32> to vector<2x16xf32>
    %73 = vector.extract_strided_slice %71 {offsets = [0, 16], sizes = [2, 16], strides = [1, 1]} : vector<2x32xf32> to vector<2x16xf32>
    %74 = vector.extract_strided_slice %60 {offsets = [0, 32], sizes = [2, 16], strides = [1, 1]} : vector<2x48xf32> to vector<2x16xf32>
    %75 = vector.broadcast %3 : vector<1x16xf32> to vector<2x16xf32>
    %76 = arith.addf %74, %75 : vector<2x16xf32>
    %77 = vector.extract_strided_slice %61 {offsets = [0, 32], sizes = [2, 16], strides = [1, 1]} : vector<2x48xf32> to vector<2x16xf32>
    %78 = vector.broadcast %4 : vector<1x16xf32> to vector<2x16xf32>
    %79 = arith.addf %77, %78 : vector<2x16xf32>
    %80 = arith.mulf %72, %79 : vector<2x16xf32>
    %81 = arith.addf %76, %80 : vector<2x16xf32>
    %82 = math.tanh %81 : vector<2x16xf32>
    %83 = arith.subf %58, %82 : vector<2x16xf32>
    %84 = arith.mulf %73, %83 : vector<2x16xf32>
    %85 = arith.addf %82, %84 : vector<2x16xf32>
    %86 = vector.extract_strided_slice %9 {offsets = [3, 0, 0], sizes = [1, 2, 48], strides = [1, 1, 1]} : vector<10x2x48xf32> to vector<1x2x48xf32>
    %87 = vector.shape_cast %86 : vector<1x2x48xf32> to vector<2x48xf32>
    %cst_14 = arith.constant dense<0.000000e+00> : vector<2x48xf32>
    %88 = tpu.matmul %85, %0, %cst_14 {dimension_numbers = #tpu.dot_dimension_numbers<[1], [0], [0], [1], [0, 0, 1, 1], [], []>} : vector<2x16xf32>, vector<16x48xf32>, vector<2x48xf32> -> vector<2x48xf32>
    %89 = vector.extract_strided_slice %87 {offsets = [0, 0], sizes = [2, 32], strides = [1, 1]} : vector<2x48xf32> to vector<2x32xf32>
    %90 = vector.extract_strided_slice %88 {offsets = [0, 0], sizes = [2, 32], strides = [1, 1]} : vector<2x48xf32> to vector<2x32xf32>
    %91 = arith.addf %89, %90 : vector<2x32xf32>
    %92 = vector.broadcast %2 : vector<1x32xf32> to vector<2x32xf32>
    %93 = arith.addf %91, %92 : vector<2x32xf32>
    %94 = arith.negf %93 : vector<2x32xf32>
    %95 = math.exp %94 : vector<2x32xf32>
    %cst_15 = arith.constant 1.000000e+00 : f32
    %96 = vector.broadcast %cst_15 : f32 to vector<2x32xf32>
    %97 = arith.addf %96, %95 : vector<2x32xf32>
    %98 = arith.divf %96, %97 : vector<2x32xf32>
    %99 = vector.extract_strided_slice %98 {offsets = [0, 0], sizes = [2, 16], strides = [1, 1]} : vector<2x32xf32> to vector<2x16xf32>
    %100 = vector.extract_strided_slice %98 {offsets = [0, 16], sizes = [2, 16], strides = [1, 1]} : vector<2x32xf32> to vector<2x16xf32>
    %101 = vector.extract_strided_slice %87 {offsets = [0, 32], sizes = [2, 16], strides = [1, 1]} : vector<2x48xf32> to vector<2x16xf32>
    %102 = vector.broadcast %3 : vector<1x16xf32> to vector<2x16xf32>
    %103 = arith.addf %101, %102 : vector<2x16xf32>
    %104 = vector.extract_strided_slice %88 {offsets = [0, 32], sizes = [2, 16], strides = [1, 1]} : vector<2x48xf32> to vector<2x16xf32>
    %105 = vector.broadcast %4 : vector<1x16xf32> to vector<2x16xf32>
    %106 = arith.addf %104, %105 : vector<2x16xf32>
    %107 = arith.mulf %99, %106 : vector<2x16xf32>
    %108 = arith.addf %103, %107 : vector<2x16xf32>
    %109 = math.tanh %108 : vector<2x16xf32>
    %110 = arith.subf %85, %109 : vector<2x16xf32>
    %111 = arith.mulf %100, %110 : vector<2x16xf32>
    %112 = arith.addf %109, %111 : vector<2x16xf32>
    %113 = vector.extract_strided_slice %9 {offsets = [4, 0, 0], sizes = [1, 2, 48], strides = [1, 1, 1]} : vector<10x2x48xf32> to vector<1x2x48xf32>
    %114 = vector.shape_cast %113 : vector<1x2x48xf32> to vector<2x48xf32>
    %cst_16 = arith.constant dense<0.000000e+00> : vector<2x48xf32>
    %115 = tpu.matmul %112, %0, %cst_16 {dimension_numbers = #tpu.dot_dimension_numbers<[1], [0], [0], [1], [0, 0, 1, 1], [], []>} : vector<2x16xf32>, vector<16x48xf32>, vector<2x48xf32> -> vector<2x48xf32>
    %116 = vector.extract_strided_slice %114 {offsets = [0, 0], sizes = [2, 32], strides = [1, 1]} : vector<2x48xf32> to vector<2x32xf32>
    %117 = vector.extract_strided_slice %115 {offsets = [0, 0], sizes = [2, 32], strides = [1, 1]} : vector<2x48xf32> to vector<2x32xf32>
    %118 = arith.addf %116, %117 : vector<2x32xf32>
    %119 = vector.broadcast %2 : vector<1x32xf32> to vector<2x32xf32>
    %120 = arith.addf %118, %119 : vector<2x32xf32>
    %121 = arith.negf %120 : vector<2x32xf32>
    %122 = math.exp %121 : vector<2x32xf32>
    %cst_17 = arith.constant 1.000000e+00 : f32
    %123 = vector.broadcast %cst_17 : f32 to vector<2x32xf32>
    %124 = arith.addf %123, %122 : vector<2x32xf32>
    %125 = arith.divf %123, %124 : vector<2x32xf32>
    %126 = vector.extract_strided_slice %125 {offsets = [0, 0], sizes = [2, 16], strides = [1, 1]} : vector<2x32xf32> to vector<2x16xf32>
    %127 = vector.extract_strided_slice %125 {offsets = [0, 16], sizes = [2, 16], strides = [1, 1]} : vector<2x32xf32> to vector<2x16xf32>
    %128 = vector.extract_strided_slice %114 {offsets = [0, 32], sizes = [2, 16], strides = [1, 1]} : vector<2x48xf32> to vector<2x16xf32>
    %129 = vector.broadcast %3 : vector<1x16xf32> to vector<2x16xf32>
    %130 = arith.addf %128, %129 : vector<2x16xf32>
    %131 = vector.extract_strided_slice %115 {offsets = [0, 32], sizes = [2, 16], strides = [1, 1]} : vector<2x48xf32> to vector<2x16xf32>
    %132 = vector.broadcast %4 : vector<1x16xf32> to vector<2x16xf32>
    %133 = arith.addf %131, %132 : vector<2x16xf32>
    %134 = arith.mulf %126, %133 : vector<2x16xf32>
    %135 = arith.addf %130, %134 : vector<2x16xf32>
    %136 = math.tanh %135 : vector<2x16xf32>
    %137 = arith.subf %112, %136 : vector<2x16xf32>
    %138 = arith.mulf %127, %137 : vector<2x16xf32>
    %139 = arith.addf %136, %138 : vector<2x16xf32>
    %140 = vector.extract_strided_slice %9 {offsets = [5, 0, 0], sizes = [1, 2, 48], strides = [1, 1, 1]} : vector<10x2x48xf32> to vector<1x2x48xf32>
    %141 = vector.shape_cast %140 : vector<1x2x48xf32> to vector<2x48xf32>
    %cst_18 = arith.constant dense<0.000000e+00> : vector<2x48xf32>
    %142 = tpu.matmul %139, %0, %cst_18 {dimension_numbers = #tpu.dot_dimension_numbers<[1], [0], [0], [1], [0, 0, 1, 1], [], []>} : vector<2x16xf32>, vector<16x48xf32>, vector<2x48xf32> -> vector<2x48xf32>
    %143 = vector.extract_strided_slice %141 {offsets = [0, 0], sizes = [2, 32], strides = [1, 1]} : vector<2x48xf32> to vector<2x32xf32>
    %144 = vector.extract_strided_slice %142 {offsets = [0, 0], sizes = [2, 32], strides = [1, 1]} : vector<2x48xf32> to vector<2x32xf32>
    %145 = arith.addf %143, %144 : vector<2x32xf32>
    %146 = vector.broadcast %2 : vector<1x32xf32> to vector<2x32xf32>
    %147 = arith.addf %145, %146 : vector<2x32xf32>
    %148 = arith.negf %147 : vector<2x32xf32>
    %149 = math.exp %148 : vector<2x32xf32>
    %cst_19 = arith.constant 1.000000e+00 : f32
    %150 = vector.broadcast %cst_19 : f32 to vector<2x32xf32>
    %151 = arith.addf %150, %149 : vector<2x32xf32>
    %152 = arith.divf %150, %151 : vector<2x32xf32>
    %153 = vector.extract_strided_slice %152 {offsets = [0, 0], sizes = [2, 16], strides = [1, 1]} : vector<2x32xf32> to vector<2x16xf32>
    %154 = vector.extract_strided_slice %152 {offsets = [0, 16], sizes = [2, 16], strides = [1, 1]} : vector<2x32xf32> to vector<2x16xf32>
    %155 = vector.extract_strided_slice %141 {offsets = [0, 32], sizes = [2, 16], strides = [1, 1]} : vector<2x48xf32> to vector<2x16xf32>
    %156 = vector.broadcast %3 : vector<1x16xf32> to vector<2x16xf32>
    %157 = arith.addf %155, %156 : vector<2x16xf32>
    %158 = vector.extract_strided_slice %142 {offsets = [0, 32], sizes = [2, 16], strides = [1, 1]} : vector<2x48xf32> to vector<2x16xf32>
    %159 = vector.broadcast %4 : vector<1x16xf32> to vector<2x16xf32>
    %160 = arith.addf %158, %159 : vector<2x16xf32>
    %161 = arith.mulf %153, %160 : vector<2x16xf32>
    %162 = arith.addf %157, %161 : vector<2x16xf32>
    %163 = math.tanh %162 : vector<2x16xf32>
    %164 = arith.subf %139, %163 : vector<2x16xf32>
    %165 = arith.mulf %154, %164 : vector<2x16xf32>
    %166 = arith.addf %163, %165 : vector<2x16xf32>
    %167 = vector.extract_strided_slice %9 {offsets = [6, 0, 0], sizes = [1, 2, 48], strides = [1, 1, 1]} : vector<10x2x48xf32> to vector<1x2x48xf32>
    %168 = vector.shape_cast %167 : vector<1x2x48xf32> to vector<2x48xf32>
    %cst_20 = arith.constant dense<0.000000e+00> : vector<2x48xf32>
    %169 = tpu.matmul %166, %0, %cst_20 {dimension_numbers = #tpu.dot_dimension_numbers<[1], [0], [0], [1], [0, 0, 1, 1], [], []>} : vector<2x16xf32>, vector<16x48xf32>, vector<2x48xf32> -> vector<2x48xf32>
    %170 = vector.extract_strided_slice %168 {offsets = [0, 0], sizes = [2, 32], strides = [1, 1]} : vector<2x48xf32> to vector<2x32xf32>
    %171 = vector.extract_strided_slice %169 {offsets = [0, 0], sizes = [2, 32], strides = [1, 1]} : vector<2x48xf32> to vector<2x32xf32>
    %172 = arith.addf %170, %171 : vector<2x32xf32>
    %173 = vector.broadcast %2 : vector<1x32xf32> to vector<2x32xf32>
    %174 = arith.addf %172, %173 : vector<2x32xf32>
    %175 = arith.negf %174 : vector<2x32xf32>
    %176 = math.exp %175 : vector<2x32xf32>
    %cst_21 = arith.constant 1.000000e+00 : f32
    %177 = vector.broadcast %cst_21 : f32 to vector<2x32xf32>
    %178 = arith.addf %177, %176 : vector<2x32xf32>
    %179 = arith.divf %177, %178 : vector<2x32xf32>
    %180 = vector.extract_strided_slice %179 {offsets = [0, 0], sizes = [2, 16], strides = [1, 1]} : vector<2x32xf32> to vector<2x16xf32>
    %181 = vector.extract_strided_slice %179 {offsets = [0, 16], sizes = [2, 16], strides = [1, 1]} : vector<2x32xf32> to vector<2x16xf32>
    %182 = vector.extract_strided_slice %168 {offsets = [0, 32], sizes = [2, 16], strides = [1, 1]} : vector<2x48xf32> to vector<2x16xf32>
    %183 = vector.broadcast %3 : vector<1x16xf32> to vector<2x16xf32>
    %184 = arith.addf %182, %183 : vector<2x16xf32>
    %185 = vector.extract_strided_slice %169 {offsets = [0, 32], sizes = [2, 16], strides = [1, 1]} : vector<2x48xf32> to vector<2x16xf32>
    %186 = vector.broadcast %4 : vector<1x16xf32> to vector<2x16xf32>
    %187 = arith.addf %185, %186 : vector<2x16xf32>
    %188 = arith.mulf %180, %187 : vector<2x16xf32>
    %189 = arith.addf %184, %188 : vector<2x16xf32>
    %190 = math.tanh %189 : vector<2x16xf32>
    %191 = arith.subf %166, %190 : vector<2x16xf32>
    %192 = arith.mulf %181, %191 : vector<2x16xf32>
    %193 = arith.addf %190, %192 : vector<2x16xf32>
    %194 = vector.extract_strided_slice %9 {offsets = [7, 0, 0], sizes = [1, 2, 48], strides = [1, 1, 1]} : vector<10x2x48xf32> to vector<1x2x48xf32>
    %195 = vector.shape_cast %194 : vector<1x2x48xf32> to vector<2x48xf32>
    %cst_22 = arith.constant dense<0.000000e+00> : vector<2x48xf32>
    %196 = tpu.matmul %193, %0, %cst_22 {dimension_numbers = #tpu.dot_dimension_numbers<[1], [0], [0], [1], [0, 0, 1, 1], [], []>} : vector<2x16xf32>, vector<16x48xf32>, vector<2x48xf32> -> vector<2x48xf32>
    %197 = vector.extract_strided_slice %195 {offsets = [0, 0], sizes = [2, 32], strides = [1, 1]} : vector<2x48xf32> to vector<2x32xf32>
    %198 = vector.extract_strided_slice %196 {offsets = [0, 0], sizes = [2, 32], strides = [1, 1]} : vector<2x48xf32> to vector<2x32xf32>
    %199 = arith.addf %197, %198 : vector<2x32xf32>
    %200 = vector.broadcast %2 : vector<1x32xf32> to vector<2x32xf32>
    %201 = arith.addf %199, %200 : vector<2x32xf32>
    %202 = arith.negf %201 : vector<2x32xf32>
    %203 = math.exp %202 : vector<2x32xf32>
    %cst_23 = arith.constant 1.000000e+00 : f32
    %204 = vector.broadcast %cst_23 : f32 to vector<2x32xf32>
    %205 = arith.addf %204, %203 : vector<2x32xf32>
    %206 = arith.divf %204, %205 : vector<2x32xf32>
    %207 = vector.extract_strided_slice %206 {offsets = [0, 0], sizes = [2, 16], strides = [1, 1]} : vector<2x32xf32> to vector<2x16xf32>
    %208 = vector.extract_strided_slice %206 {offsets = [0, 16], sizes = [2, 16], strides = [1, 1]} : vector<2x32xf32> to vector<2x16xf32>
    %209 = vector.extract_strided_slice %195 {offsets = [0, 32], sizes = [2, 16], strides = [1, 1]} : vector<2x48xf32> to vector<2x16xf32>
    %210 = vector.broadcast %3 : vector<1x16xf32> to vector<2x16xf32>
    %211 = arith.addf %209, %210 : vector<2x16xf32>
    %212 = vector.extract_strided_slice %196 {offsets = [0, 32], sizes = [2, 16], strides = [1, 1]} : vector<2x48xf32> to vector<2x16xf32>
    %213 = vector.broadcast %4 : vector<1x16xf32> to vector<2x16xf32>
    %214 = arith.addf %212, %213 : vector<2x16xf32>
    %215 = arith.mulf %207, %214 : vector<2x16xf32>
    %216 = arith.addf %211, %215 : vector<2x16xf32>
    %217 = math.tanh %216 : vector<2x16xf32>
    %218 = arith.subf %193, %217 : vector<2x16xf32>
    %219 = arith.mulf %208, %218 : vector<2x16xf32>
    %220 = arith.addf %217, %219 : vector<2x16xf32>
    %221 = vector.extract_strided_slice %9 {offsets = [8, 0, 0], sizes = [1, 2, 48], strides = [1, 1, 1]} : vector<10x2x48xf32> to vector<1x2x48xf32>
    %222 = vector.shape_cast %221 : vector<1x2x48xf32> to vector<2x48xf32>
    %cst_24 = arith.constant dense<0.000000e+00> : vector<2x48xf32>
    %223 = tpu.matmul %220, %0, %cst_24 {dimension_numbers = #tpu.dot_dimension_numbers<[1], [0], [0], [1], [0, 0, 1, 1], [], []>} : vector<2x16xf32>, vector<16x48xf32>, vector<2x48xf32> -> vector<2x48xf32>
    %224 = vector.extract_strided_slice %222 {offsets = [0, 0], sizes = [2, 32], strides = [1, 1]} : vector<2x48xf32> to vector<2x32xf32>
    %225 = vector.extract_strided_slice %223 {offsets = [0, 0], sizes = [2, 32], strides = [1, 1]} : vector<2x48xf32> to vector<2x32xf32>
    %226 = arith.addf %224, %225 : vector<2x32xf32>
    %227 = vector.broadcast %2 : vector<1x32xf32> to vector<2x32xf32>
    %228 = arith.addf %226, %227 : vector<2x32xf32>
    %229 = arith.negf %228 : vector<2x32xf32>
    %230 = math.exp %229 : vector<2x32xf32>
    %cst_25 = arith.constant 1.000000e+00 : f32
    %231 = vector.broadcast %cst_25 : f32 to vector<2x32xf32>
    %232 = arith.addf %231, %230 : vector<2x32xf32>
    %233 = arith.divf %231, %232 : vector<2x32xf32>
    %234 = vector.extract_strided_slice %233 {offsets = [0, 0], sizes = [2, 16], strides = [1, 1]} : vector<2x32xf32> to vector<2x16xf32>
    %235 = vector.extract_strided_slice %233 {offsets = [0, 16], sizes = [2, 16], strides = [1, 1]} : vector<2x32xf32> to vector<2x16xf32>
    %236 = vector.extract_strided_slice %222 {offsets = [0, 32], sizes = [2, 16], strides = [1, 1]} : vector<2x48xf32> to vector<2x16xf32>
    %237 = vector.broadcast %3 : vector<1x16xf32> to vector<2x16xf32>
    %238 = arith.addf %236, %237 : vector<2x16xf32>
    %239 = vector.extract_strided_slice %223 {offsets = [0, 32], sizes = [2, 16], strides = [1, 1]} : vector<2x48xf32> to vector<2x16xf32>
    %240 = vector.broadcast %4 : vector<1x16xf32> to vector<2x16xf32>
    %241 = arith.addf %239, %240 : vector<2x16xf32>
    %242 = arith.mulf %234, %241 : vector<2x16xf32>
    %243 = arith.addf %238, %242 : vector<2x16xf32>
    %244 = math.tanh %243 : vector<2x16xf32>
    %245 = arith.subf %220, %244 : vector<2x16xf32>
    %246 = arith.mulf %235, %245 : vector<2x16xf32>
    %247 = arith.addf %244, %246 : vector<2x16xf32>
    %248 = vector.extract_strided_slice %9 {offsets = [9, 0, 0], sizes = [1, 2, 48], strides = [1, 1, 1]} : vector<10x2x48xf32> to vector<1x2x48xf32>
    %249 = vector.shape_cast %248 : vector<1x2x48xf32> to vector<2x48xf32>
    %cst_26 = arith.constant dense<0.000000e+00> : vector<2x48xf32>
    %250 = tpu.matmul %247, %0, %cst_26 {dimension_numbers = #tpu.dot_dimension_numbers<[1], [0], [0], [1], [0, 0, 1, 1], [], []>} : vector<2x16xf32>, vector<16x48xf32>, vector<2x48xf32> -> vector<2x48xf32>
    %251 = vector.extract_strided_slice %249 {offsets = [0, 0], sizes = [2, 32], strides = [1, 1]} : vector<2x48xf32> to vector<2x32xf32>
    %252 = vector.extract_strided_slice %250 {offsets = [0, 0], sizes = [2, 32], strides = [1, 1]} : vector<2x48xf32> to vector<2x32xf32>
    %253 = arith.addf %251, %252 : vector<2x32xf32>
    %254 = vector.broadcast %2 : vector<1x32xf32> to vector<2x32xf32>
    %255 = arith.addf %253, %254 : vector<2x32xf32>
    %256 = arith.negf %255 : vector<2x32xf32>
    %257 = math.exp %256 : vector<2x32xf32>
    %cst_27 = arith.constant 1.000000e+00 : f32
    %258 = vector.broadcast %cst_27 : f32 to vector<2x32xf32>
    %259 = arith.addf %258, %257 : vector<2x32xf32>
    %260 = arith.divf %258, %259 : vector<2x32xf32>
    %261 = vector.extract_strided_slice %260 {offsets = [0, 0], sizes = [2, 16], strides = [1, 1]} : vector<2x32xf32> to vector<2x16xf32>
    %262 = vector.extract_strided_slice %260 {offsets = [0, 16], sizes = [2, 16], strides = [1, 1]} : vector<2x32xf32> to vector<2x16xf32>
    %263 = vector.extract_strided_slice %249 {offsets = [0, 32], sizes = [2, 16], strides = [1, 1]} : vector<2x48xf32> to vector<2x16xf32>
    %264 = vector.broadcast %3 : vector<1x16xf32> to vector<2x16xf32>
    %265 = arith.addf %263, %264 : vector<2x16xf32>
    %266 = vector.extract_strided_slice %250 {offsets = [0, 32], sizes = [2, 16], strides = [1, 1]} : vector<2x48xf32> to vector<2x16xf32>
    %267 = vector.broadcast %4 : vector<1x16xf32> to vector<2x16xf32>
    %268 = arith.addf %266, %267 : vector<2x16xf32>
    %269 = arith.mulf %261, %268 : vector<2x16xf32>
    %270 = arith.addf %265, %269 : vector<2x16xf32>
    %271 = math.tanh %270 : vector<2x16xf32>
    %272 = arith.subf %247, %271 : vector<2x16xf32>
    %273 = arith.mulf %262, %272 : vector<2x16xf32>
    %274 = arith.addf %271, %273 : vector<2x16xf32>
    %c0_28 = arith.constant 0 : index
    %c0_29 = arith.constant 0 : index
    %275 = vector.load %arg4[%c0_28, %c0_29] : memref<16x32xf32, #tpu.memory_space<vmem>>, vector<16x32xf32>
    %cst_30 = arith.constant dense<0.000000e+00> : vector<2x32xf32>
    %276 = tpu.matmul %274, %275, %cst_30 {dimension_numbers = #tpu.dot_dimension_numbers<[1], [0], [0], [1], [0, 0, 1, 1], [], []>} : vector<2x16xf32>, vector<16x32xf32>, vector<2x32xf32> -> vector<2x32xf32>
    %c0_31 = arith.constant 0 : index
    %c0_32 = arith.constant 0 : index
    %277 = vector.load %arg5[%c0_31, %c0_32] : memref<1x32xf32, #tpu.memory_space<vmem>>, vector<1x32xf32>
    %278 = vector.broadcast %277 : vector<1x32xf32> to vector<2x32xf32>
    %279 = arith.addf %276, %278 : vector<2x32xf32>
    %280 = vector.extract_strided_slice %279 {offsets = [0, 0], sizes = [2, 16], strides = [1, 1]} : vector<2x32xf32> to vector<2x16xf32>
    %281 = vector.extract_strided_slice %279 {offsets = [0, 16], sizes = [2, 16], strides = [1, 1]} : vector<2x32xf32> to vector<2x16xf32>
    %cst_33 = arith.constant 5.000000e-01 : f32
    %282 = vector.broadcast %cst_33 : f32 to vector<2x16xf32>
    %283 = arith.mulf %282, %281 : vector<2x16xf32>
    %284 = math.exp %283 : vector<2x16xf32>
    %c0_34 = arith.constant 0 : index
    %c0_35 = arith.constant 0 : index
    %285 = vector.load %arg6[%c0_34, %c0_35] : memref<2x16xf32, #tpu.memory_space<vmem>>, vector<2x16xf32>
    %286 = arith.mulf %284, %285 : vector<2x16xf32>
    %287 = arith.addf %280, %286 : vector<2x16xf32>
    %288 = tpu.concatenate %280, %281, %287 in 1 : vector<2x16xf32>, vector<2x16xf32>, vector<2x16xf32> -> vector<2x48xf32>
    %c0_36 = arith.constant 0 : index
    %c0_37 = arith.constant 0 : index
    %289 = vector.load %arg7[%c0_36, %c0_37] : memref<2x48xf32, #tpu.memory_space<vmem>>, vector<2x48xf32>
    tpu.vector_store %arg7[%c0_36, %c0_37], %288 {strides = array<i32>} : memref<2x48xf32, #tpu.memory_space<vmem>>, vector<2x48xf32>,
    return
  }
}

module attributes {stable_mosaic.version = 11 : i64} {
  func.func @_decoder_kernel(%arg0: i32, %arg1: memref<10x2x4xf32, #tpu.memory_space<vmem>>, %arg2: memref<1x4x96xf32, #tpu.memory_space<vmem>>, %arg3: memref<1x32x96xf32, #tpu.memory_space<vmem>>, %arg4: memref<1x1x128xf32, #tpu.memory_space<vmem>>, %arg5: memref<1x32x2xf32, #tpu.memory_space<vmem>>, %arg6: memref<1x1x2xf32, #tpu.memory_space<vmem>>, %arg7: memref<2x32xf32, #tpu.memory_space<vmem>>, %arg8: memref<1x10x2x2xf32, #tpu.memory_space<vmem>>, %arg9: memref<10x2x32xf32, #tpu.memory_space<vmem>>) attributes {dimension_semantics = [#tpu.dimension_semantics<parallel>], iteration_bounds = array<i64: 2>, scalar_prefetch = 0 : i64, scratch_operands = 1 : i64, tpu.core_type = #tpu.core_type<tc>, window_params = [{pipeline_mode = #tpu.pipeline_mode<synchronous>, transform_indices = @transform_0, window_bounds = array<i64: 10, 2, 4>}, {transform_indices = @transform_1, window_bounds = array<i64: 1, 4, 96>}, {transform_indices = @transform_2, window_bounds = array<i64: 1, 32, 96>}, {transform_indices = @transform_3, window_bounds = array<i64: 1, 1, 128>}, {transform_indices = @transform_4, window_bounds = array<i64: 1, 32, 2>}, {transform_indices = @transform_5, window_bounds = array<i64: 1, 1, 2>}, {pipeline_mode = #tpu.pipeline_mode<synchronous>, transform_indices = @transform_6, window_bounds = array<i64: 2, 32>}, {transform_indices = @transform_7, window_bounds = array<i64: 1, 10, 2, 2>}]} {
    %c0 = arith.constant 0 : index
    %c0_0 = arith.constant 0 : index
    %c0_1 = arith.constant 0 : index
    %0 = vector.load %arg3[%c0, %c0_0, %c0_1] : memref<1x32x96xf32, #tpu.memory_space<vmem>>, vector<1x32x96xf32>
    %1 = vector.shape_cast %0 : vector<1x32x96xf32> to vector<32x96xf32>
    %c0_2 = arith.constant 0 : index
    %c0_3 = arith.constant 0 : index
    %c0_4 = arith.constant 0 : index
    %2 = vector.load %arg4[%c0_2, %c0_3, %c0_4] : memref<1x1x128xf32, #tpu.memory_space<vmem>>, vector<1x1x128xf32>
    %3 = vector.shape_cast %2 : vector<1x1x128xf32> to vector<1x128xf32>
    %4 = vector.extract_strided_slice %3 {offsets = [0, 0], sizes = [1, 64], strides = [1, 1]} : vector<1x128xf32> to vector<1x64xf32>
    %5 = vector.extract_strided_slice %3 {offsets = [0, 64], sizes = [1, 32], strides = [1, 1]} : vector<1x128xf32> to vector<1x32xf32>
    %6 = vector.extract_strided_slice %3 {offsets = [0, 96], sizes = [1, 32], strides = [1, 1]} : vector<1x128xf32> to vector<1x32xf32>
    %c0_5 = arith.constant 0 : index
    %c0_6 = arith.constant 0 : index
    %c0_7 = arith.constant 0 : index
    %7 = vector.load %arg1[%c0_5, %c0_6, %c0_7] : memref<10x2x4xf32, #tpu.memory_space<vmem>>, vector<10x2x4xf32>
    %8 = vector.shape_cast %7 : vector<10x2x4xf32> to vector<20x4xf32>
    %c0_8 = arith.constant 0 : index
    %c0_9 = arith.constant 0 : index
    %c0_10 = arith.constant 0 : index
    %9 = vector.load %arg2[%c0_8, %c0_9, %c0_10] : memref<1x4x96xf32, #tpu.memory_space<vmem>>, vector<1x4x96xf32>
    %10 = vector.shape_cast %9 : vector<1x4x96xf32> to vector<4x96xf32>
    %cst = arith.constant dense<0.000000e+00> : vector<20x96xf32>
    %11 = tpu.matmul %8, %10, %cst {dimension_numbers = #tpu.dot_dimension_numbers<[1], [0], [0], [1], [0, 0, 1, 1], [], []>} : vector<20x4xf32>, vector<4x96xf32>, vector<20x96xf32> -> vector<20x96xf32>
    %12 = vector.shape_cast %11 : vector<20x96xf32> to vector<10x2x96xf32>
    %c0_11 = arith.constant 0 : index
    %c0_12 = arith.constant 0 : index
    %13 = vector.load %arg7[%c0_11, %c0_12] : memref<2x32xf32, #tpu.memory_space<vmem>>, vector<2x32xf32>
    %14 = vector.extract_strided_slice %12 {offsets = [0, 0, 0], sizes = [1, 2, 96], strides = [1, 1, 1]} : vector<10x2x96xf32> to vector<1x2x96xf32>
    %15 = vector.shape_cast %14 : vector<1x2x96xf32> to vector<2x96xf32>
    %cst_13 = arith.constant dense<0.000000e+00> : vector<2x96xf32>
    %16 = tpu.matmul %13, %1, %cst_13 {dimension_numbers = #tpu.dot_dimension_numbers<[1], [0], [0], [1], [0, 0, 1, 1], [], []>} : vector<2x32xf32>, vector<32x96xf32>, vector<2x96xf32> -> vector<2x96xf32>
    %17 = vector.extract_strided_slice %15 {offsets = [0, 0], sizes = [2, 64], strides = [1, 1]} : vector<2x96xf32> to vector<2x64xf32>
    %18 = vector.extract_strided_slice %16 {offsets = [0, 0], sizes = [2, 64], strides = [1, 1]} : vector<2x96xf32> to vector<2x64xf32>
    %19 = arith.addf %17, %18 : vector<2x64xf32>
    %20 = vector.broadcast %4 : vector<1x64xf32> to vector<2x64xf32>
    %21 = arith.addf %19, %20 : vector<2x64xf32>
    %22 = arith.negf %21 : vector<2x64xf32>
    %23 = math.exp %22 : vector<2x64xf32>
    %cst_14 = arith.constant 1.000000e+00 : f32
    %24 = vector.broadcast %cst_14 : f32 to vector<2x64xf32>
    %25 = arith.addf %24, %23 : vector<2x64xf32>
    %26 = arith.divf %24, %25 : vector<2x64xf32>
    %27 = vector.extract_strided_slice %26 {offsets = [0, 0], sizes = [2, 32], strides = [1, 1]} : vector<2x64xf32> to vector<2x32xf32>
    %28 = vector.extract_strided_slice %26 {offsets = [0, 32], sizes = [2, 32], strides = [1, 1]} : vector<2x64xf32> to vector<2x32xf32>
    %29 = vector.extract_strided_slice %15 {offsets = [0, 64], sizes = [2, 32], strides = [1, 1]} : vector<2x96xf32> to vector<2x32xf32>
    %30 = vector.broadcast %5 : vector<1x32xf32> to vector<2x32xf32>
    %31 = arith.addf %29, %30 : vector<2x32xf32>
    %32 = vector.extract_strided_slice %16 {offsets = [0, 64], sizes = [2, 32], strides = [1, 1]} : vector<2x96xf32> to vector<2x32xf32>
    %33 = vector.broadcast %6 : vector<1x32xf32> to vector<2x32xf32>
    %34 = arith.addf %32, %33 : vector<2x32xf32>
    %35 = arith.mulf %27, %34 : vector<2x32xf32>
    %36 = arith.addf %31, %35 : vector<2x32xf32>
    %37 = math.tanh %36 : vector<2x32xf32>
    %38 = arith.subf %13, %37 : vector<2x32xf32>
    %39 = arith.mulf %28, %38 : vector<2x32xf32>
    %40 = arith.addf %37, %39 : vector<2x32xf32>
    %c0_15 = arith.constant 0 : index
    %c0_16 = arith.constant 0 : index
    %c0_17 = arith.constant 0 : index
    %41 = vector.load %arg9[%c0_15, %c0_16, %c0_17] : memref<10x2x32xf32, #tpu.memory_space<vmem>>, vector<1x2x32xf32>
    %42 = vector.shape_cast %41 : vector<1x2x32xf32> to vector<2x32xf32>
    %43 = vector.shape_cast %40 : vector<2x32xf32> to vector<1x2x32xf32>
    tpu.vector_store %arg9[%c0_15, %c0_16, %c0_17], %43 {strides = array<i32>} : memref<10x2x32xf32, #tpu.memory_space<vmem>>, vector<1x2x32xf32>,
    %44 = vector.extract_strided_slice %12 {offsets = [1, 0, 0], sizes = [1, 2, 96], strides = [1, 1, 1]} : vector<10x2x96xf32> to vector<1x2x96xf32>
    %45 = vector.shape_cast %44 : vector<1x2x96xf32> to vector<2x96xf32>
    %cst_18 = arith.constant dense<0.000000e+00> : vector<2x96xf32>
    %46 = tpu.matmul %40, %1, %cst_18 {dimension_numbers = #tpu.dot_dimension_numbers<[1], [0], [0], [1], [0, 0, 1, 1], [], []>} : vector<2x32xf32>, vector<32x96xf32>, vector<2x96xf32> -> vector<2x96xf32>
    %47 = vector.extract_strided_slice %45 {offsets = [0, 0], sizes = [2, 64], strides = [1, 1]} : vector<2x96xf32> to vector<2x64xf32>
    %48 = vector.extract_strided_slice %46 {offsets = [0, 0], sizes = [2, 64], strides = [1, 1]} : vector<2x96xf32> to vector<2x64xf32>
    %49 = arith.addf %47, %48 : vector<2x64xf32>
    %50 = vector.broadcast %4 : vector<1x64xf32> to vector<2x64xf32>
    %51 = arith.addf %49, %50 : vector<2x64xf32>
    %52 = arith.negf %51 : vector<2x64xf32>
    %53 = math.exp %52 : vector<2x64xf32>
    %cst_19 = arith.constant 1.000000e+00 : f32
    %54 = vector.broadcast %cst_19 : f32 to vector<2x64xf32>
    %55 = arith.addf %54, %53 : vector<2x64xf32>
    %56 = arith.divf %54, %55 : vector<2x64xf32>
    %57 = vector.extract_strided_slice %56 {offsets = [0, 0], sizes = [2, 32], strides = [1, 1]} : vector<2x64xf32> to vector<2x32xf32>
    %58 = vector.extract_strided_slice %56 {offsets = [0, 32], sizes = [2, 32], strides = [1, 1]} : vector<2x64xf32> to vector<2x32xf32>
    %59 = vector.extract_strided_slice %45 {offsets = [0, 64], sizes = [2, 32], strides = [1, 1]} : vector<2x96xf32> to vector<2x32xf32>
    %60 = vector.broadcast %5 : vector<1x32xf32> to vector<2x32xf32>
    %61 = arith.addf %59, %60 : vector<2x32xf32>
    %62 = vector.extract_strided_slice %46 {offsets = [0, 64], sizes = [2, 32], strides = [1, 1]} : vector<2x96xf32> to vector<2x32xf32>
    %63 = vector.broadcast %6 : vector<1x32xf32> to vector<2x32xf32>
    %64 = arith.addf %62, %63 : vector<2x32xf32>
    %65 = arith.mulf %57, %64 : vector<2x32xf32>
    %66 = arith.addf %61, %65 : vector<2x32xf32>
    %67 = math.tanh %66 : vector<2x32xf32>
    %68 = arith.subf %40, %67 : vector<2x32xf32>
    %69 = arith.mulf %58, %68 : vector<2x32xf32>
    %70 = arith.addf %67, %69 : vector<2x32xf32>
    %c1 = arith.constant 1 : index
    %c0_20 = arith.constant 0 : index
    %c0_21 = arith.constant 0 : index
    %71 = vector.load %arg9[%c1, %c0_20, %c0_21] : memref<10x2x32xf32, #tpu.memory_space<vmem>>, vector<1x2x32xf32>
    %72 = vector.shape_cast %71 : vector<1x2x32xf32> to vector<2x32xf32>
    %73 = vector.shape_cast %70 : vector<2x32xf32> to vector<1x2x32xf32>
    tpu.vector_store %arg9[%c1, %c0_20, %c0_21], %73 {strides = array<i32>} : memref<10x2x32xf32, #tpu.memory_space<vmem>>, vector<1x2x32xf32>,
    %74 = vector.extract_strided_slice %12 {offsets = [2, 0, 0], sizes = [1, 2, 96], strides = [1, 1, 1]} : vector<10x2x96xf32> to vector<1x2x96xf32>
    %75 = vector.shape_cast %74 : vector<1x2x96xf32> to vector<2x96xf32>
    %cst_22 = arith.constant dense<0.000000e+00> : vector<2x96xf32>
    %76 = tpu.matmul %70, %1, %cst_22 {dimension_numbers = #tpu.dot_dimension_numbers<[1], [0], [0], [1], [0, 0, 1, 1], [], []>} : vector<2x32xf32>, vector<32x96xf32>, vector<2x96xf32> -> vector<2x96xf32>
    %77 = vector.extract_strided_slice %75 {offsets = [0, 0], sizes = [2, 64], strides = [1, 1]} : vector<2x96xf32> to vector<2x64xf32>
    %78 = vector.extract_strided_slice %76 {offsets = [0, 0], sizes = [2, 64], strides = [1, 1]} : vector<2x96xf32> to vector<2x64xf32>
    %79 = arith.addf %77, %78 : vector<2x64xf32>
    %80 = vector.broadcast %4 : vector<1x64xf32> to vector<2x64xf32>
    %81 = arith.addf %79, %80 : vector<2x64xf32>
    %82 = arith.negf %81 : vector<2x64xf32>
    %83 = math.exp %82 : vector<2x64xf32>
    %cst_23 = arith.constant 1.000000e+00 : f32
    %84 = vector.broadcast %cst_23 : f32 to vector<2x64xf32>
    %85 = arith.addf %84, %83 : vector<2x64xf32>
    %86 = arith.divf %84, %85 : vector<2x64xf32>
    %87 = vector.extract_strided_slice %86 {offsets = [0, 0], sizes = [2, 32], strides = [1, 1]} : vector<2x64xf32> to vector<2x32xf32>
    %88 = vector.extract_strided_slice %86 {offsets = [0, 32], sizes = [2, 32], strides = [1, 1]} : vector<2x64xf32> to vector<2x32xf32>
    %89 = vector.extract_strided_slice %75 {offsets = [0, 64], sizes = [2, 32], strides = [1, 1]} : vector<2x96xf32> to vector<2x32xf32>
    %90 = vector.broadcast %5 : vector<1x32xf32> to vector<2x32xf32>
    %91 = arith.addf %89, %90 : vector<2x32xf32>
    %92 = vector.extract_strided_slice %76 {offsets = [0, 64], sizes = [2, 32], strides = [1, 1]} : vector<2x96xf32> to vector<2x32xf32>
    %93 = vector.broadcast %6 : vector<1x32xf32> to vector<2x32xf32>
    %94 = arith.addf %92, %93 : vector<2x32xf32>
    %95 = arith.mulf %87, %94 : vector<2x32xf32>
    %96 = arith.addf %91, %95 : vector<2x32xf32>
    %97 = math.tanh %96 : vector<2x32xf32>
    %98 = arith.subf %70, %97 : vector<2x32xf32>
    %99 = arith.mulf %88, %98 : vector<2x32xf32>
    %100 = arith.addf %97, %99 : vector<2x32xf32>
    %c2 = arith.constant 2 : index
    %c0_24 = arith.constant 0 : index
    %c0_25 = arith.constant 0 : index
    %101 = vector.load %arg9[%c2, %c0_24, %c0_25] : memref<10x2x32xf32, #tpu.memory_space<vmem>>, vector<1x2x32xf32>
    %102 = vector.shape_cast %101 : vector<1x2x32xf32> to vector<2x32xf32>
    %103 = vector.shape_cast %100 : vector<2x32xf32> to vector<1x2x32xf32>
    tpu.vector_store %arg9[%c2, %c0_24, %c0_25], %103 {strides = array<i32>} : memref<10x2x32xf32, #tpu.memory_space<vmem>>, vector<1x2x32xf32>,
    %104 = vector.extract_strided_slice %12 {offsets = [3, 0, 0], sizes = [1, 2, 96], strides = [1, 1, 1]} : vector<10x2x96xf32> to vector<1x2x96xf32>
    %105 = vector.shape_cast %104 : vector<1x2x96xf32> to vector<2x96xf32>
    %cst_26 = arith.constant dense<0.000000e+00> : vector<2x96xf32>
    %106 = tpu.matmul %100, %1, %cst_26 {dimension_numbers = #tpu.dot_dimension_numbers<[1], [0], [0], [1], [0, 0, 1, 1], [], []>} : vector<2x32xf32>, vector<32x96xf32>, vector<2x96xf32> -> vector<2x96xf32>
    %107 = vector.extract_strided_slice %105 {offsets = [0, 0], sizes = [2, 64], strides = [1, 1]} : vector<2x96xf32> to vector<2x64xf32>
    %108 = vector.extract_strided_slice %106 {offsets = [0, 0], sizes = [2, 64], strides = [1, 1]} : vector<2x96xf32> to vector<2x64xf32>
    %109 = arith.addf %107, %108 : vector<2x64xf32>
    %110 = vector.broadcast %4 : vector<1x64xf32> to vector<2x64xf32>
    %111 = arith.addf %109, %110 : vector<2x64xf32>
    %112 = arith.negf %111 : vector<2x64xf32>
    %113 = math.exp %112 : vector<2x64xf32>
    %cst_27 = arith.constant 1.000000e+00 : f32
    %114 = vector.broadcast %cst_27 : f32 to vector<2x64xf32>
    %115 = arith.addf %114, %113 : vector<2x64xf32>
    %116 = arith.divf %114, %115 : vector<2x64xf32>
    %117 = vector.extract_strided_slice %116 {offsets = [0, 0], sizes = [2, 32], strides = [1, 1]} : vector<2x64xf32> to vector<2x32xf32>
    %118 = vector.extract_strided_slice %116 {offsets = [0, 32], sizes = [2, 32], strides = [1, 1]} : vector<2x64xf32> to vector<2x32xf32>
    %119 = vector.extract_strided_slice %105 {offsets = [0, 64], sizes = [2, 32], strides = [1, 1]} : vector<2x96xf32> to vector<2x32xf32>
    %120 = vector.broadcast %5 : vector<1x32xf32> to vector<2x32xf32>
    %121 = arith.addf %119, %120 : vector<2x32xf32>
    %122 = vector.extract_strided_slice %106 {offsets = [0, 64], sizes = [2, 32], strides = [1, 1]} : vector<2x96xf32> to vector<2x32xf32>
    %123 = vector.broadcast %6 : vector<1x32xf32> to vector<2x32xf32>
    %124 = arith.addf %122, %123 : vector<2x32xf32>
    %125 = arith.mulf %117, %124 : vector<2x32xf32>
    %126 = arith.addf %121, %125 : vector<2x32xf32>
    %127 = math.tanh %126 : vector<2x32xf32>
    %128 = arith.subf %100, %127 : vector<2x32xf32>
    %129 = arith.mulf %118, %128 : vector<2x32xf32>
    %130 = arith.addf %127, %129 : vector<2x32xf32>
    %c3 = arith.constant 3 : index
    %c0_28 = arith.constant 0 : index
    %c0_29 = arith.constant 0 : index
    %131 = vector.load %arg9[%c3, %c0_28, %c0_29] : memref<10x2x32xf32, #tpu.memory_space<vmem>>, vector<1x2x32xf32>
    %132 = vector.shape_cast %131 : vector<1x2x32xf32> to vector<2x32xf32>
    %133 = vector.shape_cast %130 : vector<2x32xf32> to vector<1x2x32xf32>
    tpu.vector_store %arg9[%c3, %c0_28, %c0_29], %133 {strides = array<i32>} : memref<10x2x32xf32, #tpu.memory_space<vmem>>, vector<1x2x32xf32>,
    %134 = vector.extract_strided_slice %12 {offsets = [4, 0, 0], sizes = [1, 2, 96], strides = [1, 1, 1]} : vector<10x2x96xf32> to vector<1x2x96xf32>
    %135 = vector.shape_cast %134 : vector<1x2x96xf32> to vector<2x96xf32>
    %cst_30 = arith.constant dense<0.000000e+00> : vector<2x96xf32>
    %136 = tpu.matmul %130, %1, %cst_30 {dimension_numbers = #tpu.dot_dimension_numbers<[1], [0], [0], [1], [0, 0, 1, 1], [], []>} : vector<2x32xf32>, vector<32x96xf32>, vector<2x96xf32> -> vector<2x96xf32>
    %137 = vector.extract_strided_slice %135 {offsets = [0, 0], sizes = [2, 64], strides = [1, 1]} : vector<2x96xf32> to vector<2x64xf32>
    %138 = vector.extract_strided_slice %136 {offsets = [0, 0], sizes = [2, 64], strides = [1, 1]} : vector<2x96xf32> to vector<2x64xf32>
    %139 = arith.addf %137, %138 : vector<2x64xf32>
    %140 = vector.broadcast %4 : vector<1x64xf32> to vector<2x64xf32>
    %141 = arith.addf %139, %140 : vector<2x64xf32>
    %142 = arith.negf %141 : vector<2x64xf32>
    %143 = math.exp %142 : vector<2x64xf32>
    %cst_31 = arith.constant 1.000000e+00 : f32
    %144 = vector.broadcast %cst_31 : f32 to vector<2x64xf32>
    %145 = arith.addf %144, %143 : vector<2x64xf32>
    %146 = arith.divf %144, %145 : vector<2x64xf32>
    %147 = vector.extract_strided_slice %146 {offsets = [0, 0], sizes = [2, 32], strides = [1, 1]} : vector<2x64xf32> to vector<2x32xf32>
    %148 = vector.extract_strided_slice %146 {offsets = [0, 32], sizes = [2, 32], strides = [1, 1]} : vector<2x64xf32> to vector<2x32xf32>
    %149 = vector.extract_strided_slice %135 {offsets = [0, 64], sizes = [2, 32], strides = [1, 1]} : vector<2x96xf32> to vector<2x32xf32>
    %150 = vector.broadcast %5 : vector<1x32xf32> to vector<2x32xf32>
    %151 = arith.addf %149, %150 : vector<2x32xf32>
    %152 = vector.extract_strided_slice %136 {offsets = [0, 64], sizes = [2, 32], strides = [1, 1]} : vector<2x96xf32> to vector<2x32xf32>
    %153 = vector.broadcast %6 : vector<1x32xf32> to vector<2x32xf32>
    %154 = arith.addf %152, %153 : vector<2x32xf32>
    %155 = arith.mulf %147, %154 : vector<2x32xf32>
    %156 = arith.addf %151, %155 : vector<2x32xf32>
    %157 = math.tanh %156 : vector<2x32xf32>
    %158 = arith.subf %130, %157 : vector<2x32xf32>
    %159 = arith.mulf %148, %158 : vector<2x32xf32>
    %160 = arith.addf %157, %159 : vector<2x32xf32>
    %c4 = arith.constant 4 : index
    %c0_32 = arith.constant 0 : index
    %c0_33 = arith.constant 0 : index
    %161 = vector.load %arg9[%c4, %c0_32, %c0_33] : memref<10x2x32xf32, #tpu.memory_space<vmem>>, vector<1x2x32xf32>
    %162 = vector.shape_cast %161 : vector<1x2x32xf32> to vector<2x32xf32>
    %163 = vector.shape_cast %160 : vector<2x32xf32> to vector<1x2x32xf32>
    tpu.vector_store %arg9[%c4, %c0_32, %c0_33], %163 {strides = array<i32>} : memref<10x2x32xf32, #tpu.memory_space<vmem>>, vector<1x2x32xf32>,
    %164 = vector.extract_strided_slice %12 {offsets = [5, 0, 0], sizes = [1, 2, 96], strides = [1, 1, 1]} : vector<10x2x96xf32> to vector<1x2x96xf32>
    %165 = vector.shape_cast %164 : vector<1x2x96xf32> to vector<2x96xf32>
    %cst_34 = arith.constant dense<0.000000e+00> : vector<2x96xf32>
    %166 = tpu.matmul %160, %1, %cst_34 {dimension_numbers = #tpu.dot_dimension_numbers<[1], [0], [0], [1], [0, 0, 1, 1], [], []>} : vector<2x32xf32>, vector<32x96xf32>, vector<2x96xf32> -> vector<2x96xf32>
    %167 = vector.extract_strided_slice %165 {offsets = [0, 0], sizes = [2, 64], strides = [1, 1]} : vector<2x96xf32> to vector<2x64xf32>
    %168 = vector.extract_strided_slice %166 {offsets = [0, 0], sizes = [2, 64], strides = [1, 1]} : vector<2x96xf32> to vector<2x64xf32>
    %169 = arith.addf %167, %168 : vector<2x64xf32>
    %170 = vector.broadcast %4 : vector<1x64xf32> to vector<2x64xf32>
    %171 = arith.addf %169, %170 : vector<2x64xf32>
    %172 = arith.negf %171 : vector<2x64xf32>
    %173 = math.exp %172 : vector<2x64xf32>
    %cst_35 = arith.constant 1.000000e+00 : f32
    %174 = vector.broadcast %cst_35 : f32 to vector<2x64xf32>
    %175 = arith.addf %174, %173 : vector<2x64xf32>
    %176 = arith.divf %174, %175 : vector<2x64xf32>
    %177 = vector.extract_strided_slice %176 {offsets = [0, 0], sizes = [2, 32], strides = [1, 1]} : vector<2x64xf32> to vector<2x32xf32>
    %178 = vector.extract_strided_slice %176 {offsets = [0, 32], sizes = [2, 32], strides = [1, 1]} : vector<2x64xf32> to vector<2x32xf32>
    %179 = vector.extract_strided_slice %165 {offsets = [0, 64], sizes = [2, 32], strides = [1, 1]} : vector<2x96xf32> to vector<2x32xf32>
    %180 = vector.broadcast %5 : vector<1x32xf32> to vector<2x32xf32>
    %181 = arith.addf %179, %180 : vector<2x32xf32>
    %182 = vector.extract_strided_slice %166 {offsets = [0, 64], sizes = [2, 32], strides = [1, 1]} : vector<2x96xf32> to vector<2x32xf32>
    %183 = vector.broadcast %6 : vector<1x32xf32> to vector<2x32xf32>
    %184 = arith.addf %182, %183 : vector<2x32xf32>
    %185 = arith.mulf %177, %184 : vector<2x32xf32>
    %186 = arith.addf %181, %185 : vector<2x32xf32>
    %187 = math.tanh %186 : vector<2x32xf32>
    %188 = arith.subf %160, %187 : vector<2x32xf32>
    %189 = arith.mulf %178, %188 : vector<2x32xf32>
    %190 = arith.addf %187, %189 : vector<2x32xf32>
    %c5 = arith.constant 5 : index
    %c0_36 = arith.constant 0 : index
    %c0_37 = arith.constant 0 : index
    %191 = vector.load %arg9[%c5, %c0_36, %c0_37] : memref<10x2x32xf32, #tpu.memory_space<vmem>>, vector<1x2x32xf32>
    %192 = vector.shape_cast %191 : vector<1x2x32xf32> to vector<2x32xf32>
    %193 = vector.shape_cast %190 : vector<2x32xf32> to vector<1x2x32xf32>
    tpu.vector_store %arg9[%c5, %c0_36, %c0_37], %193 {strides = array<i32>} : memref<10x2x32xf32, #tpu.memory_space<vmem>>, vector<1x2x32xf32>,
    %194 = vector.extract_strided_slice %12 {offsets = [6, 0, 0], sizes = [1, 2, 96], strides = [1, 1, 1]} : vector<10x2x96xf32> to vector<1x2x96xf32>
    %195 = vector.shape_cast %194 : vector<1x2x96xf32> to vector<2x96xf32>
    %cst_38 = arith.constant dense<0.000000e+00> : vector<2x96xf32>
    %196 = tpu.matmul %190, %1, %cst_38 {dimension_numbers = #tpu.dot_dimension_numbers<[1], [0], [0], [1], [0, 0, 1, 1], [], []>} : vector<2x32xf32>, vector<32x96xf32>, vector<2x96xf32> -> vector<2x96xf32>
    %197 = vector.extract_strided_slice %195 {offsets = [0, 0], sizes = [2, 64], strides = [1, 1]} : vector<2x96xf32> to vector<2x64xf32>
    %198 = vector.extract_strided_slice %196 {offsets = [0, 0], sizes = [2, 64], strides = [1, 1]} : vector<2x96xf32> to vector<2x64xf32>
    %199 = arith.addf %197, %198 : vector<2x64xf32>
    %200 = vector.broadcast %4 : vector<1x64xf32> to vector<2x64xf32>
    %201 = arith.addf %199, %200 : vector<2x64xf32>
    %202 = arith.negf %201 : vector<2x64xf32>
    %203 = math.exp %202 : vector<2x64xf32>
    %cst_39 = arith.constant 1.000000e+00 : f32
    %204 = vector.broadcast %cst_39 : f32 to vector<2x64xf32>
    %205 = arith.addf %204, %203 : vector<2x64xf32>
    %206 = arith.divf %204, %205 : vector<2x64xf32>
    %207 = vector.extract_strided_slice %206 {offsets = [0, 0], sizes = [2, 32], strides = [1, 1]} : vector<2x64xf32> to vector<2x32xf32>
    %208 = vector.extract_strided_slice %206 {offsets = [0, 32], sizes = [2, 32], strides = [1, 1]} : vector<2x64xf32> to vector<2x32xf32>
    %209 = vector.extract_strided_slice %195 {offsets = [0, 64], sizes = [2, 32], strides = [1, 1]} : vector<2x96xf32> to vector<2x32xf32>
    %210 = vector.broadcast %5 : vector<1x32xf32> to vector<2x32xf32>
    %211 = arith.addf %209, %210 : vector<2x32xf32>
    %212 = vector.extract_strided_slice %196 {offsets = [0, 64], sizes = [2, 32], strides = [1, 1]} : vector<2x96xf32> to vector<2x32xf32>
    %213 = vector.broadcast %6 : vector<1x32xf32> to vector<2x32xf32>
    %214 = arith.addf %212, %213 : vector<2x32xf32>
    %215 = arith.mulf %207, %214 : vector<2x32xf32>
    %216 = arith.addf %211, %215 : vector<2x32xf32>
    %217 = math.tanh %216 : vector<2x32xf32>
    %218 = arith.subf %190, %217 : vector<2x32xf32>
    %219 = arith.mulf %208, %218 : vector<2x32xf32>
    %220 = arith.addf %217, %219 : vector<2x32xf32>
    %c6 = arith.constant 6 : index
    %c0_40 = arith.constant 0 : index
    %c0_41 = arith.constant 0 : index
    %221 = vector.load %arg9[%c6, %c0_40, %c0_41] : memref<10x2x32xf32, #tpu.memory_space<vmem>>, vector<1x2x32xf32>
    %222 = vector.shape_cast %221 : vector<1x2x32xf32> to vector<2x32xf32>
    %223 = vector.shape_cast %220 : vector<2x32xf32> to vector<1x2x32xf32>
    tpu.vector_store %arg9[%c6, %c0_40, %c0_41], %223 {strides = array<i32>} : memref<10x2x32xf32, #tpu.memory_space<vmem>>, vector<1x2x32xf32>,
    %224 = vector.extract_strided_slice %12 {offsets = [7, 0, 0], sizes = [1, 2, 96], strides = [1, 1, 1]} : vector<10x2x96xf32> to vector<1x2x96xf32>
    %225 = vector.shape_cast %224 : vector<1x2x96xf32> to vector<2x96xf32>
    %cst_42 = arith.constant dense<0.000000e+00> : vector<2x96xf32>
    %226 = tpu.matmul %220, %1, %cst_42 {dimension_numbers = #tpu.dot_dimension_numbers<[1], [0], [0], [1], [0, 0, 1, 1], [], []>} : vector<2x32xf32>, vector<32x96xf32>, vector<2x96xf32> -> vector<2x96xf32>
    %227 = vector.extract_strided_slice %225 {offsets = [0, 0], sizes = [2, 64], strides = [1, 1]} : vector<2x96xf32> to vector<2x64xf32>
    %228 = vector.extract_strided_slice %226 {offsets = [0, 0], sizes = [2, 64], strides = [1, 1]} : vector<2x96xf32> to vector<2x64xf32>
    %229 = arith.addf %227, %228 : vector<2x64xf32>
    %230 = vector.broadcast %4 : vector<1x64xf32> to vector<2x64xf32>
    %231 = arith.addf %229, %230 : vector<2x64xf32>
    %232 = arith.negf %231 : vector<2x64xf32>
    %233 = math.exp %232 : vector<2x64xf32>
    %cst_43 = arith.constant 1.000000e+00 : f32
    %234 = vector.broadcast %cst_43 : f32 to vector<2x64xf32>
    %235 = arith.addf %234, %233 : vector<2x64xf32>
    %236 = arith.divf %234, %235 : vector<2x64xf32>
    %237 = vector.extract_strided_slice %236 {offsets = [0, 0], sizes = [2, 32], strides = [1, 1]} : vector<2x64xf32> to vector<2x32xf32>
    %238 = vector.extract_strided_slice %236 {offsets = [0, 32], sizes = [2, 32], strides = [1, 1]} : vector<2x64xf32> to vector<2x32xf32>
    %239 = vector.extract_strided_slice %225 {offsets = [0, 64], sizes = [2, 32], strides = [1, 1]} : vector<2x96xf32> to vector<2x32xf32>
    %240 = vector.broadcast %5 : vector<1x32xf32> to vector<2x32xf32>
    %241 = arith.addf %239, %240 : vector<2x32xf32>
    %242 = vector.extract_strided_slice %226 {offsets = [0, 64], sizes = [2, 32], strides = [1, 1]} : vector<2x96xf32> to vector<2x32xf32>
    %243 = vector.broadcast %6 : vector<1x32xf32> to vector<2x32xf32>
    %244 = arith.addf %242, %243 : vector<2x32xf32>
    %245 = arith.mulf %237, %244 : vector<2x32xf32>
    %246 = arith.addf %241, %245 : vector<2x32xf32>
    %247 = math.tanh %246 : vector<2x32xf32>
    %248 = arith.subf %220, %247 : vector<2x32xf32>
    %249 = arith.mulf %238, %248 : vector<2x32xf32>
    %250 = arith.addf %247, %249 : vector<2x32xf32>
    %c7 = arith.constant 7 : index
    %c0_44 = arith.constant 0 : index
    %c0_45 = arith.constant 0 : index
    %251 = vector.load %arg9[%c7, %c0_44, %c0_45] : memref<10x2x32xf32, #tpu.memory_space<vmem>>, vector<1x2x32xf32>
    %252 = vector.shape_cast %251 : vector<1x2x32xf32> to vector<2x32xf32>
    %253 = vector.shape_cast %250 : vector<2x32xf32> to vector<1x2x32xf32>
    tpu.vector_store %arg9[%c7, %c0_44, %c0_45], %253 {strides = array<i32>} : memref<10x2x32xf32, #tpu.memory_space<vmem>>, vector<1x2x32xf32>,
    %254 = vector.extract_strided_slice %12 {offsets = [8, 0, 0], sizes = [1, 2, 96], strides = [1, 1, 1]} : vector<10x2x96xf32> to vector<1x2x96xf32>
    %255 = vector.shape_cast %254 : vector<1x2x96xf32> to vector<2x96xf32>
    %cst_46 = arith.constant dense<0.000000e+00> : vector<2x96xf32>
    %256 = tpu.matmul %250, %1, %cst_46 {dimension_numbers = #tpu.dot_dimension_numbers<[1], [0], [0], [1], [0, 0, 1, 1], [], []>} : vector<2x32xf32>, vector<32x96xf32>, vector<2x96xf32> -> vector<2x96xf32>
    %257 = vector.extract_strided_slice %255 {offsets = [0, 0], sizes = [2, 64], strides = [1, 1]} : vector<2x96xf32> to vector<2x64xf32>
    %258 = vector.extract_strided_slice %256 {offsets = [0, 0], sizes = [2, 64], strides = [1, 1]} : vector<2x96xf32> to vector<2x64xf32>
    %259 = arith.addf %257, %258 : vector<2x64xf32>
    %260 = vector.broadcast %4 : vector<1x64xf32> to vector<2x64xf32>
    %261 = arith.addf %259, %260 : vector<2x64xf32>
    %262 = arith.negf %261 : vector<2x64xf32>
    %263 = math.exp %262 : vector<2x64xf32>
    %cst_47 = arith.constant 1.000000e+00 : f32
    %264 = vector.broadcast %cst_47 : f32 to vector<2x64xf32>
    %265 = arith.addf %264, %263 : vector<2x64xf32>
    %266 = arith.divf %264, %265 : vector<2x64xf32>
    %267 = vector.extract_strided_slice %266 {offsets = [0, 0], sizes = [2, 32], strides = [1, 1]} : vector<2x64xf32> to vector<2x32xf32>
    %268 = vector.extract_strided_slice %266 {offsets = [0, 32], sizes = [2, 32], strides = [1, 1]} : vector<2x64xf32> to vector<2x32xf32>
    %269 = vector.extract_strided_slice %255 {offsets = [0, 64], sizes = [2, 32], strides = [1, 1]} : vector<2x96xf32> to vector<2x32xf32>
    %270 = vector.broadcast %5 : vector<1x32xf32> to vector<2x32xf32>
    %271 = arith.addf %269, %270 : vector<2x32xf32>
    %272 = vector.extract_strided_slice %256 {offsets = [0, 64], sizes = [2, 32], strides = [1, 1]} : vector<2x96xf32> to vector<2x32xf32>
    %273 = vector.broadcast %6 : vector<1x32xf32> to vector<2x32xf32>
    %274 = arith.addf %272, %273 : vector<2x32xf32>
    %275 = arith.mulf %267, %274 : vector<2x32xf32>
    %276 = arith.addf %271, %275 : vector<2x32xf32>
    %277 = math.tanh %276 : vector<2x32xf32>
    %278 = arith.subf %250, %277 : vector<2x32xf32>
    %279 = arith.mulf %268, %278 : vector<2x32xf32>
    %280 = arith.addf %277, %279 : vector<2x32xf32>
    %c8 = arith.constant 8 : index
    %c0_48 = arith.constant 0 : index
    %c0_49 = arith.constant 0 : index
    %281 = vector.load %arg9[%c8, %c0_48, %c0_49] : memref<10x2x32xf32, #tpu.memory_space<vmem>>, vector<1x2x32xf32>
    %282 = vector.shape_cast %281 : vector<1x2x32xf32> to vector<2x32xf32>
    %283 = vector.shape_cast %280 : vector<2x32xf32> to vector<1x2x32xf32>
    tpu.vector_store %arg9[%c8, %c0_48, %c0_49], %283 {strides = array<i32>} : memref<10x2x32xf32, #tpu.memory_space<vmem>>, vector<1x2x32xf32>,
    %284 = vector.extract_strided_slice %12 {offsets = [9, 0, 0], sizes = [1, 2, 96], strides = [1, 1, 1]} : vector<10x2x96xf32> to vector<1x2x96xf32>
    %285 = vector.shape_cast %284 : vector<1x2x96xf32> to vector<2x96xf32>
    %cst_50 = arith.constant dense<0.000000e+00> : vector<2x96xf32>
    %286 = tpu.matmul %280, %1, %cst_50 {dimension_numbers = #tpu.dot_dimension_numbers<[1], [0], [0], [1], [0, 0, 1, 1], [], []>} : vector<2x32xf32>, vector<32x96xf32>, vector<2x96xf32> -> vector<2x96xf32>
    %287 = vector.extract_strided_slice %285 {offsets = [0, 0], sizes = [2, 64], strides = [1, 1]} : vector<2x96xf32> to vector<2x64xf32>
    %288 = vector.extract_strided_slice %286 {offsets = [0, 0], sizes = [2, 64], strides = [1, 1]} : vector<2x96xf32> to vector<2x64xf32>
    %289 = arith.addf %287, %288 : vector<2x64xf32>
    %290 = vector.broadcast %4 : vector<1x64xf32> to vector<2x64xf32>
    %291 = arith.addf %289, %290 : vector<2x64xf32>
    %292 = arith.negf %291 : vector<2x64xf32>
    %293 = math.exp %292 : vector<2x64xf32>
    %cst_51 = arith.constant 1.000000e+00 : f32
    %294 = vector.broadcast %cst_51 : f32 to vector<2x64xf32>
    %295 = arith.addf %294, %293 : vector<2x64xf32>
    %296 = arith.divf %294, %295 : vector<2x64xf32>
    %297 = vector.extract_strided_slice %296 {offsets = [0, 0], sizes = [2, 32], strides = [1, 1]} : vector<2x64xf32> to vector<2x32xf32>
    %298 = vector.extract_strided_slice %296 {offsets = [0, 32], sizes = [2, 32], strides = [1, 1]} : vector<2x64xf32> to vector<2x32xf32>
    %299 = vector.extract_strided_slice %285 {offsets = [0, 64], sizes = [2, 32], strides = [1, 1]} : vector<2x96xf32> to vector<2x32xf32>
    %300 = vector.broadcast %5 : vector<1x32xf32> to vector<2x32xf32>
    %301 = arith.addf %299, %300 : vector<2x32xf32>
    %302 = vector.extract_strided_slice %286 {offsets = [0, 64], sizes = [2, 32], strides = [1, 1]} : vector<2x96xf32> to vector<2x32xf32>
    %303 = vector.broadcast %6 : vector<1x32xf32> to vector<2x32xf32>
    %304 = arith.addf %302, %303 : vector<2x32xf32>
    %305 = arith.mulf %297, %304 : vector<2x32xf32>
    %306 = arith.addf %301, %305 : vector<2x32xf32>
    %307 = math.tanh %306 : vector<2x32xf32>
    %308 = arith.subf %280, %307 : vector<2x32xf32>
    %309 = arith.mulf %298, %308 : vector<2x32xf32>
    %310 = arith.addf %307, %309 : vector<2x32xf32>
    %c9 = arith.constant 9 : index
    %c0_52 = arith.constant 0 : index
    %c0_53 = arith.constant 0 : index
    %311 = vector.load %arg9[%c9, %c0_52, %c0_53] : memref<10x2x32xf32, #tpu.memory_space<vmem>>, vector<1x2x32xf32>
    %312 = vector.shape_cast %311 : vector<1x2x32xf32> to vector<2x32xf32>
    %313 = vector.shape_cast %310 : vector<2x32xf32> to vector<1x2x32xf32>
    tpu.vector_store %arg9[%c9, %c0_52, %c0_53], %313 {strides = array<i32>} : memref<10x2x32xf32, #tpu.memory_space<vmem>>, vector<1x2x32xf32>,
    %c0_54 = arith.constant 0 : index
    %c0_55 = arith.constant 0 : index
    %c0_56 = arith.constant 0 : index
    %314 = vector.load %arg9[%c0_54, %c0_55, %c0_56] : memref<10x2x32xf32, #tpu.memory_space<vmem>>, vector<10x2x32xf32>
    %315 = vector.shape_cast %314 : vector<10x2x32xf32> to vector<20x32xf32>
    %c0_57 = arith.constant 0 : index
    %c0_58 = arith.constant 0 : index
    %c0_59 = arith.constant 0 : index
    %316 = vector.load %arg5[%c0_57, %c0_58, %c0_59] : memref<1x32x2xf32, #tpu.memory_space<vmem>>, vector<1x32x2xf32>
    %317 = vector.shape_cast %316 : vector<1x32x2xf32> to vector<32x2xf32>
    %cst_60 = arith.constant dense<0.000000e+00> : vector<20x2xf32>
    %318 = tpu.matmul %315, %317, %cst_60 {dimension_numbers = #tpu.dot_dimension_numbers<[1], [0], [0], [1], [0, 0, 1, 1], [], []>} : vector<20x32xf32>, vector<32x2xf32>, vector<20x2xf32> -> vector<20x2xf32>
    %c0_61 = arith.constant 0 : index
    %c0_62 = arith.constant 0 : index
    %c0_63 = arith.constant 0 : index
    %319 = vector.load %arg6[%c0_61, %c0_62, %c0_63] : memref<1x1x2xf32, #tpu.memory_space<vmem>>, vector<1x1x2xf32>
    %320 = vector.shape_cast %319 : vector<1x1x2xf32> to vector<1x2xf32>
    %321 = vector.broadcast %320 : vector<1x2xf32> to vector<20x2xf32>
    %322 = arith.addf %318, %321 : vector<20x2xf32>
    %323 = vector.shape_cast %322 : vector<20x2xf32> to vector<10x2x2xf32>
    %c0_64 = arith.constant 0 : index
    %c0_65 = arith.constant 0 : index
    %c0_66 = arith.constant 0 : index
    %c0_67 = arith.constant 0 : index
    %324 = vector.load %arg8[%c0_64, %c0_65, %c0_66, %c0_67] : memref<1x10x2x2xf32, #tpu.memory_space<vmem>>, vector<1x10x2x2xf32>
    %325 = vector.shape_cast %324 : vector<1x10x2x2xf32> to vector<10x2x2xf32>
    %326 = vector.shape_cast %323 : vector<10x2x2xf32> to vector<1x10x2x2xf32>
    tpu.vector_store %arg8[%c0_64, %c0_65, %c0_66, %c0_67], %326 {strides = array<i32>} : memref<1x10x2x2xf32, #tpu.memory_space<vmem>>, vector<1x10x2x2xf32>,
    return
  }
  func.func @transform_0(%arg0: i32) -> (i32, i32, i32) {
    %c0_i32 = arith.constant 0 : i32
    %c0_i32_0 = arith.constant 0 : i32
    %c0_i32_1 = arith.constant 0 : i32
    %c0_i32_2 = arith.constant 0 : i32
    return %c0_i32, %c0_i32_0, %c0_i32_1 : i32, i32, i32
  }
  func.func @transform_1(%arg0: i32) -> (i32, i32, i32) {
    %c0_i32 = arith.constant 0 : i32
    %c0_i32_0 = arith.constant 0 : i32
    %c0_i32_1 = arith.constant 0 : i32
    return %arg0, %c0_i32, %c0_i32_0 : i32, i32, i32
  }
  func.func @transform_2(%arg0: i32) -> (i32, i32, i32) {
    %c0_i32 = arith.constant 0 : i32
    %c0_i32_0 = arith.constant 0 : i32
    %c0_i32_1 = arith.constant 0 : i32
    return %arg0, %c0_i32, %c0_i32_0 : i32, i32, i32
  }
  func.func @transform_3(%arg0: i32) -> (i32, i32, i32) {
    %c0_i32 = arith.constant 0 : i32
    %c0_i32_0 = arith.constant 0 : i32
    %c0_i32_1 = arith.constant 0 : i32
    return %arg0, %c0_i32, %c0_i32_0 : i32, i32, i32
  }
  func.func @transform_4(%arg0: i32) -> (i32, i32, i32) {
    %c0_i32 = arith.constant 0 : i32
    %c0_i32_0 = arith.constant 0 : i32
    %c0_i32_1 = arith.constant 0 : i32
    return %arg0, %c0_i32, %c0_i32_0 : i32, i32, i32
  }
  func.func @transform_5(%arg0: i32) -> (i32, i32, i32) {
    %c0_i32 = arith.constant 0 : i32
    %c0_i32_0 = arith.constant 0 : i32
    %c0_i32_1 = arith.constant 0 : i32
    return %arg0, %c0_i32, %c0_i32_0 : i32, i32, i32
  }
  func.func @transform_6(%arg0: i32) -> (i32, i32) {
    %c0_i32 = arith.constant 0 : i32
    %c0_i32_0 = arith.constant 0 : i32
    %c0_i32_1 = arith.constant 0 : i32
    return %c0_i32, %c0_i32_0 : i32, i32
  }
  func.func @transform_7(%arg0: i32) -> (i32, i32, i32, i32) {
    %c0_i32 = arith.constant 0 : i32
    %c0_i32_0 = arith.constant 0 : i32
    %c0_i32_1 = arith.constant 0 : i32
    %c0_i32_2 = arith.constant 0 : i32
    return %arg0, %c0_i32, %c0_i32_0, %c0_i32_1 : i32, i32, i32, i32
  }
}

</mosaic_0001>

<bundles_post_ra>
// kernel: tile.9
= control target key start
LH: loop header
LB: loop body
LE: loop exit
PB: predicated region body
PF: predicated region fallthrough
CT: control target
= control target key end

     0   :  { %s11_s10 = smov 3  ;;  %vm13_vm0 = vcmask 130048   ;;  %s32_s11 = smov 16   ;;  %vm20_vm1 = vcmask 261248   ;;  %s52_s0 = inlined_call_operand.vmem [shape: f32[2,2,16], index: 0, kind: input, shape index: {}]   ;;  %s53_s1 = inlined_call_operand.vmem [shape: f32[2,32], index: 1, kind: output, shape index: {}]  }
   0x1   :  { %v30_v0 = vld [vmem:[%s52_s0 + $0x2] sm:$0x3]  ;;  %v9_v1 = vld [vmem:[%s52_s0] sm:$0x3]  ;;  %s16_s0 = smov 3 }
   0x2   :  { %8 = vst [vmem:[#allocation1 + $0x8] sm:$0x3] %v30_v0  ;;  %10 = vst [vmem:[#allocation1] sm:$0x3] %v9_v1 }
   0x9   :  { %v17_v2 = vld [vmem:[#allocation1 + $0x1] ss:$8 sm:%s16_s0]   ;;  %v12_v3 = vld [vmem:[#allocation1] ss:$8 sm:%s11_s10]  }
   0xa   :  { %18 = vrot.lane.b32.xlu0 %v17_v2, %s32_s11  ;;  %14 = vst.msk [vmem:[#allocation0] sm:$0x3] %vm13_vm0, %v12_v3  }
  0x7c   :  { %v19_v4 = vpop.permute.xlu0 %18  }
  0x7d   :  { %21 = vst.msk [vmem:[#allocation0] sm:$0x3] %vm20_vm1, %v19_v4  }
  0x84   :  { %v26_v5 = vld [vmem:[#allocation0] sm:$0x3] }
  0x85   :  { %29 = vst [vmem:[%s53_s1] sm:$0x3] %v26_v5 }

// kernel: crvae_forward_train.2
= control target key start
LH: loop header
LB: loop body
LE: loop exit
PB: predicated region body
PF: predicated region fallthrough
CT: control target
= control target key end

     0   :  { %vm99_vm0 = vcmask 1043456   ;;  %v1695_v0 = vmov 0.0   ;;  %vm1696_vm1 = vmmov 0   ;;  %v1697_v4 = vmov 1983009808   ;;  %s1698_s12 = smov 80   ;;  %s2013_s1 = inlined_call_operand.vmem [shape: f32[4,48], index: 1, kind: input, shape index: {}]   ;;  %s2014_s0 = inlined_call_operand.vmem [shape: f32[10,2,4], index: 0, kind: input, shape index: {}]   ;;  %s2015_s3 = inlined_call_operand.vmem [shape: f32[1,64], index: 3, kind: input, shape index: {}]   ;;  %s2016_s2 = inlined_call_operand.vmem [shape: f32[16,48], index: 2, kind: input, shape index: {}]   ;;  %s2017_s4 = inlined_call_operand.vmem [shape: f32[16,32], index: 4, kind: input, shape index: {}]   ;;  %s2018_s6 = inlined_call_operand.vmem [shape: f32[2,16], index: 6, kind: input, shape index: {}]   ;;  %s2019_s5 = inlined_call_operand.vmem [shape: f32[1,32], index: 5, kind: input, shape index: {}]   ;;  %s2020_s7 = inlined_call_operand.vmem [shape: f32[2,48], index: 7, kind: output, shape index: {}]  }
   0x1   :  { %1544 = vmatprep.subr.mxu0 %v1695_v0  ;;  %v39_v1 = vld [vmem:[%s2013_s1] sm:$0xf]  ;;  %1546 = vmatprep.mubr.msk.f32.mxu0 %vm1696_vm1, %v1695_v0  ;;  %v53_v5 = vunpack.c.l.s4 %v1697_v4  ;;  %v55_v6 = vlaneseq  ;;  %v31_v7 = vld [vmem:[%s2014_s0 + $0x4] sm:$0x3]  ;;  %v32_v8 = vld [vmem:[%s2014_s0 + $0x6] sm:$0x3] }
   0x2   :  { %v29_v2 = vld [vmem:[%s2014_s0] sm:$0x3]  ;;  %v30_v3 = vld [vmem:[%s2014_s0 + $0x2] sm:$0x3]  ;;  %1545 = vmatpush3.msk.msra.mxu0 %vm99_vm0, %v39_v1  ;;  %1555 = vmatprep.subr.mxu1 %v1695_v0  ;;  %v51_v10 = vcombine.low %v31_v7, %v32_v8  ;;  %vm92_vm2 = vcmask 31744   ;;  %s1700_s13 = smov 112  }
   0x3   :  { %v50_v9 = vcombine.low %v29_v2, %v30_v3  ;;  %v54_v11 = vunpack.c.0.s8 %v53_v5  ;;  %v56_v12 = vshrl.u32 %v55_v6, 7  ;;  %1559 = vmatprep.mubr.msk.f32.mxu1 %vm1696_vm1, %v1695_v0  ;;  %1576 = vmatprep.subr.mxu0 %v1695_v0  ;;  %v1768_v13 = vld [vmem:[%s2015_s3] ss:$0 sm:$0xff]  ;;  %s1699_s3 = smov 32   ;;  %v1790_v31 = vld [vmem:[%s2016_s2 + $0x8] sm:$0xff]  ;;  %vm284_vm3 = vcmask 130048  }
   0x4   :  { %v1795_v32 = vld [vmem:[%s2016_s2] sm:$0xff]  ;;  %1556 = vmatpush3.msra.mxu1 %v1790_v31  ;;  %s1701_s2 = smov 96   ;;  %s1702_s18 = smov 16   ;;  %vm1476_vm4 = vcmask 261120   ;;  %vm1478_vm5 = vcmask 386048  }
   0x5   :  { %v1770_v14 = vsub.s32 %v54_v11, %v56_v12  ;;  %1557 = vmatprep.subr.mxu1 %v1695_v0 }
   0x6   :  { %1558 = vmatpush3.msra.mxu1 %v1795_v32 }
   0x7   :  { %v58_v15 = vrot.slane %v50_v9, %v1770_v14  ;;  %v65_v16 = vrot.slane %v51_v10, %v1770_v14  ;;  %v257_v17 = vrot.slane %v1768_v13, %v1770_v14  ;;  %1562 = vmatprep.subr.mxu1 %v1695_v0 }
   0x9   :  { %v66_v18 = vcombine.low %v58_v15, %v65_v16  ;;  %258 = vrot.lane.b32.xlu0 %v257_v17, %s1698_s12 }
   0xb   :  { %1547 = vmatmul.mubr.msk.f32.vlgmr.msra.gmra.mxu0 %vm92_vm2, %v66_v18 }
   0xc   :  { %1549 = vmatprep.mubr.msk.f32.mxu0 %vm1696_vm1, %v1695_v0  ;;  %1577 = vmatpush3.msra.mxu0 %v1790_v31 }
   0xd   :  { %1578 = vmatprep.subr.mxu0 %v1695_v0 }
   0xe   :  { %1579 = vmatpush3.msra.mxu0 %v1795_v32 }
   0xf   :  { %1590 = vmatprep.subr.mxu0 %v1695_v0 }
  0x7b   :  { %v259_v26 = vpop.permute.xlu0 %258 }
  0xcb   :  { %v1779_v19 = vpop.f32.mrf.mxu0 }
  0xcc   :  { %v193_v20 = vrot.slane %v1779_v19, %v1770_v14  ;;  %v186_v5 = vcombine.high %v1779_v19, %v1779_v19 }
  0xcd   :  { %v1548_v21 = vpop.f32.mrf.mxu0 }
  0xce   :  { %v244_v22 = vadd.f32 %v1768_v13, %v193_v20  ;;  %v201_v44 = vcombine.high %v193_v20, %v193_v20  ;;  %v200_v6 = vrot.slane %v186_v5, %v1770_v14 }
  0xd0   :  { %v1489_v23 = vmul.f32 -1.442695, %v244_v22  ;;  %v365_v53 = vadd.f32 %v1768_v13, %v201_v44  ;;  %v489_v17 = vadd.f32 %v1768_v13, %v200_v6 }
  0xd2   :  { %1633 = vpow2.f32 %v1489_v23 }
  0xdf   :  { %v1634_v24 = vpop.eup %1633 }
  0xe0   :  { %v248_v25 = vadd.f32 1.0, %v1634_v24 }
  0xe2   :  { %1635 = vrcp.f32 %v248_v25 }
  0xef   :  { %v1636_v27 = vpop.eup %1635 }
  0xf0   :  { %v261_v28 = vmul.f32 %v1636_v27, %v259_v26  ;;  %v268_v34 = vsub.f32 1.0, %v1636_v27 }
  0xf2   :  { %263 = vrot.lane.b32.xlu0 %v261_v28, %s1699_s3 }
  0xf6   :  { %366 = vrot.lane.b32.xlu0 %v1768_v13, %s1700_s13 }
 0x164   :  { %v264_v29 = vpop.permute.xlu0 %263 }
 0x165   :  { %v266_v30 = vadd.f32 %v264_v29, %v244_v22 }
 0x167   :  { %1637 = vtanh.f32 %v266_v30 }
 0x168   :  { %v1815_v39 = vpop.permute.xlu0 %366 }
 0x174   :  { %v1638_v33 = vpop.eup %1637 }
 0x175   :  { %270 = vrot.lane.b32.xlu1 %v1638_v33, %s1700_s13 }
 0x1e7   :  { %v271_v35 = vpop.permute.xlu1 %270 }
 0x1e8   :  { %v273_v36 = vmul.f32 %v271_v35, %v268_v34  ;;  %v202_v34 = vcombine.high %v200_v6, %v200_v6 }
 0x1ea   :  { %v281_v37 = vrot.slane %v273_v36, %v1770_v14 }
 0x1ec   :  { %282 = vrot.lane.b32.xlu1 %v281_v37, %s1700_s13 }
 0x25e   :  { %v283_v38 = vpop.permute.xlu1 %282 }
 0x25f   :  { %1560 = vmatmul.mubr.msk.f32.vlgmr.msra.gmra.mxu1 %vm284_vm3, %v283_v38 }
 0x260   :  { %1563 = vmatpush3.msra.mxu1 %v1790_v31  ;;  %1566 = vmatprep.mubr.msk.f32.mxu1 %vm1696_vm1, %v1695_v0 }
 0x261   :  { %1564 = vmatprep.subr.mxu1 %v1695_v0 }
 0x262   :  { %1565 = vmatpush3.msra.mxu1 %v1795_v32 }
 0x263   :  { %1569 = vmatprep.subr.mxu1 %v1695_v0 }
 0x31f   :  { %v353_v40 = vpop.f32.mrf.mxu1 }
 0x320   :  { %v369_v41 = vadd.f32 %v1815_v39, %v353_v40  ;;  %v357_v45 = vadd.f32 %v353_v40, %v201_v44  ;;  %v610_v44 = vadd.f32 %v1768_v13, %v202_v34 }
 0x321   :  { %v1561_v42 = vpop.f32.mrf.mxu1 }
 0x322   :  { %v377_v43 = vrot.slane %v369_v41, %v1770_v14  ;;  %v358_v46 = vadd.f32 %v1768_v13, %v357_v45 }
 0x324   :  { %378 = vrot.lane.b32.xlu1 %v377_v43, %s1701_s2  ;;  %v1491_v47 = vmul.f32 -1.442695, %v358_v46 }
 0x326   :  { %1639 = vpow2.f32 %v1491_v47 }
 0x333   :  { %v1640_v48 = vpop.eup %1639 }
 0x334   :  { %v362_v49 = vadd.f32 1.0, %v1640_v48 }
 0x336   :  { %1641 = vrcp.f32 %v362_v49  ;;  %v33_v49 = vld [vmem:[%s2014_s0 + $0x8] sm:$0x3] }
 0x343   :  { %v1642_v50 = vpop.eup %1641 }
 0x396   :  { %v379_v51 = vpop.permute.xlu1 %378 }
 0x397   :  { %v381_v52 = vmul.f32 %v1642_v50, %v379_v51  ;;  %v35_v51 = vld [vmem:[%s2014_s0 + $0xc] sm:$0x3] }
 0x399   :  { %383 = vrot.lane.b32.xlu0 %v381_v52, %s1699_s3  ;;  %v36_v52 = vld [vmem:[%s2014_s0 + $0xe] sm:$0x3] }
 0x40b   :  { %v384_v54 = vpop.permute.xlu0 %383 }
 0x40c   :  { %v386_v55 = vadd.f32 %v384_v54, %v365_v53  ;;  %v37_v54 = vld [vmem:[%s2014_s0 + $0x10] sm:$0x3] }
 0x40e   :  { %1643 = vtanh.f32 %v386_v55  ;;  %v38_v55 = vld [vmem:[%s2014_s0 + $0x12] sm:$0x3] }
 0x41b   :  { %v1644_v56 = vpop.eup %1643 }
 0x41c   :  { %389 = vrot.lane.b32.xlu1 %v1644_v56, %s1700_s13 }
 0x48e   :  { %v390_v57 = vpop.permute.xlu1 %389 }
 0x48f   :  { %v392_v58 = vsub.f32 %v273_v36, %v390_v57 }
 0x491   :  { %v393_v59 = vmul.f32 %v1642_v50, %v392_v58  ;;  %v34_v50 = vld [vmem:[%s2014_s0 + $0xa] sm:$0x3] }
 0x492   :  { %v67_v53 = vcombine.low %v33_v49, %v34_v50 }
 0x493   :  { %395 = vrot.lane.b32.xlu0 %v393_v59, %s1702_s18  ;;  %v84_v59 = vcombine.low %v37_v54, %v38_v55 }
 0x494   :  { %v75_v57 = vrot.slane %v67_v53, %v1770_v14 }
 0x505   :  { %v396_v60 = vpop.permute.xlu0 %395 }
 0x506   :  { %v398_v61 = vadd.f32 %v1644_v56, %v396_v60  ;;  %v68_v56 = vcombine.low %v35_v51, %v36_v52 }
 0x508   :  { %v406_v62 = vrot.slane %v398_v61, %v1770_v14  ;;  %v82_v58 = vrot.slane %v68_v56, %v1770_v14 }
 0x50a   :  { %407 = vrot.lane.b32.xlu1 %v406_v62, %s1701_s2 }
 0x57c   :  { %v408_v63 = vpop.permute.xlu1 %407 }
 0x57d   :  { %1567 = vmatmul.mubr.msk.f32.vlgmr.msra.gmra.mxu1 %vm284_vm3, %v408_v63  ;;  %v91_v63 = vrot.slane %v84_v59, %v1770_v14 }
 0x57e   :  { %1570 = vmatpush3.msra.mxu1 %v1790_v31  ;;  %1573 = vmatprep.mubr.msk.f32.mxu1 %vm1696_vm1, %v1695_v0 }
 0x57f   :  { %1571 = vmatprep.subr.mxu1 %v1695_v0 }
 0x580   :  { %1572 = vmatpush3.msra.mxu1 %v1795_v32 }
 0x581   :  { %1583 = vmatprep.subr.mxu1 %v1695_v0 }
 0x63d   :  { %v477_v1 = vpop.f32.mrf.mxu1 }
 0x63e   :  { %v490_v2 = vadd.f32 %v477_v1, %v1815_v39  ;;  %v481_v7 = vadd.f32 %v477_v1, %v200_v6 }
 0x63f   :  { %v1568_v3 = vpop.f32.mrf.mxu1 }
 0x640   :  { %v498_v4 = vrot.slane %v490_v2, %v1770_v14  ;;  %v482_v8 = vadd.f32 %v1768_v13, %v481_v7 }
 0x642   :  { %499 = vrot.lane.b32.xlu0 %v498_v4, %s1701_s2  ;;  %v1493_v9 = vmul.f32 -1.442695, %v482_v8 }
 0x644   :  { %1645 = vpow2.f32 %v1493_v9 }
 0x651   :  { %v1646_v10 = vpop.eup %1645 }
 0x652   :  { %v486_v11 = vadd.f32 1.0, %v1646_v10 }
 0x654   :  { %1647 = vrcp.f32 %v486_v11 }
 0x661   :  { %v1648_v12 = vpop.eup %1647 }
 0x6b4   :  { %v500_v15 = vpop.permute.xlu0 %499 }
 0x6b5   :  { %v502_v16 = vmul.f32 %v1648_v12, %v500_v15 }
 0x6b7   :  { %504 = vrot.lane.b32.xlu1 %v502_v16, %s1699_s3 }
 0x729   :  { %v505_v18 = vpop.permute.xlu1 %504 }
 0x72a   :  { %v507_v20 = vadd.f32 %v505_v18, %v489_v17 }
 0x72c   :  { %1649 = vtanh.f32 %v507_v20 }
 0x739   :  { %v1650_v19 = vpop.eup %1649 }
 0x73a   :  { %v509_v21 = vsub.f32 %v398_v61, %v1650_v19  ;;  %v83_v61 = vcombine.low %v75_v57, %v82_v58 }
 0x73c   :  { %511 = vrot.lane.b32.xlu0 %v509_v21, %s1700_s13  ;;  %1550 = vmatmul.mubr.msk.f32.gmra.mxu0 %vm92_vm2, %v83_v61 }
 0x73d   :  { %1552 = vmatprep.mubr.msk.f32.mxu0 %vm1696_vm1, %v1695_v0 }
 0x740   :  { %1553 = vmatmul.mubr.msk.f32.gmra.mxu0 %vm92_vm2, %v91_v63 }
 0x741   :  { %1580 = vmatprep.mubr.msk.f32.mxu0 %vm1696_vm1, %v1695_v0 }
 0x7ae   :  { %v512_v22 = vpop.permute.xlu0 %511 }
 0x7af   :  { %v514_v23 = vmul.f32 %v1648_v12, %v512_v22 }
 0x7b1   :  { %516 = vrot.lane.b32.xlu1 %v514_v23, %s1702_s18 }
 0x7fc   :  { %v1891_v4 = vpop.f32.mrf.mxu0 }
 0x7fd   :  { %v210_v15 = vrot.slane %v1891_v4, %v1770_v14 }
 0x7fe   :  { %v1551_v5 = vpop.f32.mrf.mxu0 }
 0x800   :  { %v1893_v6 = vpop.f32.mrf.mxu0 }
 0x802   :  { %v1554_v7 = vpop.f32.mrf.mxu0 }
 0x823   :  { %v517_v24 = vpop.permute.xlu1 %516 }
 0x824   :  { %v519_v25 = vadd.f32 %v1650_v19, %v517_v24  ;;  %v731_v24 = vadd.f32 %v1768_v13, %v210_v15 }
 0x826   :  { %v527_v26 = vrot.slane %v519_v25, %v1770_v14 }
 0x828   :  { %528 = vrot.lane.b32.xlu0 %v527_v26, %s1701_s2 }
 0x89a   :  { %v529_v27 = vpop.permute.xlu0 %528 }
 0x89b   :  { %1574 = vmatmul.mubr.msk.f32.vlgmr.msra.gmra.mxu1 %vm284_vm3, %v529_v27 }
 0x89c   :  { %1584 = vmatpush3.msra.mxu1 %v1790_v31  ;;  %1587 = vmatprep.mubr.msk.f32.mxu1 %vm1696_vm1, %v1695_v0 }
 0x89d   :  { %1585 = vmatprep.subr.mxu1 %v1695_v0 }
 0x89e   :  { %1586 = vmatpush3.msra.mxu1 %v1795_v32 }
 0x89f   :  { %1597 = vmatprep.subr.mxu1 %v1695_v0 }
 0x95b   :  { %v598_v28 = vpop.f32.mrf.mxu1 }
 0x95c   :  { %v611_v29 = vadd.f32 %v598_v28, %v1815_v39  ;;  %v602_v35 = vadd.f32 %v598_v28, %v202_v34 }
 0x95d   :  { %v1575_v30 = vpop.f32.mrf.mxu1 }
 0x95e   :  { %v619_v33 = vrot.slane %v611_v29, %v1770_v14  ;;  %v603_v36 = vadd.f32 %v1768_v13, %v602_v35 }
 0x960   :  { %620 = vrot.lane.b32.xlu1 %v619_v33, %s1701_s2  ;;  %v1495_v37 = vmul.f32 -1.442695, %v603_v36 }
 0x962   :  { %1651 = vpow2.f32 %v1495_v37 }
 0x96f   :  { %v1652_v38 = vpop.eup %1651 }
 0x970   :  { %v607_v40 = vadd.f32 1.0, %v1652_v38 }
 0x972   :  { %1653 = vrcp.f32 %v607_v40 }
 0x97f   :  { %v1654_v41 = vpop.eup %1653 }
 0x9d2   :  { %v621_v42 = vpop.permute.xlu1 %620 }
 0x9d3   :  { %v623_v43 = vmul.f32 %v1654_v41, %v621_v42  ;;  %v218_v42 = vcombine.high %v210_v15, %v210_v15 }
 0x9d5   :  { %625 = vrot.lane.b32.xlu0 %v623_v43, %s1699_s3  ;;  %v852_v51 = vadd.f32 %v1768_v13, %v218_v42 }
 0xa47   :  { %v626_v45 = vpop.permute.xlu0 %625 }
 0xa48   :  { %v628_v46 = vadd.f32 %v626_v45, %v610_v44 }
 0xa4a   :  { %1655 = vtanh.f32 %v628_v46 }
 0xa57   :  { %v1656_v47 = vpop.eup %1655 }
 0xa58   :  { %v630_v48 = vsub.f32 %v519_v25, %v1656_v47 }
 0xa5a   :  { %632 = vrot.lane.b32.xlu1 %v630_v48, %s1700_s13 }
 0xacc   :  { %v633_v60 = vpop.permute.xlu1 %632 }
 0xacd   :  { %v635_v62 = vmul.f32 %v1654_v41, %v633_v60 }
 0xacf   :  { %637 = vrot.lane.b32.xlu0 %v635_v62, %s1702_s18 }
 0xb41   :  { %v638_v1 = vpop.permute.xlu0 %637 }
 0xb42   :  { %v640_v2 = vadd.f32 %v1656_v47, %v638_v1 }
 0xb44   :  { %v648_v3 = vrot.slane %v640_v2, %v1770_v14 }
 0xb46   :  { %649 = vrot.lane.b32.xlu1 %v648_v3, %s1701_s2  ;;  %v203_v3 = vcombine.high %v1891_v4, %v1891_v4 }
 0xb48   :  { %v217_v5 = vrot.slane %v203_v3, %v1770_v14 }
 0xbb8   :  { %v650_v8 = vpop.permute.xlu1 %649 }
 0xbb9   :  { %1581 = vmatmul.mubr.msk.f32.vlgmr.msra.gmra.mxu0 %vm284_vm3, %v650_v8 }
 0xbba   :  { %1591 = vmatpush3.msra.mxu0 %v1790_v31  ;;  %1594 = vmatprep.mubr.msk.f32.mxu0 %vm1696_vm1, %v1695_v0 }
 0xbbb   :  { %1592 = vmatprep.subr.mxu0 %v1695_v0 }
 0xbbc   :  { %1593 = vmatpush3.msra.mxu0 %v1795_v32 }
 0xbbd   :  { %1604 = vmatprep.subr.mxu0 %v1695_v0 }
 0xc79   :  { %v719_v9 = vpop.f32.mrf.mxu0 }
 0xc7a   :  { %v732_v10 = vadd.f32 %v719_v9, %v1815_v39  ;;  %v723_v16 = vadd.f32 %v719_v9, %v210_v15 }
 0xc7b   :  { %v1582_v11 = vpop.f32.mrf.mxu0 }
 0xc7c   :  { %v740_v12 = vrot.slane %v732_v10, %v1770_v14  ;;  %v724_v17 = vadd.f32 %v1768_v13, %v723_v16 }
 0xc7e   :  { %741 = vrot.lane.b32.xlu0 %v740_v12, %s1701_s2  ;;  %v1497_v18 = vmul.f32 -1.442695, %v724_v17  ;;  %v973_v17 = vadd.f32 %v1768_v13, %v217_v5 }
 0xc80   :  { %1657 = vpow2.f32 %v1497_v18 }
 0xc8d   :  { %v1658_v20 = vpop.eup %1657 }
 0xc8e   :  { %v728_v19 = vadd.f32 1.0, %v1658_v20 }
 0xc90   :  { %1659 = vrcp.f32 %v728_v19 }
 0xc9d   :  { %v1660_v21 = vpop.eup %1659 }
 0xcf0   :  { %v742_v22 = vpop.permute.xlu0 %741 }
 0xcf1   :  { %v744_v23 = vmul.f32 %v1660_v21, %v742_v22 }
 0xcf3   :  { %746 = vrot.lane.b32.xlu1 %v744_v23, %s1699_s3 }
 0xd65   :  { %v747_v25 = vpop.permute.xlu1 %746 }
 0xd66   :  { %v749_v26 = vadd.f32 %v747_v25, %v731_v24 }
 0xd68   :  { %1661 = vtanh.f32 %v749_v26 }
 0xd75   :  { %v1662_v27 = vpop.eup %1661 }
 0xd76   :  { %v751_v28 = vsub.f32 %v640_v2, %v1662_v27 }
 0xd78   :  { %753 = vrot.lane.b32.xlu0 %v751_v28, %s1700_s13 }
 0xdea   :  { %v754_v29 = vpop.permute.xlu0 %753 }
 0xdeb   :  { %v756_v30 = vmul.f32 %v1660_v21, %v754_v29 }
 0xded   :  { %758 = vrot.lane.b32.xlu1 %v756_v30, %s1702_s18 }
 0xe5f   :  { %v759_v33 = vpop.permute.xlu1 %758 }
 0xe60   :  { %v761_v34 = vadd.f32 %v1662_v27, %v759_v33  ;;  %v219_v33 = vcombine.high %v217_v5, %v217_v5 }
 0xe62   :  { %v769_v35 = vrot.slane %v761_v34, %v1770_v14 }
 0xe64   :  { %770 = vrot.lane.b32.xlu0 %v769_v35, %s1701_s2 }
 0xed6   :  { %v771_v36 = vpop.permute.xlu0 %770 }
 0xed7   :  { %1588 = vmatmul.mubr.msk.f32.vlgmr.msra.gmra.mxu1 %vm284_vm3, %v771_v36 }
 0xed8   :  { %1598 = vmatpush3.msra.mxu1 %v1790_v31  ;;  %1601 = vmatprep.mubr.msk.f32.mxu1 %vm1696_vm1, %v1695_v0 }
 0xed9   :  { %1599 = vmatprep.subr.mxu1 %v1695_v0 }
 0xeda   :  { %1600 = vmatpush3.msra.mxu1 %v1795_v32 }
 0xedb   :  { %1611 = vmatprep.subr.mxu1 %v1695_v0 }
 0xf97   :  { %v840_v37 = vpop.f32.mrf.mxu1 }
 0xf98   :  { %v853_v38 = vadd.f32 %v840_v37, %v1815_v39  ;;  %v844_v43 = vadd.f32 %v840_v37, %v218_v42 }
 0xf99   :  { %v1589_v40 = vpop.f32.mrf.mxu1 }
 0xf9a   :  { %v861_v41 = vrot.slane %v853_v38, %v1770_v14  ;;  %v845_v44 = vadd.f32 %v1768_v13, %v844_v43 }
 0xf9c   :  { %862 = vrot.lane.b32.xlu1 %v861_v41, %s1701_s2  ;;  %v1499_v45 = vmul.f32 -1.442695, %v845_v44  ;;  %v1094_v41 = vadd.f32 %v1768_v13, %v219_v33 }
 0xf9e   :  { %1663 = vpow2.f32 %v1499_v45 }
 0xfab   :  { %v1664_v46 = vpop.eup %1663 }
 0xfac   :  { %v849_v47 = vadd.f32 1.0, %v1664_v46 }
 0xfae   :  { %1665 = vrcp.f32 %v849_v47 }
 0xfbb   :  { %v1666_v48 = vpop.eup %1665 }
0x100e   :  { %v863_v49 = vpop.permute.xlu1 %862 }
0x100f   :  { %v865_v50 = vmul.f32 %v1666_v48, %v863_v49 }
0x1011   :  { %867 = vrot.lane.b32.xlu0 %v865_v50, %s1699_s3 }
0x1083   :  { %v868_v52 = vpop.permute.xlu0 %867 }
0x1084   :  { %v870_v53 = vadd.f32 %v868_v52, %v852_v51 }
0x1086   :  { %1667 = vtanh.f32 %v870_v53 }
0x1093   :  { %v1668_v54 = vpop.eup %1667 }
0x1094   :  { %v872_v55 = vsub.f32 %v761_v34, %v1668_v54 }
0x1096   :  { %874 = vrot.lane.b32.xlu1 %v872_v55, %s1700_s13 }
0x1108   :  { %v875_v56 = vpop.permute.xlu1 %874 }
0x1109   :  { %v877_v57 = vmul.f32 %v1666_v48, %v875_v56  ;;  %v226_v56 = vrot.slane %v1893_v6, %v1770_v14 }
0x110b   :  { %879 = vrot.lane.b32.xlu0 %v877_v57, %s1702_s18 }
0x117d   :  { %v880_v58 = vpop.permute.xlu0 %879 }
0x117e   :  { %v882_v59 = vadd.f32 %v1668_v54, %v880_v58 }
0x1180   :  { %v890_v60 = vrot.slane %v882_v59, %v1770_v14 }
0x1182   :  { %891 = vrot.lane.b32.xlu1 %v890_v60, %s1701_s2 }
0x11f4   :  { %v892_v61 = vpop.permute.xlu1 %891 }
0x11f5   :  { %1595 = vmatmul.mubr.msk.f32.vlgmr.msra.gmra.mxu0 %vm284_vm3, %v892_v61 }
0x11f6   :  { %1605 = vmatpush3.msra.mxu0 %v1790_v31  ;;  %1608 = vmatprep.mubr.msk.f32.mxu0 %vm1696_vm1, %v1695_v0 }
0x11f7   :  { %1606 = vmatprep.subr.mxu0 %v1695_v0 }
0x11f8   :  { %1607 = vmatpush3.msra.mxu0 %v1795_v32 }
0x11f9   :  { %1618 = vmatprep.subr.mxu0 %v1695_v0 }
0x12b5   :  { %v961_v62 = vpop.f32.mrf.mxu0 }
0x12b6   :  { %v974_v63 = vadd.f32 %v961_v62, %v1815_v39  ;;  %v965_v7 = vadd.f32 %v961_v62, %v217_v5 }
0x12b7   :  { %v1596_v1 = vpop.f32.mrf.mxu0 }
0x12b8   :  { %v982_v2 = vrot.slane %v974_v63, %v1770_v14  ;;  %v966_v8 = vadd.f32 %v1768_v13, %v965_v7 }
0x12ba   :  { %983 = vrot.lane.b32.xlu0 %v982_v2, %s1701_s2  ;;  %v1501_v9 = vmul.f32 -1.442695, %v966_v8  ;;  %v1215_v2 = vadd.f32 %v1768_v13, %v226_v56 }
0x12bc   :  { %1669 = vpow2.f32 %v1501_v9 }
0x12c9   :  { %v1670_v10 = vpop.eup %1669 }
0x12ca   :  { %v970_v11 = vadd.f32 1.0, %v1670_v10 }
0x12cc   :  { %1671 = vrcp.f32 %v970_v11 }
0x12d9   :  { %v1672_v12 = vpop.eup %1671 }
0x132c   :  { %v984_v15 = vpop.permute.xlu0 %983 }
0x132d   :  { %v986_v16 = vmul.f32 %v1672_v12, %v984_v15 }
0x132f   :  { %988 = vrot.lane.b32.xlu1 %v986_v16, %s1699_s3 }
0x13a1   :  { %v989_v18 = vpop.permute.xlu1 %988 }
0x13a2   :  { %v991_v20 = vadd.f32 %v989_v18, %v973_v17 }
0x13a4   :  { %1673 = vtanh.f32 %v991_v20 }
0x13b1   :  { %v1674_v4 = vpop.eup %1673 }
0x13b2   :  { %v993_v19 = vsub.f32 %v882_v59, %v1674_v4 }
0x13b4   :  { %995 = vrot.lane.b32.xlu0 %v993_v19, %s1700_s13 }
0x1426   :  { %v996_v21 = vpop.permute.xlu0 %995 }
0x1427   :  { %v998_v22 = vmul.f32 %v1672_v12, %v996_v21 }
0x1429   :  { %1000 = vrot.lane.b32.xlu1 %v998_v22, %s1702_s18 }
0x149b   :  { %v1001_v23 = vpop.permute.xlu1 %1000 }
0x149c   :  { %v1003_v24 = vadd.f32 %v1674_v4, %v1001_v23  ;;  %v227_v4 = vcombine.high %v226_v56, %v226_v56 }
0x149e   :  { %v1011_v25 = vrot.slane %v1003_v24, %v1770_v14 }
0x14a0   :  { %1012 = vrot.lane.b32.xlu0 %v1011_v25, %s1701_s2 }
0x1512   :  { %v1013_v26 = vpop.permute.xlu0 %1012 }
0x1513   :  { %1602 = vmatmul.mubr.msk.f32.vlgmr.msra.gmra.mxu1 %vm284_vm3, %v1013_v26 }
0x1514   :  { %1612 = vmatpush3.msra.mxu1 %v1790_v31  ;;  %1615 = vmatprep.mubr.msk.f32.mxu1 %vm1696_vm1, %v1695_v0 }
0x1515   :  { %1613 = vmatprep.subr.mxu1 %v1695_v0 }
0x1516   :  { %1614 = vmatpush3.msra.mxu1 %v1795_v32 }
0x15d3   :  { %v1082_v27 = vpop.f32.mrf.mxu1 }
0x15d4   :  { %v1095_v28 = vadd.f32 %v1082_v27, %v1815_v39  ;;  %v1086_v34 = vadd.f32 %v1082_v27, %v219_v33 }
0x15d5   :  { %v1603_v29 = vpop.f32.mrf.mxu1 }
0x15d6   :  { %v1103_v30 = vrot.slane %v1095_v28, %v1770_v14  ;;  %v1087_v35 = vadd.f32 %v1768_v13, %v1086_v34  ;;  %v1368_v34 = vld [vmem:[%s2017_s4 + $0x8] sm:$0xff] }
0x15d8   :  { %1104 = vrot.lane.b32.xlu1 %v1103_v30, %s1701_s2  ;;  %v1503_v31 = vmul.f32 -1.442695, %v1087_v35  ;;  %v1367_v35 = vld [vmem:[%s2017_s4] sm:$0xff] }
0x15da   :  { %1675 = vpow2.f32 %v1503_v31 }
0x15e7   :  { %v1676_v36 = vpop.eup %1675 }
0x15e8   :  { %v1091_v37 = vadd.f32 1.0, %v1676_v36  ;;  %v1461_v36 = vld [vmem:[%s2018_s6] sm:$0x3] }
0x15ea   :  { %1677 = vrcp.f32 %v1091_v37 }
0x15f7   :  { %v1678_v38 = vpop.eup %1677 }
0x164a   :  { %v1105_v40 = vpop.permute.xlu1 %1104 }
0x164b   :  { %v1107_v32 = vmul.f32 %v1678_v38, %v1105_v40 }
0x164d   :  { %1109 = vrot.lane.b32.xlu0 %v1107_v32, %s1699_s3 }
0x16bf   :  { %v1110_v42 = vpop.permute.xlu0 %1109 }
0x16c0   :  { %v1112_v43 = vadd.f32 %v1110_v42, %v1094_v41 }
0x16c2   :  { %1679 = vtanh.f32 %v1112_v43 }
0x16cf   :  { %v1680_v44 = vpop.eup %1679 }
0x16d0   :  { %v1114_v45 = vsub.f32 %v1003_v24, %v1680_v44 }
0x16d2   :  { %1116 = vrot.lane.b32.xlu1 %v1114_v45, %s1700_s13 }
0x1744   :  { %v1117_v46 = vpop.permute.xlu1 %1116 }
0x1745   :  { %v1119_v47 = vmul.f32 %v1678_v38, %v1117_v46 }
0x1747   :  { %1121 = vrot.lane.b32.xlu0 %v1119_v47, %s1702_s18 }
0x17b9   :  { %v1122_v48 = vpop.permute.xlu0 %1121 }
0x17ba   :  { %v1124_v49 = vadd.f32 %v1680_v44, %v1122_v48 }
0x17bc   :  { %v1132_v50 = vrot.slane %v1124_v49, %v1770_v14 }
0x17be   :  { %1133 = vrot.lane.b32.xlu1 %v1132_v50, %s1701_s2 }
0x1830   :  { %v1134_v51 = vpop.permute.xlu1 %1133 }
0x1831   :  { %1609 = vmatmul.mubr.msk.f32.vlgmr.msra.gmra.mxu0 %vm284_vm3, %v1134_v51 }
0x1832   :  { %1622 = vmatprep.mubr.msk.f32.mxu0 %vm1696_vm1, %v1695_v0  ;;  %1619 = vmatpush3.msra.mxu0 %v1368_v34 }
0x1833   :  { %1620 = vmatprep.subr.mxu0 %v1695_v0  ;;  %v1508_v0 = vld [vmem:[%s2019_s5] ss:$0 sm:$0xff] }
0x1834   :  { %1621 = vmatpush3.msra.mxu0 %v1367_v35 }
0x18f1   :  { %v1203_v52 = vpop.f32.mrf.mxu0 }
0x18f2   :  { %v1216_v53 = vadd.f32 %v1203_v52, %v1815_v39  ;;  %v1207_v57 = vadd.f32 %v1203_v52, %v226_v56 }
0x18f3   :  { %v1610_v54 = vpop.f32.mrf.mxu0 }
0x18f4   :  { %v1224_v55 = vrot.slane %v1216_v53, %v1770_v14  ;;  %v1208_v58 = vadd.f32 %v1768_v13, %v1207_v57 }
0x18f6   :  { %1225 = vrot.lane.b32.xlu0 %v1224_v55, %s1701_s2  ;;  %v1505_v59 = vmul.f32 -1.442695, %v1208_v58 }
0x18f8   :  { %1681 = vpow2.f32 %v1505_v59 }
0x1905   :  { %v1682_v60 = vpop.eup %1681 }
0x1906   :  { %v1212_v61 = vadd.f32 1.0, %v1682_v60 }
0x1908   :  { %1683 = vrcp.f32 %v1212_v61 }
0x1915   :  { %v1684_v62 = vpop.eup %1683 }
0x1968   :  { %v1226_v63 = vpop.permute.xlu0 %1225 }
0x1969   :  { %v1228_v1 = vmul.f32 %v1684_v62, %v1226_v63 }
0x196b   :  { %1230 = vrot.lane.b32.xlu1 %v1228_v1, %s1699_s3 }
0x19dd   :  { %v1231_v3 = vpop.permute.xlu1 %1230 }
0x19de   :  { %v1233_v5 = vadd.f32 %v1231_v3, %v1215_v2 }
0x19e0   :  { %1685 = vtanh.f32 %v1233_v5 }
0x19ed   :  { %v1686_v7 = vpop.eup %1685 }
0x19ee   :  { %v1235_v6 = vsub.f32 %v1124_v49, %v1686_v7 }
0x19f0   :  { %1237 = vrot.lane.b32.xlu0 %v1235_v6, %s1700_s13 }
0x1a62   :  { %v1238_v8 = vpop.permute.xlu0 %1237 }
0x1a63   :  { %v1240_v9 = vmul.f32 %v1684_v62, %v1238_v8 }
0x1a65   :  { %1242 = vrot.lane.b32.xlu1 %v1240_v9, %s1702_s18 }
0x1ad7   :  { %v1243_v10 = vpop.permute.xlu1 %1242 }
0x1ad8   :  { %v1245_v11 = vadd.f32 %v1686_v7, %v1243_v10 }
0x1ada   :  { %v1253_v12 = vrot.slane %v1245_v11, %v1770_v14 }
0x1adc   :  { %1254 = vrot.lane.b32.xlu0 %v1253_v12, %s1701_s2 }
0x1b4e   :  { %v1255_v15 = vpop.permute.xlu0 %1254 }
0x1b4f   :  { %1616 = vmatmul.mubr.msk.f32.vlgmr.msra.gmra.mxu1 %vm284_vm3, %v1255_v15 }
0x1c0f   :  { %v1324_v16 = vpop.f32.mrf.mxu1 }
0x1c10   :  { %v1337_v17 = vadd.f32 %v1324_v16, %v1815_v39  ;;  %v1328_v19 = vadd.f32 %v1324_v16, %v227_v4  ;;  %v1336_v39 = vadd.f32 %v1768_v13, %v227_v4 }
0x1c11   :  { %v1617_v18 = vpop.f32.mrf.mxu1 }
0x1c12   :  { %v1345_v20 = vrot.slane %v1337_v17, %v1770_v14  ;;  %v1329_v21 = vadd.f32 %v1768_v13, %v1328_v19 }
0x1c14   :  { %1346 = vrot.lane.b32.xlu1 %v1345_v20, %s1701_s2  ;;  %v1507_v22 = vmul.f32 -1.442695, %v1329_v21 }
0x1c16   :  { %1687 = vpow2.f32 %v1507_v22 }
0x1c23   :  { %v1688_v23 = vpop.eup %1687 }
0x1c24   :  { %v1333_v24 = vadd.f32 1.0, %v1688_v23 }
0x1c26   :  { %1689 = vrcp.f32 %v1333_v24 }
0x1c33   :  { %v1690_v25 = vpop.eup %1689 }
0x1c86   :  { %v1347_v26 = vpop.permute.xlu1 %1346 }
0x1c87   :  { %v1349_v27 = vmul.f32 %v1690_v25, %v1347_v26 }
0x1c89   :  { %1351 = vrot.lane.b32.xlu0 %v1349_v27, %s1699_s3 }
0x1cfb   :  { %v1352_v28 = vpop.permute.xlu0 %1351 }
0x1cfc   :  { %v1354_v29 = vadd.f32 %v1352_v28, %v1336_v39 }
0x1cfe   :  { %1691 = vtanh.f32 %v1354_v29 }
0x1d0b   :  { %v1692_v30 = vpop.eup %1691 }
0x1d0c   :  { %v1356_v33 = vsub.f32 %v1245_v11, %v1692_v30 }
0x1d0e   :  { %1358 = vrot.lane.b32.xlu1 %v1356_v33, %s1700_s13 }
0x1d80   :  { %v1359_v13 = vpop.permute.xlu1 %1358 }
0x1d81   :  { %v1361_v31 = vmul.f32 %v1690_v25, %v1359_v13 }
0x1d83   :  { %1363 = vrot.lane.b32.xlu0 %v1361_v31, %s1702_s18 }
0x1d87   :  { %1463 = vrot.lane.b32.xlu0 %v1461_v36, %s1702_s18 }
0x1df5   :  { %v1364_v37 = vpop.permute.xlu0 %1363 }
0x1df6   :  { %v1366_v38 = vadd.f32 %v1692_v30, %v1364_v37 }
0x1df8   :  { %v1383_v40 = vrot.slane %v1366_v38, %v1770_v14 }
0x1df9   :  { %v1464_v46 = vpop.permute.xlu0 %1463 }
0x1dfa   :  { %1384 = vrot.lane.b32.xlu1 %v1383_v40, %s1701_s2 }
0x1e6c   :  { %v1385_v32 = vpop.permute.xlu1 %1384 }
0x1e6d   :  { %1623 = vmatmul.mubr.msk.f32.vlgmr.msra.gmra.mxu0 %vm284_vm3, %v1385_v32 }
0x1f2d   :  { %v1454_v41 = vpop.f32.mrf.mxu0 }
0x1f2e   :  { %v1455_v42 = vadd.f32 %v1508_v0, %v1454_v41 }
0x1f2f   :  { %v1624_v43 = vpop.f32.mrf.mxu0 }
0x1f30   :  { %v1458_v44 = vmul.f32 0.5, %v1455_v42 }
0x1f32   :  { %v1459_v45 = vmul.f32 1.442695, %v1458_v44 }
0x1f34   :  { %1693 = vpow2.f32 %v1459_v45 }
0x1f41   :  { %v1694_v47 = vpop.eup %1693 }
0x1f42   :  { %v1466_v48 = vmul.f32 %v1694_v47, %v1464_v46 }
0x1f44   :  { %1468 = vrot.lane.b32.xlu1 %v1466_v48, %s1700_s13 }
0x1fb6   :  { %v1469_v14 = vpop.permute.xlu1 %1468 }
0x1fb7   :  { %v1471_v49 = vadd.f32 %v1469_v14, %v1455_v42 }
0x1fb9   :  { %1473 = vrot.lane.b32.xlu0 %v1471_v49, %s1699_s3 }
0x202b   :  { %v1474_v50 = vpop.permute.xlu0 %1473 }
0x202c   :  { %v1477_v51 = vsel %vm1476_vm4, %v1455_v42, %v1474_v50 }
0x202d   :  { %1479 = vst.msk [vmem:[%s2020_s7] sm:$0x3] %vm1478_vm5, %v1477_v51 }

// kernel: crvae_forward_train.3
= control target key start
LH: loop header
LB: loop body
LE: loop exit
PB: predicated region body
PF: predicated region fallthrough
CT: control target
= control target key end

     0   :  { %s2525_s24 = smov 0   ;;  %s2927_s0 = inlined_call_operand.vmem [shape: f32[10,2,4], index: 0, kind: input, shape index: {}]   ;;  %s2928_s1 = inlined_call_operand.vmem [shape: f32[2,4,96], index: 1, kind: input, shape index: {}]   ;;  %s2929_s2 = inlined_call_operand.vmem [shape: f32[2,32,96], index: 2, kind: input, shape index: {}]   ;;  %s2930_s3 = inlined_call_operand.vmem [shape: f32[2,1,128], index: 3, kind: input, shape index: {}]   ;;  %s2931_s4 = inlined_call_operand.vmem [shape: f32[2,32,2], index: 4, kind: input, shape index: {}]   ;;  %s2932_s5 = inlined_call_operand.vmem [shape: f32[2,1,2], index: 5, kind: input, shape index: {}]   ;;  %s2933_s6 = inlined_call_operand.vmem [shape: f32[2,32], index: 6, kind: input, shape index: {}]   ;;  %s2934_s7 = inlined_call_operand.vmem [shape: f32[2,10,2,2], index: 7, kind: output, shape index: {}]  }
   0x1 LB: > { %s2150_s25 = sadd.s32 4294967295, %s2477_s24   ;;  %p2154_p0 = scmp.ge.s32.totalorder %s2477_s24, 1  ;;  %s2477_s24 = sphi %s2525_s24, %s17_s24  }
   0x2   : > { %p272_p1 = scmp.lt.s32.totalorder %s2477_s24, 3 }
   0x4   : > { %p273_p2 = pnand %p2154_p0, %p272_p1 }
   0x5   : > { %p319_p3 = scmp.lt.s32.totalorder (!%p273_p2), %s2150_s25, 1  ;;  %s2482_s9 = smov (!%p273_p2), 96  }
   0x6   : > { %276 = sbr.rel (%p273_p2) target bundleno = 8343 (0x2097), region = 48  ;;  %s2483_s12 = smov (!%p273_p2), 64  }
   0x7   : > { %s2484_s13 = smov (!%p273_p2), 32  }
   0xb   : > { %v349_v0 = vld [vmem:[%s2927_s0] sm:$0x3]  ;;  %v375_v1 = vlaneseq  ;;  %v2479_v2 = vmov 0.0   ;;  %vm2480_vm0 = vmmov 0   ;;  %v350_v3 = vld [vmem:[%s2927_s0 + $0x2] sm:$0x3] }
   0xc   : > { %2255 = vmatprep.subr.mxu0 %v2479_v2  ;;  %2257 = vmatprep.mubr.msk.f32.mxu0 %vm2480_vm0, %v2479_v2  ;;  %v351_v4 = vld [vmem:[%s2927_s0 + $0x4] sm:$0x3]  ;;  %v352_v5 = vld [vmem:[%s2927_s0 + $0x6] sm:$0x3]  ;;  %s2936_s25 = smov (!%p319_p3, %s2150_s25), 1  ;;  %vm419_vm1 = vcmask 1043456   ;;  %v370_v12 = vcombine.low %v349_v0, %v350_v3 }
   0xd   : > { %v353_v6 = vld [vmem:[%s2927_s0 + $0x8] sm:$0x3]  ;;  %2393 = vmatprep.subr.mxu1 %v2479_v2  ;;  %2263 = vmatprep.mubr.msk.f32.mxu1 %vm2480_vm0, %v2479_v2  ;;  %v2481_v7 = vmov 1983009808   ;;  %v376_v9 = vshrl.u32 %v375_v1, 7  ;;  %s2155_s17 = sshll.u32 %s2936_s25, 2  ;;  %v371_v14 = vcombine.low %v351_v4, %v352_v5  ;;  %s2574_s28 = scalar_lea.vmem %s2930_s3, %s2936_s25 }
   0xe   : > { %v373_v8 = vunpack.c.l.s4 %v2481_v7  ;;  %v354_v10 = vld [vmem:[%s2927_s0 + $0xa] sm:$0x3]  ;;  %v355_v11 = vld [vmem:[%s2927_s0 + $0xc] sm:$0x3]  ;;  %v356_v13 = vld [vmem:[%s2927_s0 + $0xe] sm:$0x3]  ;;  %s322_s22 = scalar_lea.vmem %s2928_s1, %s2155_s17 }
   0xf   : > { %s2192_s23 = sshll.u32 %s2936_s25, 5  ;;  %v387_v16 = vcombine.low %v353_v6, %v354_v10  ;;  %v388_v17 = vcombine.low %v355_v11, %v356_v13  ;;  %v359_v18 = vld [vmem:[%s322_s22] sm:$0xf]  ;;  %vm412_vm2 = vcmask 31744   ;;  %vm559_vm3 = vcmask 261120   ;;  %s2395_s26 = smul.u32 20, %s2936_s25 }
  0x10   : > { %v374_v15 = vunpack.c.0.s8 %v373_v8  ;;  %v2577_v19 = vld [vmem:[%s2574_s28] ss:$0 sm:$0xff]  ;;  %2256 = vmatpush3.msk.msra.mxu0 %vm419_vm1, %v359_v18  ;;  %2394 = vmatpush3.msk.msra.mxu1 %vm419_vm1, %v359_v18  ;;  %s327_s8 = scalar_lea.vmem %s2929_s2, %s2192_s23  ;;  %vm710_vm4 = vcmask 254976   ;;  %s335_s20 = scalar_lea.vmem %s2931_s4, %s2192_s23  ;;  %vm2042_vm5 = vcmask 9216  }
  0x11   : > { %2266 = vmatprep.subr.mxu0 %v2479_v2  ;;  %648 = vrot.lane.b32.xlu0 %v2577_v19, %s2482_s9  ;;  %v2594_v26 = vld [vmem:[%s327_s8 + $0x18] sm:$0xff]  ;;  %v2597_v27 = vld [vmem:[%s327_s8 + $0x10] sm:$0xff]  ;;  %v2603_v29 = vld [vmem:[%s327_s8 + $0x8] sm:$0xff]  ;;  %s338_s23 = scalar_lea.vmem %s2932_s5, %s2936_s25  ;;  %s2871_s30 = scalar_lea.vmem %s2934_s7, %s2395_s26 }
  0x12   : > { %v2579_v20 = vsub.s32 %v374_v15, %v376_v9  ;;  %2288 = vmatprep.subr.mxu1 %v2479_v2  ;;  %v2608_v30 = vld [vmem:[%s327_s8] sm:$0xff] }
  0x13   : > { %v558_v31 = vld [vmem:[%s2933_s6] sm:$0x3] }
  0x14   : > { %v378_v21 = vrot.slane %v370_v12, %v2579_v20  ;;  %v385_v22 = vrot.slane %v371_v14, %v2579_v20  ;;  %v395_v23 = vrot.slane %v387_v16, %v2579_v20  ;;  %v402_v24 = vrot.slane %v388_v17, %v2579_v20 }
  0x16   : > { %v386_v25 = vcombine.low %v378_v21, %v385_v22  ;;  %v403_v28 = vcombine.low %v395_v23, %v402_v24  ;;  %v357_v21 = vld [vmem:[%s2927_s0 + $0x10] sm:$0x3]  ;;  %v358_v22 = vld [vmem:[%s2927_s0 + $0x12] sm:$0x3] }
  0x17   : > { %v404_v23 = vcombine.low %v357_v21, %v358_v22 }
  0x18   : > { %2258 = vmatmul.mubr.msk.f32.vlgmr.msra.gmra.mxu0 %vm412_vm2, %v386_v25 }
  0x19   : > { %2267 = vmatpush3.msra.mxu0 %v2594_v26  ;;  %2260 = vmatprep.mubr.msk.f32.mxu0 %vm2480_vm0, %v2479_v2  ;;  %v411_v24 = vrot.slane %v404_v23, %v2579_v20 }
  0x1a   : > { %2268 = vmatprep.subr.mxu0 %v2479_v2 }
  0x1b   : > { %2269 = vmatpush3.msra.mxu0 %v2597_v27  ;;  %2264 = vmatmul.mubr.msk.f32.vlgmr.msra.gmra.mxu1 %vm412_vm2, %v411_v24 }
  0x1c   : > { %2270 = vmatprep.subr.mxu0 %v2479_v2  ;;  %2261 = vmatmul.mubr.msk.f32.gmra.mxu0 %vm412_vm2, %v403_v28 }
  0x1d   : > { %2271 = vmatpush3.msra.mxu0 %v2603_v29  ;;  %2274 = vmatprep.mubr.msk.f32.mxu0 %vm2480_vm0, %v2479_v2 }
  0x1e   : > { %2272 = vmatprep.subr.mxu0 %v2479_v2  ;;  %2289 = vmatpush3.msra.mxu1 %v2594_v26 }
  0x1f   : > { %2273 = vmatpush3.msra.mxu0 %v2608_v30  ;;  %2296 = vmatprep.mubr.msk.f32.mxu1 %vm2480_vm0, %v2479_v2 }
  0x20   : > { %2275 = vmatmul.mubr.msk.f32.vlgmr.msra.gmra.mxu0 %vm559_vm3, %v558_v31  ;;  %2277 = vmatprep.subr.mxu0 %v2479_v2 }
  0x21   : > { %2278 = vmatpush3.msra.mxu0 %v2594_v26  ;;  %2285 = vmatprep.mubr.msk.f32.mxu0 %vm2480_vm0, %v2479_v2 }
  0x22   : > { %2279 = vmatprep.subr.mxu0 %v2479_v2  ;;  %2290 = vmatprep.subr.mxu1 %v2479_v2 }
  0x23   : > { %2280 = vmatpush3.msra.mxu0 %v2597_v27  ;;  %2291 = vmatpush3.msra.mxu1 %v2597_v27 }
  0x24   : > { %2281 = vmatprep.subr.mxu0 %v2479_v2  ;;  %2292 = vmatprep.subr.mxu1 %v2479_v2 }
  0x25   : > { %2282 = vmatpush3.msra.mxu0 %v2603_v29  ;;  %2293 = vmatpush3.msra.mxu1 %v2603_v29 }
  0x26   : > { %2283 = vmatprep.subr.mxu0 %v2479_v2  ;;  %2294 = vmatprep.subr.mxu1 %v2479_v2 }
  0x27   : > { %2284 = vmatpush3.msra.mxu0 %v2608_v30  ;;  %2295 = vmatpush3.msra.mxu1 %v2608_v30 }
  0x28   : > { %2299 = vmatprep.subr.mxu0 %v2479_v2  ;;  %2310 = vmatprep.subr.mxu1 %v2479_v2 }
  0x83   : > { %v2634_v36 = vpop.permute.xlu0 %648 }
  0xd8   : > { %v2630_v32 = vpop.f32.mrf.mxu0 }
  0xd9   : > { %v513_v37 = vrot.slane %v2630_v32, %v2579_v20 }
  0xda   : > { %v2259_v33 = vpop.f32.mrf.mxu0 }
  0xdb   : > { %v647_v50 = vadd.f32 %v2577_v19, %v513_v37  ;;  %v521_v5 = vcombine.high %v513_v37, %v513_v37 }
  0xdc   : > { %v2632_v34 = vpop.f32.mrf.mxu0 }
  0xdd   : > { %v792_v14 = vadd.f32 %v2577_v19, %v521_v5 }
  0xde   : > { %v2262_v35 = vpop.f32.mrf.mxu0 }
  0xe0   : > { %v629_v38 = vpop.f32.mrf.mxu0 }
  0xe1   : > { %v633_v39 = vadd.f32 %v629_v38, %v513_v37  ;;  %v651_v40 = vadd.f32 %v2634_v36, %v629_v38  ;;  %v2691_v37 = vpop.f32.mrf.mxu1 }
  0xe2   : > { %v2276_v41 = vpop.f32.mrf.mxu0 }
  0xe3   : > { %v659_v42 = vrot.slane %v651_v40, %v2579_v20  ;;  %v640_v43 = vadd.f32 %v2577_v19, %v633_v39  ;;  %v2265_v38 = vpop.f32.mrf.mxu1 }
  0xe5   : > { %660 = vrot.lane.b32.xlu0 %v659_v42, %s2483_s12  ;;  %v2167_v44 = vmul.f32 -1.442695, %v640_v43 }
  0xe7   : > { %2410 = vpow2.f32 %v2167_v44  ;;  %v506_v44 = vcombine.high %v2630_v32, %v2630_v32 }
  0xf4   : > { %v2411_v45 = vpop.eup %2410 }
  0xf5   : > { %v644_v46 = vadd.f32 1.0, %v2411_v45  ;;  %v520_v45 = vrot.slane %v506_v44, %v2579_v20 }
  0xf7   : > { %2412 = vrcp.f32 %v644_v46 }
 0x104   : > { %v2413_v47 = vpop.eup %2412 }
 0x157   : > { %v661_v48 = vpop.permute.xlu0 %660 }
 0x158   : > { %v663_v49 = vmul.f32 %v2413_v47, %v661_v48 }
 0x15a   : > { %665 = vrot.lane.b32.xlu1 %v663_v49, %s2483_s12 }
 0x1cc   : > { %v666_v51 = vpop.permute.xlu1 %665 }
 0x1cd   : > { %v668_v52 = vadd.f32 %v666_v51, %v647_v50 }
 0x1cf   : > { %2414 = vtanh.f32 %v668_v52 }
 0x1dc   : > { %v2415_v53 = vpop.eup %2414 }
 0x1dd   : > { %v677_v54 = vrot.slane %v2415_v53, %v2579_v20 }
 0x1df   : > { %678 = vrot.lane.b32.xlu1 %v677_v54, %s2483_s12  ;;  %v916_v54 = vadd.f32 %v2577_v19, %v520_v45 }
 0x251   : > { %v679_v55 = vpop.permute.xlu1 %678 }
 0x252   : > { %v681_v56 = vsub.f32 %v558_v31, %v679_v55 }
 0x254   : > { %v689_v57 = vrot.slane %v681_v56, %v2579_v20 }
 0x256   : > { %690 = vrot.lane.b32.xlu0 %v689_v57, %s2484_s13 }
 0x2c8   : > { %v691_v58 = vpop.permute.xlu0 %690 }
 0x2c9   : > { %v693_v59 = vmul.f32 %v2413_v47, %v691_v58 }
 0x2cb   : > { %695 = vrot.lane.b32.xlu1 %v693_v59, %s2484_s13 }
 0x33d   : > { %v696_v60 = vpop.permute.xlu1 %695 }
 0x33e   : > { %v698_v61 = vadd.f32 %v2415_v53, %v696_v60 }
 0x340   : > { %v706_v62 = vrot.slane %v698_v61, %v2579_v20 }
 0x342   : > { %707 = vrot.lane.b32.xlu0 %v706_v62, %s2483_s12 }
 0x3b4   : > { %v708_v63 = vpop.permute.xlu0 %707 }
 0x3b5   : > { %711 = vst.msk [vmem:[#allocation2] sm:$0x3] %vm710_vm4, %v708_v63  ;;  %2286 = vmatmul.mubr.msk.f32.vlgmr.msra.gmra.mxu0 %vm559_vm3, %v708_v63 }
 0x3b6   : > { %2300 = vmatpush3.msra.mxu0 %v2594_v26  ;;  %2307 = vmatprep.mubr.msk.f32.mxu0 %vm2480_vm0, %v2479_v2 }
 0x3b7   : > { %2301 = vmatprep.subr.mxu0 %v2479_v2 }
 0x3b8   : > { %2302 = vmatpush3.msra.mxu0 %v2597_v27 }
 0x3b9   : > { %2303 = vmatprep.subr.mxu0 %v2479_v2 }
 0x3ba   : > { %2304 = vmatpush3.msra.mxu0 %v2603_v29 }
 0x3bb   : > { %2305 = vmatprep.subr.mxu0 %v2479_v2 }
 0x3bc   : > { %2306 = vmatpush3.msra.mxu0 %v2608_v30 }
 0x3bd   : > { %2321 = vmatprep.subr.mxu0 %v2479_v2 }
 0x475   : > { %v780_v0 = vpop.f32.mrf.mxu0 }
 0x476   : > { %v793_v1 = vadd.f32 %v780_v0, %v2634_v36  ;;  %v784_v6 = vadd.f32 %v780_v0, %v521_v5  ;;  %v522_v5 = vcombine.high %v520_v45, %v520_v45 }
 0x477   : > { %v2287_v3 = vpop.f32.mrf.mxu0 }
 0x478   : > { %v801_v4 = vrot.slane %v793_v1, %v2579_v20  ;;  %v785_v7 = vadd.f32 %v2577_v19, %v784_v6 }
 0x47a   : > { %802 = vrot.lane.b32.xlu1 %v801_v4, %s2483_s12  ;;  %v2169_v8 = vmul.f32 -1.442695, %v785_v7 }
 0x47c   : > { %2416 = vpow2.f32 %v2169_v8 }
 0x489   : > { %v2417_v9 = vpop.eup %2416 }
 0x48a   : > { %v789_v10 = vadd.f32 1.0, %v2417_v9 }
 0x48c   : > { %2418 = vrcp.f32 %v789_v10 }
 0x499   : > { %v2419_v11 = vpop.eup %2418 }
 0x4ec   : > { %v803_v12 = vpop.permute.xlu1 %802 }
 0x4ed   : > { %v805_v13 = vmul.f32 %v2419_v11, %v803_v12 }
 0x4ef   : > { %807 = vrot.lane.b32.xlu0 %v805_v13, %s2483_s12 }
 0x561   : > { %v808_v15 = vpop.permute.xlu0 %807 }
 0x562   : > { %v810_v16 = vadd.f32 %v808_v15, %v792_v14  ;;  %v1040_v14 = vadd.f32 %v2577_v19, %v522_v5 }
 0x564   : > { %2420 = vtanh.f32 %v810_v16 }
 0x571   : > { %v2421_v17 = vpop.eup %2420 }
 0x572   : > { %v812_v18 = vsub.f32 %v698_v61, %v2421_v17 }
 0x574   : > { %814 = vrot.lane.b32.xlu1 %v812_v18, %s2482_s9 }
 0x5e6   : > { %v815_v25 = vpop.permute.xlu1 %814 }
 0x5e7   : > { %v817_v28 = vmul.f32 %v2419_v11, %v815_v25 }
 0x5e9   : > { %819 = vrot.lane.b32.xlu0 %v817_v28, %s2484_s13 }
 0x65b   : > { %v820_v31 = vpop.permute.xlu0 %819 }
 0x65c   : > { %v822_v33 = vadd.f32 %v2421_v17, %v820_v31 }
 0x65e   : > { %v830_v35 = vrot.slane %v822_v33, %v2579_v20 }
 0x660   : > { %831 = vrot.lane.b32.xlu1 %v830_v35, %s2483_s12 }
 0x6d2   : > { %v832_v39 = vpop.permute.xlu1 %831 }
 0x6d3   : > { %835 = vst.msk [vmem:[#allocation2 + $0x2] sm:$0x3] %vm710_vm4, %v832_v39  ;;  %2297 = vmatmul.mubr.msk.f32.vlgmr.msra.gmra.mxu1 %vm559_vm3, %v832_v39  ;;  %v530_v39 = vrot.slane %v2632_v34, %v2579_v20 }
 0x6d4   : > { %2311 = vmatpush3.msra.mxu1 %v2594_v26  ;;  %2318 = vmatprep.mubr.msk.f32.mxu1 %vm2480_vm0, %v2479_v2 }
 0x6d5   : > { %2312 = vmatprep.subr.mxu1 %v2479_v2 }
 0x6d6   : > { %2313 = vmatpush3.msra.mxu1 %v2597_v27 }
 0x6d7   : > { %2314 = vmatprep.subr.mxu1 %v2479_v2 }
 0x6d8   : > { %2315 = vmatpush3.msra.mxu1 %v2603_v29 }
 0x6d9   : > { %2316 = vmatprep.subr.mxu1 %v2479_v2 }
 0x6da   : > { %2317 = vmatpush3.msra.mxu1 %v2608_v30 }
 0x6db   : > { %2332 = vmatprep.subr.mxu1 %v2479_v2 }
 0x793   : > { %v904_v40 = vpop.f32.mrf.mxu1 }
 0x794   : > { %v917_v41 = vadd.f32 %v904_v40, %v2634_v36  ;;  %v908_v46 = vadd.f32 %v904_v40, %v520_v45 }
 0x795   : > { %v2298_v42 = vpop.f32.mrf.mxu1 }
 0x796   : > { %v925_v43 = vrot.slane %v917_v41, %v2579_v20  ;;  %v909_v47 = vadd.f32 %v2577_v19, %v908_v46 }
 0x798   : > { %926 = vrot.lane.b32.xlu0 %v925_v43, %s2483_s12  ;;  %v2171_v48 = vmul.f32 -1.442695, %v909_v47 }
 0x79a   : > { %2422 = vpow2.f32 %v2171_v48  ;;  %v1164_v48 = vadd.f32 %v2577_v19, %v530_v39 }
 0x7a7   : > { %v2423_v49 = vpop.eup %2422 }
 0x7a8   : > { %v913_v50 = vadd.f32 1.0, %v2423_v49 }
 0x7aa   : > { %2424 = vrcp.f32 %v913_v50 }
 0x7b7   : > { %v2425_v51 = vpop.eup %2424 }
 0x80a   : > { %v927_v52 = vpop.permute.xlu0 %926 }
 0x80b   : > { %v929_v53 = vmul.f32 %v2425_v51, %v927_v52 }
 0x80d   : > { %931 = vrot.lane.b32.xlu1 %v929_v53, %s2483_s12 }
 0x87f   : > { %v932_v55 = vpop.permute.xlu1 %931 }
 0x880   : > { %v934_v56 = vadd.f32 %v932_v55, %v916_v54 }
 0x882   : > { %2426 = vtanh.f32 %v934_v56 }
 0x88f   : > { %v2427_v32 = vpop.eup %2426 }
 0x890   : > { %v936_v57 = vsub.f32 %v822_v33, %v2427_v32 }
 0x892   : > { %938 = vrot.lane.b32.xlu0 %v936_v57, %s2482_s9 }
 0x904   : > { %v939_v58 = vpop.permute.xlu0 %938 }
 0x905   : > { %v941_v59 = vmul.f32 %v2425_v51, %v939_v58 }
 0x907   : > { %943 = vrot.lane.b32.xlu1 %v941_v59, %s2484_s13 }
 0x979   : > { %v944_v60 = vpop.permute.xlu1 %943 }
 0x97a   : > { %v946_v61 = vadd.f32 %v2427_v32, %v944_v60 }
 0x97c   : > { %v954_v62 = vrot.slane %v946_v61, %v2579_v20 }
 0x97e   : > { %955 = vrot.lane.b32.xlu0 %v954_v62, %s2483_s12  ;;  %v538_v62 = vcombine.high %v530_v39, %v530_v39 }
 0x9f0   : > { %v956_v63 = vpop.permute.xlu0 %955 }
 0x9f1   : > { %959 = vst.msk [vmem:[#allocation2 + $0x4] sm:$0x3] %vm710_vm4, %v956_v63  ;;  %2308 = vmatmul.mubr.msk.f32.vlgmr.msra.gmra.mxu0 %vm559_vm3, %v956_v63 }
 0x9f2   : > { %2322 = vmatpush3.msra.mxu0 %v2594_v26  ;;  %2329 = vmatprep.mubr.msk.f32.mxu0 %vm2480_vm0, %v2479_v2 }
 0x9f3   : > { %2323 = vmatprep.subr.mxu0 %v2479_v2 }
 0x9f4   : > { %2324 = vmatpush3.msra.mxu0 %v2597_v27 }
 0x9f5   : > { %2325 = vmatprep.subr.mxu0 %v2479_v2 }
 0x9f6   : > { %2326 = vmatpush3.msra.mxu0 %v2603_v29 }
 0x9f7   : > { %2327 = vmatprep.subr.mxu0 %v2479_v2 }
 0x9f8   : > { %2328 = vmatpush3.msra.mxu0 %v2608_v30 }
 0x9f9   : > { %2343 = vmatprep.subr.mxu0 %v2479_v2 }
 0xab1   : > { %v1028_v0 = vpop.f32.mrf.mxu0 }
 0xab2   : > { %v1041_v1 = vadd.f32 %v1028_v0, %v2634_v36  ;;  %v1032_v6 = vadd.f32 %v1028_v0, %v522_v5 }
 0xab3   : > { %v2309_v3 = vpop.f32.mrf.mxu0 }
 0xab4   : > { %v1049_v4 = vrot.slane %v1041_v1, %v2579_v20  ;;  %v1033_v7 = vadd.f32 %v2577_v19, %v1032_v6 }
 0xab6   : > { %1050 = vrot.lane.b32.xlu1 %v1049_v4, %s2483_s12  ;;  %v2173_v8 = vmul.f32 -1.442695, %v1033_v7 }
 0xab8   : > { %2428 = vpow2.f32 %v2173_v8  ;;  %v1288_v8 = vadd.f32 %v2577_v19, %v538_v62 }
 0xac5   : > { %v2429_v9 = vpop.eup %2428 }
 0xac6   : > { %v1037_v10 = vadd.f32 1.0, %v2429_v9 }
 0xac8   : > { %2430 = vrcp.f32 %v1037_v10 }
 0xad5   : > { %v2431_v11 = vpop.eup %2430 }
 0xb28   : > { %v1051_v12 = vpop.permute.xlu1 %1050 }
 0xb29   : > { %v1053_v13 = vmul.f32 %v2431_v11, %v1051_v12 }
 0xb2b   : > { %1055 = vrot.lane.b32.xlu0 %v1053_v13, %s2483_s12 }
 0xb9d   : > { %v1056_v15 = vpop.permute.xlu0 %1055 }
 0xb9e   : > { %v1058_v16 = vadd.f32 %v1056_v15, %v1040_v14 }
 0xba0   : > { %2432 = vtanh.f32 %v1058_v16 }
 0xbad   : > { %v2433_v17 = vpop.eup %2432 }
 0xbae   : > { %v1060_v18 = vsub.f32 %v946_v61, %v2433_v17 }
 0xbb0   : > { %1062 = vrot.lane.b32.xlu1 %v1060_v18, %s2482_s9 }
 0xc22   : > { %v1063_v21 = vpop.permute.xlu1 %1062 }
 0xc23   : > { %v1065_v22 = vmul.f32 %v2431_v11, %v1063_v21 }
 0xc25   : > { %1067 = vrot.lane.b32.xlu0 %v1065_v22, %s2484_s13 }
 0xc97   : > { %v1068_v23 = vpop.permute.xlu0 %1067 }
 0xc98   : > { %v1070_v24 = vadd.f32 %v2433_v17, %v1068_v23 }
 0xc9a   : > { %v1078_v25 = vrot.slane %v1070_v24, %v2579_v20 }
 0xc9c   : > { %1079 = vrot.lane.b32.xlu1 %v1078_v25, %s2483_s12  ;;  %v523_v25 = vcombine.high %v2632_v34, %v2632_v34 }
 0xd0e   : > { %v1080_v28 = vpop.permute.xlu1 %1079 }
 0xd0f   : > { %1083 = vst.msk [vmem:[#allocation2 + $0x6] sm:$0x3] %vm710_vm4, %v1080_v28  ;;  %2319 = vmatmul.mubr.msk.f32.vlgmr.msra.gmra.mxu1 %vm559_vm3, %v1080_v28  ;;  %v537_v28 = vrot.slane %v523_v25, %v2579_v20 }
 0xd10   : > { %2333 = vmatpush3.msra.mxu1 %v2594_v26  ;;  %2340 = vmatprep.mubr.msk.f32.mxu1 %vm2480_vm0, %v2479_v2 }
 0xd11   : > { %2334 = vmatprep.subr.mxu1 %v2479_v2 }
 0xd12   : > { %2335 = vmatpush3.msra.mxu1 %v2597_v27 }
 0xd13   : > { %2336 = vmatprep.subr.mxu1 %v2479_v2 }
 0xd14   : > { %2337 = vmatpush3.msra.mxu1 %v2603_v29 }
 0xd15   : > { %2338 = vmatprep.subr.mxu1 %v2479_v2 }
 0xd16   : > { %2339 = vmatpush3.msra.mxu1 %v2608_v30 }
 0xd17   : > { %2354 = vmatprep.subr.mxu1 %v2479_v2 }
 0xdcf   : > { %v1152_v31 = vpop.f32.mrf.mxu1 }
 0xdd0   : > { %v1165_v33 = vadd.f32 %v1152_v31, %v2634_v36  ;;  %v1156_v40 = vadd.f32 %v1152_v31, %v530_v39 }
 0xdd1   : > { %v2320_v35 = vpop.f32.mrf.mxu1 }
 0xdd2   : > { %v1173_v38 = vrot.slane %v1165_v33, %v2579_v20  ;;  %v1157_v41 = vadd.f32 %v2577_v19, %v1156_v40 }
 0xdd4   : > { %1174 = vrot.lane.b32.xlu0 %v1173_v38, %s2483_s12  ;;  %v2175_v42 = vmul.f32 -1.442695, %v1157_v41 }
 0xdd6   : > { %2434 = vpow2.f32 %v2175_v42 }
 0xde3   : > { %v2435_v43 = vpop.eup %2434 }
 0xde4   : > { %v1161_v44 = vadd.f32 1.0, %v2435_v43  ;;  %v1412_v43 = vadd.f32 %v2577_v19, %v537_v28 }
 0xde6   : > { %2436 = vrcp.f32 %v1161_v44 }
 0xdf3   : > { %v2437_v45 = vpop.eup %2436 }
 0xe46   : > { %v1175_v46 = vpop.permute.xlu0 %1174 }
 0xe47   : > { %v1177_v47 = vmul.f32 %v2437_v45, %v1175_v46 }
 0xe49   : > { %1179 = vrot.lane.b32.xlu1 %v1177_v47, %s2483_s12 }
 0xebb   : > { %v1180_v49 = vpop.permute.xlu1 %1179 }
 0xebc   : > { %v1182_v50 = vadd.f32 %v1180_v49, %v1164_v48 }
 0xebe   : > { %2438 = vtanh.f32 %v1182_v50 }
 0xecb   : > { %v2439_v51 = vpop.eup %2438 }
 0xecc   : > { %v1184_v52 = vsub.f32 %v1070_v24, %v2439_v51 }
 0xece   : > { %1186 = vrot.lane.b32.xlu0 %v1184_v52, %s2482_s9 }
 0xf40   : > { %v1187_v53 = vpop.permute.xlu0 %1186 }
 0xf41   : > { %v1189_v54 = vmul.f32 %v2437_v45, %v1187_v53 }
 0xf43   : > { %1191 = vrot.lane.b32.xlu1 %v1189_v54, %s2484_s13 }
 0xfb5   : > { %v1192_v55 = vpop.permute.xlu1 %1191 }
 0xfb6   : > { %v1194_v56 = vadd.f32 %v2439_v51, %v1192_v55 }
 0xfb8   : > { %v1202_v32 = vrot.slane %v1194_v56, %v2579_v20 }
 0xfba   : > { %1203 = vrot.lane.b32.xlu0 %v1202_v32, %s2483_s12 }
0x102c   : > { %v1204_v57 = vpop.permute.xlu0 %1203 }
0x102d   : > { %1207 = vst.msk [vmem:[#allocation2 + $0x8] sm:$0x3] %vm710_vm4, %v1204_v57  ;;  %2330 = vmatmul.mubr.msk.f32.vlgmr.msra.gmra.mxu0 %vm559_vm3, %v1204_v57 }
0x102e   : > { %2344 = vmatpush3.msra.mxu0 %v2594_v26  ;;  %2351 = vmatprep.mubr.msk.f32.mxu0 %vm2480_vm0, %v2479_v2 }
0x102f   : > { %2345 = vmatprep.subr.mxu0 %v2479_v2 }
0x1030   : > { %2346 = vmatpush3.msra.mxu0 %v2597_v27 }
0x1031   : > { %2347 = vmatprep.subr.mxu0 %v2479_v2 }
0x1032   : > { %2348 = vmatpush3.msra.mxu0 %v2603_v29 }
0x1033   : > { %2349 = vmatprep.subr.mxu0 %v2479_v2 }
0x1034   : > { %2350 = vmatpush3.msra.mxu0 %v2608_v30 }
0x1035   : > { %2365 = vmatprep.subr.mxu0 %v2479_v2 }
0x10ed   : > { %v1276_v58 = vpop.f32.mrf.mxu0 }
0x10ee   : > { %v1289_v59 = vadd.f32 %v1276_v58, %v2634_v36  ;;  %v1280_v63 = vadd.f32 %v1276_v58, %v538_v62 }
0x10ef   : > { %v2331_v60 = vpop.f32.mrf.mxu0 }
0x10f0   : > { %v1297_v61 = vrot.slane %v1289_v59, %v2579_v20  ;;  %v1281_v0 = vadd.f32 %v2577_v19, %v1280_v63 }
0x10f2   : > { %1298 = vrot.lane.b32.xlu1 %v1297_v61, %s2483_s12  ;;  %v2177_v1 = vmul.f32 -1.442695, %v1281_v0 }
0x10f4   : > { %2440 = vpow2.f32 %v2177_v1 }
0x1101   : > { %v2441_v3 = vpop.eup %2440 }
0x1102   : > { %v1285_v4 = vadd.f32 1.0, %v2441_v3 }
0x1104   : > { %2442 = vrcp.f32 %v1285_v4 }
0x1111   : > { %v2443_v5 = vpop.eup %2442 }
0x1164   : > { %v1299_v6 = vpop.permute.xlu1 %1298 }
0x1165   : > { %v1301_v7 = vmul.f32 %v2443_v5, %v1299_v6 }
0x1167   : > { %1303 = vrot.lane.b32.xlu0 %v1301_v7, %s2483_s12 }
0x11d9   : > { %v1304_v9 = vpop.permute.xlu0 %1303 }
0x11da   : > { %v1306_v10 = vadd.f32 %v1304_v9, %v1288_v8  ;;  %v1831_v8 = vld [vmem:[#allocation2 + $0x6] sm:$0x3]  ;;  %v1829_v9 = vld [vmem:[#allocation2 + $0x2] sm:$0x3] }
0x11dc   : > { %2444 = vtanh.f32 %v1306_v10  ;;  %v1830_v10 = vld [vmem:[#allocation2 + $0x4] sm:$0x3] }
0x11e9   : > { %v2445_v11 = vpop.eup %2444 }
0x11ea   : > { %v1308_v12 = vsub.f32 %v1194_v56, %v2445_v11  ;;  %v539_v56 = vcombine.high %v537_v28, %v537_v28 }
0x11ec   : > { %1310 = vrot.lane.b32.xlu1 %v1308_v12, %s2482_s9  ;;  %v1536_v61 = vadd.f32 %v2577_v19, %v539_v56  ;;  %v1860_v12 = vcombine.low %v1830_v10, %v1831_v8 }
0x125e   : > { %v1311_v13 = vpop.permute.xlu1 %1310 }
0x125f   : > { %v1313_v14 = vmul.f32 %v2443_v5, %v1311_v13 }
0x1261   : > { %1315 = vrot.lane.b32.xlu0 %v1313_v14, %s2484_s13  ;;  %v1828_v14 = vld [vmem:[#allocation2] sm:$0x3] }
0x12d3   : > { %v1316_v15 = vpop.permute.xlu0 %1315 }
0x12d4   : > { %v1318_v16 = vadd.f32 %v2445_v11, %v1316_v15  ;;  %v1841_v11 = vld [vmem:[%s335_s20 + $0x18] sm:$0xff]  ;;  %v1840_v15 = vld [vmem:[%s335_s20 + $0x10] sm:$0xff] }
0x12d6   : > { %v1326_v17 = vrot.slane %v1318_v16, %v2579_v20 }
0x12d8   : > { %1327 = vrot.lane.b32.xlu1 %v1326_v17, %s2483_s12  ;;  %v1839_v17 = vld [vmem:[%s335_s20 + $0x8] sm:$0xff] }
0x134a   : > { %v1328_v18 = vpop.permute.xlu1 %1327 }
0x134b   : > { %1331 = vst.msk [vmem:[#allocation2 + $0xa] sm:$0x3] %vm710_vm4, %v1328_v18  ;;  %2341 = vmatmul.mubr.msk.f32.vlgmr.msra.gmra.mxu1 %vm559_vm3, %v1328_v18  ;;  %v1874_v18 = vrot.slane %v1860_v12, %v2579_v20 }
0x134c   : > { %2355 = vmatpush3.msra.mxu1 %v2594_v26  ;;  %2362 = vmatprep.mubr.msk.f32.mxu1 %vm2480_vm0, %v2479_v2 }
0x134d   : > { %2356 = vmatprep.subr.mxu1 %v2479_v2 }
0x134e   : > { %2357 = vmatpush3.msra.mxu1 %v2597_v27 }
0x134f   : > { %2358 = vmatprep.subr.mxu1 %v2479_v2 }
0x1350   : > { %2359 = vmatpush3.msra.mxu1 %v2603_v29 }
0x1351   : > { %2360 = vmatprep.subr.mxu1 %v2479_v2 }
0x1352   : > { %2361 = vmatpush3.msra.mxu1 %v2608_v30 }
0x1353   : > { %2376 = vmatprep.subr.mxu1 %v2479_v2 }
0x140b   : > { %v1400_v21 = vpop.f32.mrf.mxu1 }
0x140c   : > { %v1413_v22 = vadd.f32 %v1400_v21, %v2634_v36  ;;  %v1404_v31 = vadd.f32 %v1400_v21, %v537_v28  ;;  %v1833_v21 = vld [vmem:[#allocation2 + $0xa] sm:$0x3] }
0x140d   : > { %v2342_v23 = vpop.f32.mrf.mxu1 }
0x140e   : > { %v1421_v24 = vrot.slane %v1413_v22, %v2579_v20  ;;  %v1405_v33 = vadd.f32 %v2577_v19, %v1404_v31  ;;  %v1838_v22 = vld [vmem:[%s335_s20] sm:$0xff] }
0x1410   : > { %1422 = vrot.lane.b32.xlu0 %v1421_v24, %s2483_s12  ;;  %v2179_v35 = vmul.f32 -1.442695, %v1405_v33  ;;  %v1832_v24 = vld [vmem:[#allocation2 + $0x8] sm:$0x3] }
0x1411   : > { %v1876_v28 = vcombine.low %v1832_v24, %v1833_v21 }
0x1412   : > { %2446 = vpow2.f32 %v2179_v35 }
0x141f   : > { %v2447_v38 = vpop.eup %2446 }
0x1420   : > { %v1409_v39 = vadd.f32 1.0, %v2447_v38  ;;  %v1884_v38 = vrot.slane %v1876_v28, %v2579_v20 }
0x1422   : > { %2448 = vrcp.f32 %v1409_v39 }
0x142f   : > { %v2449_v40 = vpop.eup %2448 }
0x1482   : > { %v1423_v41 = vpop.permute.xlu0 %1422 }
0x1483   : > { %v1425_v42 = vmul.f32 %v2449_v40, %v1423_v41 }
0x1485   : > { %1427 = vrot.lane.b32.xlu1 %v1425_v42, %s2483_s12 }
0x14f7   : > { %v1428_v44 = vpop.permute.xlu1 %1427 }
0x14f8   : > { %v1430_v45 = vadd.f32 %v1428_v44, %v1412_v43 }
0x14fa   : > { %2450 = vtanh.f32 %v1430_v45  ;;  %v2865_v45 = vld [vmem:[%s338_s23] ss:$0 sm:$0xff] }
0x1507   : > { %v2451_v34 = vpop.eup %2450 }
0x1508   : > { %v1432_v46 = vsub.f32 %v1318_v16, %v2451_v34  ;;  %v1859_v16 = vcombine.low %v1828_v14, %v1829_v9 }
0x150a   : > { %1434 = vrot.lane.b32.xlu0 %v1432_v46, %s2482_s9  ;;  %v1867_v23 = vrot.slane %v1859_v16, %v2579_v20  ;;  %v2470_v16 = vld [vmem:[%s2574_s28] ss:$0 sm:$0xff] }
0x150c   : > { %v1875_v25 = vcombine.low %v1867_v23, %v1874_v18 }
0x157c   : > { %v1435_v47 = vpop.permute.xlu0 %1434 }
0x157d   : > { %v1437_v48 = vmul.f32 %v2449_v40, %v1435_v47 }
0x157f   : > { %1439 = vrot.lane.b32.xlu1 %v1437_v48, %s2484_s13 }
0x15f1   : > { %v1440_v49 = vpop.permute.xlu1 %1439 }
0x15f2   : > { %v1442_v50 = vadd.f32 %v2451_v34, %v1440_v49 }
0x15f4   : > { %v1450_v51 = vrot.slane %v1442_v50, %v2579_v20 }
0x15f6   : > { %1451 = vrot.lane.b32.xlu0 %v1450_v51, %s2483_s12 }
0x1668   : > { %v1452_v52 = vpop.permute.xlu0 %1451 }
0x1669   : > { %1455 = vst.msk [vmem:[#allocation2 + $0xc] sm:$0x3] %vm710_vm4, %v1452_v52  ;;  %2352 = vmatmul.mubr.msk.f32.vlgmr.msra.gmra.mxu0 %vm559_vm3, %v1452_v52 }
0x166a   : > { %2366 = vmatpush3.msra.mxu0 %v2594_v26  ;;  %2373 = vmatprep.mubr.msk.f32.mxu0 %vm2480_vm0, %v2479_v2 }
0x166b   : > { %2367 = vmatprep.subr.mxu0 %v2479_v2 }
0x166c   : > { %2368 = vmatpush3.msra.mxu0 %v2597_v27 }
0x166d   : > { %2369 = vmatprep.subr.mxu0 %v2479_v2 }
0x166e   : > { %2370 = vmatpush3.msra.mxu0 %v2603_v29 }
0x166f   : > { %2371 = vmatprep.subr.mxu0 %v2479_v2 }
0x1670   : > { %2372 = vmatpush3.msra.mxu0 %v2608_v30  ;;  %v1834_v31 = vld [vmem:[#allocation2 + $0xc] sm:$0x3] }
0x1729   : > { %v1524_v53 = vpop.f32.mrf.mxu0 }
0x172a   : > { %v1537_v54 = vadd.f32 %v1524_v53, %v2634_v36  ;;  %v1528_v32 = vadd.f32 %v1524_v53, %v539_v56 }
0x172b   : > { %v2353_v55 = vpop.f32.mrf.mxu0 }
0x172c   : > { %v1545_v26 = vrot.slane %v1537_v54, %v2579_v20  ;;  %v1529_v27 = vadd.f32 %v2577_v19, %v1528_v32 }
0x172e   : > { %1546 = vrot.lane.b32.xlu1 %v1545_v26, %s2483_s12  ;;  %v2181_v57 = vmul.f32 -1.442695, %v1529_v27 }
0x1730   : > { %2452 = vpow2.f32 %v2181_v57  ;;  %v546_v57 = vrot.slane %v2691_v37, %v2579_v20 }
0x1732   : > { %v547_v14 = vcombine.high %v546_v57, %v546_v57 }
0x173d   : > { %v2453_v58 = vpop.eup %2452 }
0x173e   : > { %v1533_v29 = vadd.f32 1.0, %v2453_v58 }
0x1740   : > { %2454 = vrcp.f32 %v1533_v29 }
0x174d   : > { %v2455_v59 = vpop.eup %2454 }
0x17a0   : > { %v1547_v60 = vpop.permute.xlu1 %1546 }
0x17a1   : > { %v1549_v30 = vmul.f32 %v2455_v59, %v1547_v60 }
0x17a3   : > { %1551 = vrot.lane.b32.xlu0 %v1549_v30, %s2483_s12 }
0x1815   : > { %v1552_v62 = vpop.permute.xlu0 %1551 }
0x1816   : > { %v1554_v63 = vadd.f32 %v1552_v62, %v1536_v61 }
0x1818   : > { %2456 = vtanh.f32 %v1554_v63 }
0x1825   : > { %v2457_v0 = vpop.eup %2456 }
0x1826   : > { %v1556_v1 = vsub.f32 %v1442_v50, %v2457_v0 }
0x1828   : > { %1558 = vrot.lane.b32.xlu1 %v1556_v1, %s2482_s9 }
0x189a   : > { %v1559_v3 = vpop.permute.xlu1 %1558 }
0x189b   : > { %v1561_v4 = vmul.f32 %v2455_v59, %v1559_v3 }
0x189d   : > { %1563 = vrot.lane.b32.xlu0 %v1561_v4, %s2484_s13 }
0x190f   : > { %v1564_v5 = vpop.permute.xlu0 %1563 }
0x1910   : > { %v2830_v6 = vadd.f32 %v2457_v0, %v1564_v5  ;;  %v1660_v0 = vadd.f32 %v2577_v19, %v546_v57 }
0x1912   : > { %v1574_v7 = vrot.slane %v2830_v6, %v2579_v20 }
0x1914   : > { %1575 = vrot.lane.b32.xlu1 %v1574_v7, %s2483_s12 }
0x1986   : > { %v1576_v13 = vpop.permute.xlu1 %1575 }
0x1987   : > { %1579 = vst.msk [vmem:[#allocation2 + $0xe] sm:$0x3] %vm710_vm4, %v1576_v13  ;;  %2363 = vmatmul.mubr.msk.f32.vlgmr.msra.gmra.mxu1 %vm559_vm3, %v1576_v13 }
0x1988   : > { %2377 = vmatpush3.msra.mxu1 %v1841_v11  ;;  %2384 = vmatprep.mubr.msk.f32.mxu1 %vm2480_vm0, %v2479_v2 }
0x1989   : > { %2378 = vmatprep.subr.mxu1 %v2479_v2 }
0x198a   : > { %2379 = vmatpush3.msra.mxu1 %v1840_v15 }
0x198b   : > { %2380 = vmatprep.subr.mxu1 %v2479_v2 }
0x198c   : > { %2381 = vmatpush3.msra.mxu1 %v1839_v17 }
0x198d   : > { %2382 = vmatprep.subr.mxu1 %v2479_v2 }
0x198e   : > { %2383 = vmatpush3.msra.mxu1 %v1838_v22  ;;  %v1835_v33 = vld [vmem:[#allocation2 + $0xe] sm:$0x3] }
0x198f   : > { %2385 = vmatmul.mubr.msk.f32.vlgmr.msra.gmra.mxu1 %vm559_vm3, %v1875_v25  ;;  %v1877_v35 = vcombine.low %v1834_v31, %v1835_v33 }
0x1990   : > { %2387 = vmatprep.mubr.msk.f32.mxu1 %vm2480_vm0, %v2479_v2 }
0x1991   : > { %v1891_v39 = vrot.slane %v1877_v35, %v2579_v20 }
0x1993   : > { %v1892_v40 = vcombine.low %v1884_v38, %v1891_v39 }
0x1995   : > { %2388 = vmatmul.mubr.msk.f32.gmra.mxu1 %vm559_vm3, %v1892_v40 }
0x1996   : > { %2390 = vmatprep.mubr.msk.f32.mxu1 %vm2480_vm0, %v2479_v2 }
0x1a47   : > { %v1648_v41 = vpop.f32.mrf.mxu1 }
0x1a48   : > { %v1661_v42 = vadd.f32 %v1648_v41, %v2634_v36  ;;  %v1652_v58 = vadd.f32 %v1648_v41, %v546_v57 }
0x1a49   : > { %v2364_v43 = vpop.f32.mrf.mxu1 }
0x1a4a   : > { %v1669_v44 = vrot.slane %v1661_v42, %v2579_v20  ;;  %v1653_v29 = vadd.f32 %v2577_v19, %v1652_v58 }
0x1a4c   : > { %1670 = vrot.lane.b32.xlu0 %v1669_v44, %s2483_s12  ;;  %v2183_v59 = vmul.f32 -1.442695, %v1653_v29 }
0x1a4e   : > { %2458 = vpow2.f32 %v2183_v59 }
0x1a4f   : > { %v1973_v34 = vpop.f32.mrf.mxu1 }
0x1a50   : > { %v1974_v46 = vadd.f32 %v2865_v45, %v1973_v34 }
0x1a51   : > { %v2386_v2 = vpop.f32.mrf.mxu1 }
0x1a52   : > { %v1990_v47 = vcombine.high %v1974_v46, %v1974_v46  ;;  %v1997_v48 = vrot.slane %v1974_v46, %v2579_v20 }
0x1a54   : > { %v2004_v49 = vrot.slane %v1990_v47, %v2579_v20  ;;  %v2005_v50 = vcombine.high %v1997_v48, %v1997_v48  ;;  %2043 = vst.msk [vmem:[%s2871_s30] sm:$0x3] %vm2042_vm5, %v1997_v48 }
0x1a55   : > { %v1978_v51 = vpop.f32.mrf.mxu1 }
0x1a56   : > { %v2006_v52 = vcombine.high %v2004_v49, %v2004_v49  ;;  %2044 = vst.msk [vmem:[%s2871_s30 + $0x2] sm:$0x3] %vm2042_vm5, %v2005_v50  ;;  %2045 = vst.msk [vmem:[%s2871_s30 + $0x4] sm:$0x3] %vm2042_vm5, %v2004_v49  ;;  %v1979_v53 = vadd.f32 %v2865_v45, %v1978_v51 }
0x1a57   : > { %v2389_v54 = vpop.f32.mrf.mxu1 }
0x1a58   : > { %2046 = vst.msk [vmem:[%s2871_s30 + $0x6] sm:$0x3] %vm2042_vm5, %v2006_v52  ;;  %v2007_v55 = vcombine.high %v1979_v53, %v1979_v53  ;;  %v2014_v26 = vrot.slane %v1979_v53, %v2579_v20 }
0x1a5a   : > { %v2021_v56 = vrot.slane %v2007_v55, %v2579_v20  ;;  %v2022_v32 = vcombine.high %v2014_v26, %v2014_v26  ;;  %2047 = vst.msk [vmem:[%s2871_s30 + $0x8] sm:$0x3] %vm2042_vm5, %v2014_v26 }
0x1a5b   : > { %v2459_v60 = vpop.eup %2458 }
0x1a5c   : > { %v2023_v27 = vcombine.high %v2021_v56, %v2021_v56  ;;  %2048 = vst.msk [vmem:[%s2871_s30 + $0xa] sm:$0x3] %vm2042_vm5, %v2022_v32  ;;  %2049 = vst.msk [vmem:[%s2871_s30 + $0xc] sm:$0x3] %vm2042_vm5, %v2021_v56  ;;  %v1657_v30 = vadd.f32 1.0, %v2459_v60 }
0x1a5e   : > { %2050 = vst.msk [vmem:[%s2871_s30 + $0xe] sm:$0x3] %vm2042_vm5, %v2023_v27  ;;  %2460 = vrcp.f32 %v1657_v30 }
0x1a6b   : > { %v2461_v61 = vpop.eup %2460 }
0x1abe   : > { %v1671_v62 = vpop.permute.xlu0 %1670 }
0x1abf   : > { %v1673_v63 = vmul.f32 %v2461_v61, %v1671_v62 }
0x1ac1   : > { %1675 = vrot.lane.b32.xlu1 %v1673_v63, %s2483_s12 }
0x1b33   : > { %v1676_v1 = vpop.permute.xlu1 %1675 }
0x1b34   : > { %v1678_v3 = vadd.f32 %v1676_v1, %v1660_v0 }
0x1b36   : > { %2462 = vtanh.f32 %v1678_v3 }
0x1b43   : > { %v2463_v4 = vpop.eup %2462 }
0x1b44   : > { %v1680_v37 = vsub.f32 %v2830_v6, %v2463_v4 }
0x1b46   : > { %1682 = vrot.lane.b32.xlu0 %v1680_v37, %s2482_s9 }
0x1bb8   : > { %v1683_v5 = vpop.permute.xlu0 %1682 }
0x1bb9   : > { %v1685_v7 = vmul.f32 %v2461_v61, %v1683_v5 }
0x1bbb   : > { %1687 = vrot.lane.b32.xlu1 %v1685_v7, %s2484_s13 }
0x1c2d   : > { %v1688_v8 = vpop.permute.xlu1 %1687 }
0x1c2e   : > { %v1690_v9 = vadd.f32 %v2463_v4, %v1688_v8 }
0x1c30   : > { %v1698_v10 = vrot.slane %v1690_v9, %v2579_v20 }
0x1c32   : > { %1699 = vrot.lane.b32.xlu0 %v1698_v10, %s2483_s12 }
0x1ca4   : > { %v1700_v19 = vpop.permute.xlu0 %1699 }
0x1ca5   : > { %1703 = vst.msk [vmem:[#allocation2 + $0x10] sm:$0x3] %vm710_vm4, %v1700_v19  ;;  %2374 = vmatmul.mubr.msk.f32.vlgmr.msra.gmra.mxu0 %vm559_vm3, %v1700_v19 }
0x1cac   : > { %v1836_v44 = vld [vmem:[#allocation2 + $0x10] sm:$0x3] }
0x1d65   : > { %v1772_v11 = vpop.f32.mrf.mxu0 }
0x1d66   : > { %v1785_v6 = vadd.f32 %v1772_v11, %v2634_v36  ;;  %v1776_v15 = vadd.f32 %v1772_v11, %v547_v14  ;;  %v1784_v36 = vadd.f32 %v2470_v16, %v547_v14 }
0x1d67   : > { %v2375_v12 = vpop.f32.mrf.mxu0 }
0x1d68   : > { %v1793_v13 = vrot.slane %v1785_v6, %v2579_v20  ;;  %v1777_v17 = vadd.f32 %v2470_v16, %v1776_v15 }
0x1d6a   : > { %1794 = vrot.lane.b32.xlu1 %v1793_v13, %s2483_s12  ;;  %v2185_v18 = vmul.f32 -1.442695, %v1777_v17 }
0x1d6c   : > { %2464 = vpow2.f32 %v2185_v18 }
0x1d79   : > { %v2465_v21 = vpop.eup %2464 }
0x1d7a   : > { %v1781_v22 = vadd.f32 1.0, %v2465_v21 }
0x1d7c   : > { %2466 = vrcp.f32 %v1781_v22 }
0x1d89   : > { %v2467_v23 = vpop.eup %2466 }
0x1ddc   : > { %v1795_v24 = vpop.permute.xlu1 %1794 }
0x1ddd   : > { %v1797_v25 = vmul.f32 %v2467_v23, %v1795_v24 }
0x1ddf   : > { %1799 = vrot.lane.b32.xlu0 %v1797_v25, %s2483_s12 }
0x1e51   : > { %v1800_v28 = vpop.permute.xlu0 %1799 }
0x1e52   : > { %v1802_v31 = vadd.f32 %v1800_v28, %v1784_v36 }
0x1e54   : > { %2468 = vtanh.f32 %v1802_v31 }
0x1e61   : > { %v2469_v33 = vpop.eup %2468 }
0x1e62   : > { %v1804_v35 = vsub.f32 %v1690_v9, %v2469_v33 }
0x1e64   : > { %1806 = vrot.lane.b32.xlu1 %v1804_v35, %s2482_s9 }
0x1ed6   : > { %v1807_v38 = vpop.permute.xlu1 %1806 }
0x1ed7   : > { %v1809_v39 = vmul.f32 %v2467_v23, %v1807_v38 }
0x1ed9   : > { %1811 = vrot.lane.b32.xlu0 %v1809_v39, %s2484_s13 }
0x1f4b   : > { %v1812_v40 = vpop.permute.xlu0 %1811 }
0x1f4c   : > { %v1814_v41 = vadd.f32 %v2469_v33, %v1812_v40 }
0x1f4e   : > { %v1822_v42 = vrot.slane %v1814_v41, %v2579_v20 }
0x1f50   : > { %1823 = vrot.lane.b32.xlu1 %v1822_v42, %s2483_s12 }
0x1fc2   : > { %v1824_v43 = vpop.permute.xlu1 %1823 }
0x1fc3   : > { %1827 = vst.msk [vmem:[#allocation2 + $0x12] sm:$0x3] %vm710_vm4, %v1824_v43 }
0x1fca   : > { %v1837_v34 = vld [vmem:[#allocation2 + $0x12] sm:$0x3] }
0x1fcb   : > { %v1893_v46 = vcombine.low %v1836_v44, %v1837_v34 }
0x1fcd   : > { %v1900_v2 = vrot.slane %v1893_v46, %v2579_v20 }
0x1fcf   : > { %2391 = vmatmul.mubr.msk.f32.gmra.mxu1 %vm559_vm3, %v1900_v2 }
0x208f   : > { %v1983_v47 = vpop.f32.mrf.mxu1 }
0x2090   : > { %v1984_v48 = vadd.f32 %v2865_v45, %v1983_v47 }
0x2091   : > { %v2392_v49 = vpop.f32.mrf.mxu1 }
0x2092   : > { %v2030_v50 = vrot.slane %v1984_v48, %v2579_v20 }
0x2094   : > { %v2031_v51 = vcombine.high %v2030_v50, %v2030_v50  ;;  %2051 = vst.msk [vmem:[%s2871_s30 + $0x10] sm:$0x3] %vm2042_vm5, %v2030_v50 }
0x2096   : > { %2052 = vst.msk [vmem:[%s2871_s30 + $0x12] sm:$0x3] %vm2042_vm5, %v2031_v51 }
0x2097 PF: > { %s17_s24 = sadd.s32 1, %s2477_s24  }
0x2098   : > { %p14_p4 = scmp.ge.s32.totalorder %s17_s24, 4  }
0x209a   :  { %16 = sbr.rel (!%p14_p4) target bundleno = 1 (0x1), region = 99 }

</bundles_post_ra>
